<compile_context>
chip_gen: v7x
topology: tpu7x:2x2x1
jax: 0.10.0
libtpu: 0.0.40
codegen_flags: <defaults>
</compile_context>

<pallas_src>
import functools

import jax
import jax.numpy as jnp
from jax.experimental import pallas as pl
from jax.experimental.pallas import tpu as pltpu


def _round_up(x, m):
    return ((x + m - 1) // m) * m


def _device_kind():
    try:
        return jax.devices()[0].device_kind.lower()
    except Exception:
        return ""


def _pick_tiling(n, *, multi_tc):
    """Pick (tile_n, n_pad): lane-aligned batch tile and padded batch size."""
    cap = 2048                                  # ~2 MiB f32 activation / tile
    n128 = _round_up(max(n, 1), 128)
    steps = pl.cdiv(n128, cap)
    if multi_tc and n128 >= 256:
        # v7x: even number of grid steps so both TensorCores get equal work.
        steps = max(2, steps)
        if steps % 2:
            steps += 1
    tile_n = _round_up(pl.cdiv(n128, steps), 128)
    n_pad = _round_up(max(n, 1), tile_n)
    return tile_n, n_pad


def mlp_kernel(xT_ref, w1t_ref, pack_ref,
               w2t_ref, w3t_ref, w4t_ref,
               o_ref, *, elem_bf16):
    # Feature-major activations: h has shape (hidden, tile_n), batch on lanes.
    xT = xT_ref[...]                      # (in_dim, tile_n)  f32
    w1t = w1t_ref[...]                    # (hidden, in_dim)  f32
    pack = pack_ref[...]                  # (hidden, 8)       f32
    b1 = pack[:, 0:1]
    b2 = pack[:, 1:2]
    b3 = pack[:, 2:3]
    b4 = pack[:, 3:4]
    w5 = pack[:, 4:5]
    b5 = pack[0:1, 5:6]                   # scalar bias of the output layer

    # ---- Layer 1: in_dim (=2) -> hidden.  K is tiny, so skip the MXU and do
    # broadcast FMAs (outer products) on the VPU, in f32 for accuracy.
    h = b1 + w1t[:, 0:1] * xT[0:1, :]
    for k in range(1, w1t.shape[1]):      # static unroll (in_dim is tiny)
        h = h + w1t[:, k:k + 1] * xT[k:k + 1, :]
    h = jnp.maximum(h, 0.0)

    # ---- Layers 2-4: 256x256xtile_n MXU matmuls with bf16 operands and
    # f32 accumulation.  Bias-add + ReLU in bf16 on chips with a bf16 VALU,
    # otherwise in f32 (cast only at the MXU boundary).
    def hidden_layer(h_prev, w_ref, b_col):
        acc = jnp.dot(w_ref[...], h_prev.astype(jnp.bfloat16),
                      preferred_element_type=jnp.float32)
        if elem_bf16:
            a = acc.astype(jnp.bfloat16) + b_col.astype(jnp.bfloat16)
            return jnp.maximum(a, 0.0)            # stays bf16 (weak-typed 0)
        return jnp.maximum(acc + b_col, 0.0)      # f32 elementwise path

    h = hidden_layer(h, w2t_ref, b2)
    h = hidden_layer(h, w3t_ref, b3)
    h = hidden_layer(h, w4t_ref, b4)

    # ---- Layer 5: hidden -> 1.  A width-1 MXU matmul would waste the array
    # and force masked stores; do a VPU multiply + sublane (XLU) reduction in
    # f32 instead, yielding a (1, tile_n) lane-dense row directly.
    y = jnp.sum(w5 * h.astype(jnp.float32), axis=0, keepdims=True) + b5
    o_ref[...] = y.astype(o_ref.dtype)


def mlp_forward(x, params, *, tile_n=None):
    """x: [N, in_dim] float32.  params: list of (W, b), W: (in, out), b: (out,)."""
    N, in_dim = x.shape
    (w1, b1), (w2, b2), (w3, b3), (w4, b4), (w5, b5) = params
    hidden = w1.shape[1]
    out_dim = w5.shape[1]
    assert out_dim == 1, "kernel assumes the MLP's single scalar output"

    kind = _device_kind()
    elem_bf16 = ("v6" in kind) or ("v7" in kind)    # bf16 VALU available
    multi_tc = "v7" in kind                         # 2 TensorCores / chip

    if tile_n is None:
        tile_n, n_pad = _pick_tiling(N, multi_tc=multi_tc)
    else:
        assert tile_n % 128 == 0
        n_pad = _round_up(N, tile_n)

    if n_pad != N:
        x = jnp.pad(x, ((0, n_pad - N), (0, 0)))

    # Feature-major layouts: batch on the lane (last) axis everywhere.
    xT = x.astype(jnp.float32).T                    # (in_dim, n_pad)
    w1t = w1.astype(jnp.float32).T                  # (hidden, in_dim), f32 (VPU)
    w2t = w2.T.astype(jnp.bfloat16)                 # bf16 MXU operands
    w3t = w3.T.astype(jnp.bfloat16)
    w4t = w4.T.astype(jnp.bfloat16)

    # Pack all per-channel constants into one (hidden, 8) f32 block:
    # cols = [b1, b2, b3, b4, w5_col, b5@row0, 0, 0].
    pack = jnp.zeros((hidden, 8), jnp.float32)
    pack = pack.at[:, 0].set(b1.astype(jnp.float32))
    pack = pack.at[:, 1].set(b2.astype(jnp.float32))
    pack = pack.at[:, 2].set(b3.astype(jnp.float32))
    pack = pack.at[:, 3].set(b4.astype(jnp.float32))
    pack = pack.at[:, 4].set(w5[:, 0].astype(jnp.float32))
    pack = pack.at[0, 5].set(b5[0].astype(jnp.float32))

    grid = (n_pad // tile_n,)

    def const_spec(shape):
        # Whole array, same block every grid step -> stays resident in VMEM.
        return pl.BlockSpec(shape, lambda i: (0, 0))

    in_specs = [
        pl.BlockSpec((in_dim, tile_n), lambda i: (0, i)),   # x tile (lane-dense)
        const_spec((hidden, in_dim)),                       # w1^T (f32)
        const_spec((hidden, 8)),                            # packed biases + w5 + b5
        const_spec((hidden, hidden)),                       # w2^T (bf16)
        const_spec((hidden, hidden)),                       # w3^T (bf16)
        const_spec((hidden, hidden)),                       # w4^T (bf16)
    ]
    out_spec = pl.BlockSpec((1, tile_n), lambda i: (0, i))  # lane-dense output row

    flops = 2 * n_pad * (in_dim * hidden + 3 * hidden * hidden + hidden * out_dim)
    weight_bytes = (4 * (in_dim * hidden + 8 * hidden)
                    + 2 * 3 * hidden * hidden)
    bytes_accessed = 4 * n_pad * in_dim + weight_bytes + 4 * n_pad * out_dim

    yT = pl.pallas_call(
        functools.partial(mlp_kernel, elem_bf16=elem_bf16),
        out_shape=jax.ShapeDtypeStruct((1, n_pad), jnp.float32),
        grid_spec=pltpu.PrefetchScalarGridSpec(
            num_scalar_prefetch=0,
            grid=grid,
            in_specs=in_specs,
            out_specs=out_spec,
        ),
        compiler_params=pltpu.CompilerParams(
            dimension_semantics=("parallel",),      # batch axis shards across TCs
        ),
        cost_estimate=pl.CostEstimate(
            flops=flops, transcendentals=0, bytes_accessed=bytes_accessed),
    )(xT, w1t, pack, w2t, w3t, w4t)

    # (1, n_pad) -> (N, 1): pure layout plumbing in the wrapper.
    return yT.reshape(n_pad, 1)[:N]


def init_params(key, in_dim=2, hidden_dim=256, out_dim=1):
    dims = [(in_dim, hidden_dim),
            (hidden_dim, hidden_dim),
            (hidden_dim, hidden_dim),
            (hidden_dim, hidden_dim),
            (hidden_dim, out_dim)]
    params = []
    for (fan_in, fan_out) in dims:
        key, kw, kb = jax.random.split(key, 3)
        bound = 1.0 / jnp.sqrt(fan_in)   # matches PyTorch nn.Linear default init range
        w = jax.random.uniform(kw, (fan_in, fan_out), jnp.float32, -bound, bound)
        b = jax.random.uniform(kb, (fan_out,), jnp.float32, -bound, bound)
        params.append((w, b))
    return params


def mlp_reference(x, params):
    h = x
    for i, (w, b) in enumerate(params):
        h = h @ w + b[None, :]
        if i < len(params) - 1:
            h = jnp.maximum(h, 0.0)
    return h


if __name__ == "__main__":
    key = jax.random.PRNGKey(0)
    k_x, k_p = jax.random.split(key)

    N, in_dim, hidden_dim, out_dim = 512, 2, 256, 1
    x = jax.random.normal(k_x, (N, in_dim), dtype=jnp.float32)
    params = init_params(k_p, in_dim, hidden_dim, out_dim)

    out = jax.block_until_ready(mlp_forward(x, params))

    ref = mlp_reference(x, params)
    assert out.shape == (N, out_dim)
    # bf16 MXU operands (f32 accumulation) -> loosened tolerance vs f32 reference.
    assert jnp.allclose(out, ref, atol=5e-2, rtol=5e-2), "mismatch vs reference"

    print("KERNEL_OK")
</pallas_src>

<mosaic_0001>
module attributes {stable_mosaic.version = 11 : i64} {
  func.func @mlp_kernel(%arg0: i32, %arg1: memref<2x512xf32, #tpu.memory_space<vmem>>, %arg2: memref<256x2xf32, #tpu.memory_space<vmem>>, %arg3: memref<256x8xf32, #tpu.memory_space<vmem>>, %arg4: memref<256x256xbf16, #tpu.memory_space<vmem>>, %arg5: memref<256x256xbf16, #tpu.memory_space<vmem>>, %arg6: memref<256x256xbf16, #tpu.memory_space<vmem>>, %arg7: memref<1x512xf32, #tpu.memory_space<vmem>>) attributes {dimension_semantics = [#tpu.dimension_semantics<parallel>], iteration_bounds = array<i64: 1>, scalar_prefetch = 0 : i64, scratch_operands = 0 : i64, tpu.core_type = #tpu.core_type<tc>, window_params = [{transform_indices = @transform_0, window_bounds = array<i64: 2, 512>}, {pipeline_mode = #tpu.pipeline_mode<synchronous>, transform_indices = @transform_1, window_bounds = array<i64: 256, 2>}, {pipeline_mode = #tpu.pipeline_mode<synchronous>, transform_indices = @transform_2, window_bounds = array<i64: 256, 8>}, {pipeline_mode = #tpu.pipeline_mode<synchronous>, transform_indices = @transform_3, window_bounds = array<i64: 256, 256>}, {pipeline_mode = #tpu.pipeline_mode<synchronous>, transform_indices = @transform_4, window_bounds = array<i64: 256, 256>}, {pipeline_mode = #tpu.pipeline_mode<synchronous>, transform_indices = @transform_5, window_bounds = array<i64: 256, 256>}, {transform_indices = @transform_6, window_bounds = array<i64: 1, 512>}]} {
    %c0 = arith.constant 0 : index
    %c0_0 = arith.constant 0 : index
    %0 = vector.load %arg1[%c0, %c0_0] : memref<2x512xf32, #tpu.memory_space<vmem>>, vector<2x512xf32>
    %c0_1 = arith.constant 0 : index
    %c0_2 = arith.constant 0 : index
    %1 = vector.load %arg2[%c0_1, %c0_2] : memref<256x2xf32, #tpu.memory_space<vmem>>, vector<256x2xf32>
    %c0_3 = arith.constant 0 : index
    %c0_4 = arith.constant 0 : index
    %2 = vector.load %arg3[%c0_3, %c0_4] : memref<256x8xf32, #tpu.memory_space<vmem>>, vector<256x8xf32>
    %3 = vector.extract_strided_slice %2 {offsets = [0, 0], sizes = [256, 1], strides = [1, 1]} : vector<256x8xf32> to vector<256x1xf32>
    %4 = vector.extract_strided_slice %2 {offsets = [0, 1], sizes = [256, 1], strides = [1, 1]} : vector<256x8xf32> to vector<256x1xf32>
    %5 = vector.extract_strided_slice %2 {offsets = [0, 2], sizes = [256, 1], strides = [1, 1]} : vector<256x8xf32> to vector<256x1xf32>
    %6 = vector.extract_strided_slice %2 {offsets = [0, 3], sizes = [256, 1], strides = [1, 1]} : vector<256x8xf32> to vector<256x1xf32>
    %7 = vector.extract_strided_slice %2 {offsets = [0, 4], sizes = [256, 1], strides = [1, 1]} : vector<256x8xf32> to vector<256x1xf32>
    %8 = vector.extract_strided_slice %2 {offsets = [0, 5], sizes = [1, 1], strides = [1, 1]} : vector<256x8xf32> to vector<1x1xf32>
    %9 = vector.extract_strided_slice %1 {offsets = [0, 0], sizes = [256, 1], strides = [1, 1]} : vector<256x2xf32> to vector<256x1xf32>
    %10 = vector.extract_strided_slice %0 {offsets = [0, 0], sizes = [1, 512], strides = [1, 1]} : vector<2x512xf32> to vector<1x512xf32>
    %11 = vector.broadcast %9 : vector<256x1xf32> to vector<256x512xf32>
    %12 = vector.broadcast %10 : vector<1x512xf32> to vector<256x512xf32>
    %13 = arith.mulf %11, %12 : vector<256x512xf32>
    %14 = vector.broadcast %3 : vector<256x1xf32> to vector<256x512xf32>
    %15 = arith.addf %14, %13 : vector<256x512xf32>
    %16 = vector.extract_strided_slice %1 {offsets = [0, 1], sizes = [256, 1], strides = [1, 1]} : vector<256x2xf32> to vector<256x1xf32>
    %17 = vector.extract_strided_slice %0 {offsets = [1, 0], sizes = [1, 512], strides = [1, 1]} : vector<2x512xf32> to vector<1x512xf32>
    %18 = vector.broadcast %16 : vector<256x1xf32> to vector<256x512xf32>
    %19 = vector.broadcast %17 : vector<1x512xf32> to vector<256x512xf32>
    %20 = arith.mulf %18, %19 : vector<256x512xf32>
    %21 = arith.addf %15, %20 : vector<256x512xf32>
    %cst = arith.constant 0.000000e+00 : f32
    %22 = vector.broadcast %cst : f32 to vector<256x512xf32>
    %23 = arith.maximumf %21, %22 : vector<256x512xf32>
    %c0_5 = arith.constant 0 : index
    %c0_6 = arith.constant 0 : index
    %24 = vector.load %arg4[%c0_5, %c0_6] : memref<256x256xbf16, #tpu.memory_space<vmem>>, vector<256x256xbf16>
    %25 = arith.truncf %23 : vector<256x512xf32> to vector<256x512xbf16>
    %cst_7 = arith.constant dense<0.000000e+00> : vector<256x512xf32>
    %26 = tpu.matmul %24, %25, %cst_7 {dimension_numbers = #tpu.dot_dimension_numbers<[1], [0], [0], [1], [0, 0, 1, 1], [], []>} : vector<256x256xbf16>, vector<256x512xbf16>, vector<256x512xf32> -> vector<256x512xf32>
    %27 = vector.broadcast %4 : vector<256x1xf32> to vector<256x512xf32>
    %28 = arith.addf %26, %27 : vector<256x512xf32>
    %cst_8 = arith.constant 0.000000e+00 : f32
    %29 = vector.broadcast %cst_8 : f32 to vector<256x512xf32>
    %30 = arith.maximumf %28, %29 : vector<256x512xf32>
    %c0_9 = arith.constant 0 : index
    %c0_10 = arith.constant 0 : index
    %31 = vector.load %arg5[%c0_9, %c0_10] : memref<256x256xbf16, #tpu.memory_space<vmem>>, vector<256x256xbf16>
    %32 = arith.truncf %30 : vector<256x512xf32> to vector<256x512xbf16>
    %cst_11 = arith.constant dense<0.000000e+00> : vector<256x512xf32>
    %33 = tpu.matmul %31, %32, %cst_11 {dimension_numbers = #tpu.dot_dimension_numbers<[1], [0], [0], [1], [0, 0, 1, 1], [], []>} : vector<256x256xbf16>, vector<256x512xbf16>, vector<256x512xf32> -> vector<256x512xf32>
    %34 = vector.broadcast %5 : vector<256x1xf32> to vector<256x512xf32>
    %35 = arith.addf %33, %34 : vector<256x512xf32>
    %cst_12 = arith.constant 0.000000e+00 : f32
    %36 = vector.broadcast %cst_12 : f32 to vector<256x512xf32>
    %37 = arith.maximumf %35, %36 : vector<256x512xf32>
    %c0_13 = arith.constant 0 : index
    %c0_14 = arith.constant 0 : index
    %38 = vector.load %arg6[%c0_13, %c0_14] : memref<256x256xbf16, #tpu.memory_space<vmem>>, vector<256x256xbf16>
    %39 = arith.truncf %37 : vector<256x512xf32> to vector<256x512xbf16>
    %cst_15 = arith.constant dense<0.000000e+00> : vector<256x512xf32>
    %40 = tpu.matmul %38, %39, %cst_15 {dimension_numbers = #tpu.dot_dimension_numbers<[1], [0], [0], [1], [0, 0, 1, 1], [], []>} : vector<256x256xbf16>, vector<256x512xbf16>, vector<256x512xf32> -> vector<256x512xf32>
    %41 = vector.broadcast %6 : vector<256x1xf32> to vector<256x512xf32>
    %42 = arith.addf %40, %41 : vector<256x512xf32>
    %cst_16 = arith.constant 0.000000e+00 : f32
    %43 = vector.broadcast %cst_16 : f32 to vector<256x512xf32>
    %44 = arith.maximumf %42, %43 : vector<256x512xf32>
    %45 = vector.broadcast %7 : vector<256x1xf32> to vector<256x512xf32>
    %46 = arith.mulf %45, %44 : vector<256x512xf32>
    %cst_17 = arith.constant dense<0.000000e+00> : vector<512xf32>
    %47 = vector.multi_reduction <add>, %46, %cst_17 [0] : vector<256x512xf32> to vector<512xf32>
    %48 = vector.shape_cast %47 : vector<512xf32> to vector<1x512xf32>
    %49 = vector.broadcast %8 : vector<1x1xf32> to vector<1x512xf32>
    %50 = arith.addf %48, %49 : vector<1x512xf32>
    %c0_18 = arith.constant 0 : index
    %c0_19 = arith.constant 0 : index
    %51 = vector.load %arg7[%c0_18, %c0_19] : memref<1x512xf32, #tpu.memory_space<vmem>>, vector<1x512xf32>
    tpu.vector_store %arg7[%c0_18, %c0_19], %50 {strides = array<i32>} : memref<1x512xf32, #tpu.memory_space<vmem>>, vector<1x512xf32>,
    return
  }
  func.func @transform_0(%arg0: i32) -> (i32, i32) {
    %c0_i32 = arith.constant 0 : i32
    %c0_i32_0 = arith.constant 0 : i32
    return %c0_i32, %arg0 : i32, i32
  }
  func.func @transform_1(%arg0: i32) -> (i32, i32) {
    %c0_i32 = arith.constant 0 : i32
    %c0_i32_0 = arith.constant 0 : i32
    %c0_i32_1 = arith.constant 0 : i32
    return %c0_i32, %c0_i32_0 : i32, i32
  }
  func.func @transform_2(%arg0: i32) -> (i32, i32) {
    %c0_i32 = arith.constant 0 : i32
    %c0_i32_0 = arith.constant 0 : i32
    %c0_i32_1 = arith.constant 0 : i32
    return %c0_i32, %c0_i32_0 : i32, i32
  }
  func.func @transform_3(%arg0: i32) -> (i32, i32) {
    %c0_i32 = arith.constant 0 : i32
    %c0_i32_0 = arith.constant 0 : i32
    %c0_i32_1 = arith.constant 0 : i32
    return %c0_i32, %c0_i32_0 : i32, i32
  }
  func.func @transform_4(%arg0: i32) -> (i32, i32) {
    %c0_i32 = arith.constant 0 : i32
    %c0_i32_0 = arith.constant 0 : i32
    %c0_i32_1 = arith.constant 0 : i32
    return %c0_i32, %c0_i32_0 : i32, i32
  }
  func.func @transform_5(%arg0: i32) -> (i32, i32) {
    %c0_i32 = arith.constant 0 : i32
    %c0_i32_0 = arith.constant 0 : i32
    %c0_i32_1 = arith.constant 0 : i32
    return %c0_i32, %c0_i32_0 : i32, i32
  }
  func.func @transform_6(%arg0: i32) -> (i32, i32) {
    %c0_i32 = arith.constant 0 : i32
    %c0_i32_0 = arith.constant 0 : i32
    return %c0_i32, %arg0 : i32, i32
  }
}

</mosaic_0001>

<bundles_post_ra>
// kernel: tpu_custom_call.1
= control target key start
LH: loop header
LB: loop body
LE: loop exit
PB: predicated region body
PF: predicated region fallthrough
CT: control target
= control target key end

     0   :  { %11 = vsyncpa [#allocation3], 0  ;;  %s6809_s0 = inlined_call_operand.hbm [shape: f32[2,512], index: 0, kind: input, shape index: {}]   ;;  %s6810_s1 = inlined_call_operand.vmem [shape: f32[256,2], index: 1, kind: input, shape index: {}]   ;;  %s6811_s2 = inlined_call_operand.vmem [shape: f32[256,8], index: 2, kind: input, shape index: {}]   ;;  %s6812_s3 = inlined_call_operand.vmem [shape: bf16[256,256], index: 3, kind: input, shape index: {}]   ;;  %s6813_s4 = inlined_call_operand.vmem [shape: bf16[256,256], index: 4, kind: input, shape index: {}]   ;;  %s6814_s5 = inlined_call_operand.hbm [shape: bf16[256,256], index: 5, kind: input, shape index: {}]   ;;  %s6815_s6 = inlined_call_operand.hbm [shape: f32[1,512], index: 6, kind: output, shape index: {}]  }
   0x1   :  { %12 = vsyncpa [#allocation6], 0 }
   0x2   :  { %13 = vsyncpa [#allocation4], 0  ;;  %s4882_s21 = smov [#allocation2]   ;;  %s4883_s23 = smov [#allocation5]  }
   0x3   :  { %s20_s22 = sshll.u32 %s4882_s21, 4  ;;  %s37_s24 = sshll.u32 %s4883_s23, 4  ;;  %s21_s22 = int_to_ptr.vmem [resolvable:$true] %s20_s22  ;;  %s4929_s24 = int_to_ptr.vmem [resolvable:$true] %s37_s24 }
   0x4   :  { %s4810_s27 = scalar_lea.hbm %s6809_s0, 128 }
   0x5   :  { %p4811_p0 = scmp.ne.s32.totalorder %s6809_s0, %s4810_s27  ;;  %p4814_p1 = scmp.lt.u32.totalorder %s4810_s27, %s6809_s0 }
   0x7   :  { %p4816_p2 = pnand %p4814_p1, %p4811_p0 }
   0x9   :  { %4819 = shalt.err (!%p4816_p2)
}
   0xa   :  { %s4820_s8 = scalar_lea.vmem %s21_s22, 128  ;;  %p4825_p4 = scmp.lt.s32.totalorder %s21_s22, %s21_s22 }
   0xb   :  { %p4821_p3 = scmp.ne.s32.totalorder %s21_s22, %s4820_s8  ;;  %p4826_p5 = scmp.lt.s32.totalorder %s4820_s8, %s4820_s8 }
   0xd   :  { %p4827_p6 = por %p4826_p5, %p4825_p4 }
   0xf   :  { %p4828_p7 = pnand %p4827_p6, %p4821_p3 }
  0x11   :  { %4831 = shalt.err (!%p4828_p7)
}
  0x12   :  { %23 = dma.hbm_to_vmem [thread:$0]  %s6809_s0, 128, %s21_s22, [#allocation3]  }
  0x13   :  { %s4832_s13 = scalar_lea.hbm %s6814_s5, 4096 }
  0x14   :  { %p4833_p8 = scmp.ne.s32.totalorder %s6814_s5, %s4832_s13  ;;  %p4836_p9 = scmp.lt.u32.totalorder %s4832_s13, %s6814_s5 }
  0x16   :  { %p4838_p10 = pnand %p4836_p9, %p4833_p8 }
  0x18   :  { %4841 = shalt.err (!%p4838_p10)
}
  0x19   :  { %s4842_s18 = scalar_lea.vmem %s4929_s24, 4096  ;;  %p4847_p12 = scmp.lt.s32.totalorder %s4929_s24, %s4929_s24 }
  0x1a   :  { %p4843_p11 = scmp.ne.s32.totalorder %s4929_s24, %s4842_s18  ;;  %p4848_p13 = scmp.lt.s32.totalorder %s4842_s18, %s4842_s18 }
  0x1c   :  { %p4849_p0 = por %p4848_p13, %p4847_p12 }
  0x1e   :  { %p4850_p1 = pnand %p4849_p0, %p4843_p11 }
  0x20   :  { %4853 = shalt.err (!%p4850_p1)
}
  0x21   :  { %s4884_s0 = smov 128   ;;  %s4885_s19 = smov 8  }
  0x22   :  { %43 = dma.hbm_to_vmem [thread:$0]  %s6814_s5, 4096, %s4929_s24, [#allocation6], %s4884_s0, %s4884_s0, %s4885_s19  }
  0x23   :  { %4876 = dma.done.wait [#allocation3], 128  }
  0x24   :  { %4877 = vsyncadd [#allocation3], 4294967168 }
  0x25   :  { %4878 = dma.done.wait [#allocation6], 4096  }
  0x26   :  { %4879 = vsyncadd [#allocation6], 4294963200  ;;  %v6817_v0 = vmov 0   ;;  %v83_v1 = vld [vmem:[%s6811_s2] sm:$0xff]  ;;  %v4974_v3 = vld [vmem:[%s6811_s2 + $0x8] sm:$0xff]  ;;  %v6819_v6 = vmov 1   ;;  %v6816_v63 = vlaneseq }
  0x27   :  { %4541 = vset.pattern.permute.xlu1 %v6817_v0  ;;  %4540 = vset.pattern.permute.xlu0 %v6817_v0  ;;  %v4968_v2 = vld [vmem:[%s6810_s1] sm:$0xff]  ;;  %v52_v4 = vld [vmem:[%s6810_s1 + $0x8] sm:$0xff]  ;;  %v54_v5 = vld [vmem:[%s6810_s1 + $0x18] sm:$0xff] }
  0x28   :  { %442 = vperm.xlu1 %4541, %v83_v1   ;;  %117 = vperm.xlu0 %4540, %v4968_v2   ;;  %v56_v7 = vld [vmem:[%s6810_s1 + $0x28] sm:$0xff]  ;;  %v53_v8 = vld [vmem:[%s6810_s1 + $0x10] sm:$0xff]  ;;  %v58_v9 = vld [vmem:[%s6810_s1 + $0x38] sm:$0xff] }
  0x29   :  { %v85_v10 = vld [vmem:[%s6811_s2 + $0x10] sm:$0xff]  ;;  %v60_v11 = vld [vmem:[%s6810_s1 + $0x48] sm:$0xff]  ;;  %v5003_v12 = vld [vmem:[%s6811_s2 + $0x18] sm:$0xff] }
  0x2a   :  { %v5008_v13 = vld [vmem:[%s6810_s1 + $0x58] sm:$0xff]  ;;  %v5014_v14 = vld [vmem:[%s6810_s1 + $0x68] sm:$0xff]  ;;  %v55_v15 = vld [vmem:[%s6810_s1 + $0x20] sm:$0xff] }
  0x2b   :  { %v5024_v16 = vld [vmem:[%s6810_s1 + $0x78] sm:$0xff]  ;;  %v87_v17 = vld [vmem:[%s6811_s2 + $0x20] sm:$0xff]  ;;  %v5035_v18 = vld [vmem:[%s6810_s1 + $0x88] sm:$0xff] }
  0x2c   :  { %447 = vperm.xlu1 %4541, %v4974_v3   ;;  %122 = vperm.xlu0 %4540, %v52_v4   ;;  %v5040_v19 = vld [vmem:[%s6811_s2 + $0x28] sm:$0xff]  ;;  %v5046_v20 = vld [vmem:[%s6810_s1 + $0x98] sm:$0xff]  ;;  %v57_v23 = vld [vmem:[%s6810_s1 + $0x30] sm:$0xff] }
  0x2d   :  { %v5051_v21 = vld [vmem:[%s6810_s1 + $0xa8] sm:$0xff]  ;;  %v5058_v22 = vld [vmem:[%s6810_s1 + $0xb8] sm:$0xff]  ;;  %v89_v25 = vld [vmem:[%s6811_s2 + $0x30] sm:$0xff] }
  0x2e   :  { %v5070_v24 = vld [vmem:[%s6810_s1 + $0xc8] sm:$0xff]  ;;  %v78_v26 = vld [vmem:[%s6810_s1 + $0xd8] sm:$0xff]  ;;  %v59_v30 = vld [vmem:[%s6810_s1 + $0x40] sm:$0xff] }
  0x2f   :  { %6842 = vst [vmem:[#allocation11_spill] sm:$0xff] %v5070_v24  ;;  %v5082_v27 = vld [vmem:[%s6811_s2 + $0x38] sm:$0xff]  ;;  %v80_v28 = vld [vmem:[%s6810_s1 + $0xe8] sm:$0xff]  ;;  %v91_v31 = vld [vmem:[%s6811_s2 + $0x40] sm:$0xff] }
  0x30   :  { %4542 = vset.pattern.permute.xlu1 %v6819_v6  ;;  %132 = vperm.xlu0 %4540, %v54_v5   ;;  %v82_v29 = vld [vmem:[%s6810_s1 + $0xf8] sm:$0xff]  ;;  %v5104_v32 = vld [vmem:[%s6811_s2 + $0x48] sm:$0xff]  ;;  %v61_v33 = vld [vmem:[%s6810_s1 + $0x50] sm:$0xff] }
  0x31   :  { %733 = vperm.xlu1 %4542, %v52_v4   ;;  %v93_v34 = vld [vmem:[%s6811_s2 + $0x50] sm:$0xff]  ;;  %v5118_v35 = vld [vmem:[%s6811_s2 + $0x58] sm:$0xff]  ;;  %v63_v36 = vld [vmem:[%s6810_s1 + $0x60] sm:$0xff] }
  0x32   :  { %v65_v37 = vld [vmem:[%s6810_s1 + $0x70] sm:$0xff]  ;;  %v67_v38 = vld [vmem:[%s6810_s1 + $0x80] sm:$0xff]  ;;  %v96_v42 = vld [vmem:[%s6811_s2 + $0x68] sm:$0xff] }
  0x33   :  { %v5135_v39 = vld [vmem:[%s6810_s1 + $0x90] sm:$0xff]  ;;  %v95_v40 = vld [vmem:[%s6811_s2 + $0x60] sm:$0xff]  ;;  %v98_v51 = vld [vmem:[%s6811_s2 + $0x78] sm:$0xff] }
  0x34   :  { %142 = vperm.xlu0 %4540, %v56_v7   ;;  %v5145_v41 = vld [vmem:[%s6810_s1 + $0xa0] sm:$0xff]  ;;  %v5154_v43 = vld [vmem:[%s6810_s1 + $0xb0] sm:$0xff]  ;;  %v100_v61 = vld [vmem:[%s6811_s2 + $0x88] sm:$0xff] }
  0x35   :  { %4543 = vset.pattern.permute.xlu1 %v6817_v0  ;;  %v5160_v44 = vld [vmem:[%s6810_s1 + $0xc0] sm:$0xff]  ;;  %v5168_v45 = vld [vmem:[%s6810_s1 + $0xd0] sm:$0xff] }
  0x36   :  { %127 = vperm.xlu1 %4543, %v53_v8   ;;  %6843 = vst [vmem:[#allocation12_spill] sm:$0xff] %v5168_v45  ;;  %v5175_v46 = vld [vmem:[%s6810_s1 + $0xe0] sm:$0xff]  ;;  %v97_v47 = vld [vmem:[%s6811_s2 + $0x70] sm:$0xff] }
  0x37   :  { %6844 = vst [vmem:[#allocation13_spill] sm:$0xff] %v5175_v46  ;;  %v81_v48 = vld [vmem:[%s6810_s1 + $0xf0] sm:$0xff]  ;;  %v99_v58 = vld [vmem:[%s6811_s2 + $0x80] sm:$0xff] }
  0x38   :  { %152 = vperm.xlu0 %4540, %v58_v9  }
  0x3a   :  { %452 = vperm.xlu1 %4543, %v85_v10  }
  0x3c   :  { %162 = vperm.xlu0 %4540, %v60_v11  }
  0x3e   :  { %457 = vperm.xlu1 %4543, %v5003_v12  }
  0x40   :  { %172 = vperm.xlu0 %4540, %v5008_v13  }
  0x42   :  { %4544 = vset.pattern.permute.xlu1 %v6819_v6 }
  0x43   :  { %741 = vperm.xlu1 %4544, %v54_v5  }
  0x44   :  { %182 = vperm.xlu0 %4540, %v5014_v14  }
  0x47   :  { %4545 = vset.pattern.permute.xlu1 %v6817_v0 }
  0x48   :  { %137 = vperm.xlu1 %4545, %v55_v15   ;;  %192 = vperm.xlu0 %4540, %v5024_v16  }
  0x4c   :  { %462 = vperm.xlu1 %4545, %v87_v17   ;;  %202 = vperm.xlu0 %4540, %v5035_v18  }
  0x50   :  { %467 = vperm.xlu1 %4545, %v5040_v19   ;;  %212 = vperm.xlu0 %4540, %v5046_v20  }
  0x54   :  { %4546 = vset.pattern.permute.xlu1 %v6819_v6  ;;  %222 = vperm.xlu0 %4540, %v5051_v21  }
  0x55   :  { %749 = vperm.xlu1 %4546, %v56_v7  }
  0x58   :  { %232 = vperm.xlu0 %4540, %v5058_v22  }
  0x59   :  { %4547 = vset.pattern.permute.xlu1 %v6817_v0 }
  0x5a   :  { %147 = vperm.xlu1 %4547, %v57_v23  }
  0x5c   :  { %242 = vperm.xlu0 %4540, %v5070_v24  }
  0x5e   :  { %472 = vperm.xlu1 %4547, %v89_v25  }
  0x60   :  { %252 = vperm.xlu0 %4540, %v78_v26  }
  0x62   :  { %477 = vperm.xlu1 %4547, %v5082_v27  }
  0x64   :  { %262 = vperm.xlu0 %4540, %v80_v28  }
  0x66   :  { %4548 = vset.pattern.permute.xlu1 %v6819_v6 }
  0x67   :  { %757 = vperm.xlu1 %4548, %v58_v9  }
  0x68   :  { %272 = vperm.xlu0 %4540, %v82_v29  }
  0x6b   :  { %4549 = vset.pattern.permute.xlu1 %v6817_v0 }
  0x6c   :  { %157 = vperm.xlu1 %4549, %v59_v30   ;;  %4572 = vset.pattern.permute.xlu0 %v6819_v6 }
  0x6d   :  { %729 = vperm.xlu0 %4572, %v4968_v2  }
  0x70   :  { %482 = vperm.xlu1 %4549, %v91_v31  }
  0x71   :  { %737 = vperm.xlu0 %4572, %v53_v8  }
  0x74   :  { %487 = vperm.xlu1 %4549, %v5104_v32  }
  0x75   :  { %745 = vperm.xlu0 %4572, %v55_v15  }
  0x78   :  { %4550 = vset.pattern.permute.xlu1 %v6819_v6 }
  0x79   :  { %765 = vperm.xlu1 %4550, %v60_v11   ;;  %753 = vperm.xlu0 %4572, %v57_v23  }
  0x7d   :  { %4551 = vset.pattern.permute.xlu1 %v6817_v0  ;;  %761 = vperm.xlu0 %4572, %v59_v30  }
  0x7e   :  { %167 = vperm.xlu1 %4551, %v61_v33  }
  0x81   :  { %769 = vperm.xlu0 %4572, %v61_v33   ;;  %v102_v33 = vld [vmem:[%s6811_s2 + $0x98] sm:$0xff] }
  0x82   :  { %492 = vperm.xlu1 %4551, %v93_v34  }
  0x85   :  { %777 = vperm.xlu0 %4572, %v63_v36  }
  0x86   :  { %497 = vperm.xlu1 %4551, %v5118_v35  }
  0x89   :  { %785 = vperm.xlu0 %4572, %v65_v37  }
  0x8a   :  { %4552 = vset.pattern.permute.xlu1 %v6819_v6 }
  0x8b   :  { %773 = vperm.xlu1 %4552, %v5008_v13   ;;  %v50_v13 = vld [vmem:[#allocation2] sm:$0xff] }
  0x8d   :  { %793 = vperm.xlu0 %4572, %v67_v38  }
  0x8f   :  { %4553 = vset.pattern.permute.xlu1 %v6817_v0 }
  0x90   :  { %177 = vperm.xlu1 %4553, %v63_v36  }
  0x91   :  { %801 = vperm.xlu0 %4572, %v5135_v39  }
  0x94   :  { %502 = vperm.xlu1 %4553, %v95_v40  }
  0x95   :  { %809 = vperm.xlu0 %4572, %v5145_v41  }
  0x98   :  { %507 = vperm.xlu1 %4553, %v96_v42  }
  0x99   :  { %817 = vperm.xlu0 %4572, %v5154_v43  }
  0x9c   :  { %4554 = vset.pattern.permute.xlu1 %v6819_v6 }
  0x9d   :  { %781 = vperm.xlu1 %4554, %v5014_v14   ;;  %825 = vperm.xlu0 %4572, %v5160_v44  }
  0xa1   :  { %4555 = vset.pattern.permute.xlu1 %v6817_v0  ;;  %833 = vperm.xlu0 %4572, %v5168_v45  }
  0xa2   :  { %187 = vperm.xlu1 %4555, %v65_v37  }
  0xa5   :  { %841 = vperm.xlu0 %4572, %v5175_v46  }
  0xa6   :  { %512 = vperm.xlu1 %4555, %v97_v47  }
  0xa7   :  { %v5184_v49 = vpop.permute.xlu1 %442  ;;  %v5186_v50 = vpop.permute.xlu0 %117 }
  0xa9   :  { %849 = vperm.xlu0 %4572, %v81_v48  }
  0xaa   :  { %517 = vperm.xlu1 %4555, %v98_v51  }
  0xab   :  { %v5191_v52 = vpop.permute.xlu1 %447  ;;  %v5193_v53 = vpop.permute.xlu0 %122 }
  0xad   :  { %1377 = vperm.xlu0 %4572, %v4974_v3   ;;  %v5228_v3 = vshrl.u32 %v6816_v63, 7 }
  0xae   :  { %4556 = vset.pattern.permute.xlu1 %v6819_v6 }
  0xaf   :  { %789 = vperm.xlu1 %4556, %v5024_v16   ;;  %v5198_v54 = vpop.permute.xlu0 %132  ;;  %6845 = vst [vmem:[#allocation14_spill] sm:$0xff] %v5228_v3  ;;  %v282_v7 = vsub.s32 2, %v5228_v3  ;;  %v290_v8 = vsub.s32 6, %v5228_v3  ;;  %v862_v9 = vsub.s32 3, %v5228_v3  ;;  %v870_v10 = vsub.s32 7, %v5228_v3 }
  0xb0   :  { %v5200_v55 = vpop.permute.xlu1 %733  ;;  %v278_v11 = vsub.s32 0, %v5228_v3  ;;  %v858_v14 = vsub.s32 1, %v5228_v3  ;;  %v866_v15 = vsub.s32 5, %v5228_v3 }
  0xb1   :  { %1385 = vperm.xlu0 %4572, %v5003_v12   ;;  %v286_v12 = vsub.s32 4, %v5228_v3  ;;  %v291_v23 = vrot.slane %v50_v13, %v290_v8  ;;  %v863_v25 = vrot.slane %v50_v13, %v862_v9  ;;  %v871_v26 = vrot.slane %v50_v13, %v870_v10 }
  0xb2   :  { %v859_v29 = vrot.slane %v50_v13, %v858_v14  ;;  %v867_v30 = vrot.slane %v50_v13, %v866_v15 }
  0xb3   :  { %4557 = vset.pattern.permute.xlu1 %v6817_v0  ;;  %v5204_v56 = vpop.permute.xlu0 %142  ;;  %v287_v28 = vrot.slane %v50_v13, %v286_v12  ;;  %v5265_v36 = vrot.slane %v863_v25, %v858_v14  ;;  %v5267_v37 = vrot.slane %v871_v26, %v858_v14  ;;  %v5318_v26 = vld [vmem:[%s6811_s2 + $0xa8] sm:$0xff] }
  0xb4   :  { %197 = vperm.xlu1 %4557, %v67_v38   ;;  %v5273_v40 = vrot.slane %v859_v29, %v858_v14 }
  0xb5   :  { %v5206_v57 = vpop.permute.xlu1 %127  ;;  %1393 = vperm.xlu0 %4572, %v5040_v19   ;;  %v283_v19 = vrot.slane %v50_v13, %v282_v7  ;;  %v897_v8 = vmul.f32 %v5265_v36, %v5200_v55  ;;  %v899_v9 = vmul.f32 %v5267_v37, %v5200_v55 }
  0xb6   :  { %v896_v12 = vmul.f32 %v5273_v40, %v5200_v55 }
  0xb7   :  { %v5212_v59 = vpop.permute.xlu0 %152  ;;  %v5261_v34 = vrot.slane %v283_v19, %v278_v11 }
  0xb8   :  { %522 = vperm.xlu1 %4557, %v99_v58  }
  0xb9   :  { %v5214_v60 = vpop.permute.xlu1 %452  ;;  %1401 = vperm.xlu0 %4572, %v5082_v27   ;;  %v279_v27 = vrot.slane %v50_v13, %v278_v11  ;;  %v317_v47 = vmul.f32 %v5261_v34, %v5193_v53  ;;  %v313_v10 = vmul.f32 %v5261_v34, %v5186_v50 }
  0xbb   :  { %v5220_v62 = vpop.permute.xlu0 %162  ;;  %v5269_v38 = vrot.slane %v279_v27, %v278_v11 }
  0xbc   :  { %527 = vperm.xlu1 %4557, %v100_v61  }
  0xbd   :  { %v5222_v1 = vpop.permute.xlu1 %457  ;;  %1409 = vperm.xlu0 %4572, %v5104_v32   ;;  %v316_v7 = vmul.f32 %v5269_v38, %v5193_v53  ;;  %v312_v15 = vmul.f32 %v5269_v38, %v5186_v50  ;;  %v5390_v63 = vmul.f32 %v5269_v38, %v5212_v59 }
  0xbf   :  { %v5225_v2 = vpop.permute.xlu0 %172 }
  0xc0   :  { %4558 = vset.pattern.permute.xlu1 %v6819_v6 }
  0xc1   :  { %797 = vperm.xlu1 %4558, %v5035_v18   ;;  %1417 = vperm.xlu0 %4572, %v5118_v35   ;;  %v101_v18 = vld [vmem:[%s6811_s2 + $0x90] sm:$0xff]  ;;  %v5263_v35 = vrot.slane %v291_v23, %v278_v11  ;;  %v604_v23 = vadd.f32 %v5191_v52, %v316_v7 }
  0xc2   :  { %v5233_v4 = vpop.permute.xlu1 %741 }
  0xc3   :  { %v5235_v5 = vpop.permute.xlu0 %182  ;;  %v319_v48 = vmul.f32 %v5263_v35, %v5193_v53 }
  0xc4   :  { %6846 = vst [vmem:[#allocation15_spill] sm:$0xff] %v5235_v5 }
  0xc5   :  { %4559 = vset.pattern.permute.xlu1 %v6817_v0  ;;  %1425 = vperm.xlu0 %4572, %v96_v42   ;;  %v5275_v42 = vrot.slane %v867_v30, %v858_v14  ;;  %v607_v14 = vadd.f32 %v5191_v52, %v319_v48  ;;  %v324_v30 = vmul.f32 %v5269_v38, %v5198_v54 }
  0xc6   :  { %207 = vperm.xlu1 %4559, %v5135_v39   ;;  %v5271_v39 = vrot.slane %v287_v28, %v278_v11  ;;  %v315_v11 = vmul.f32 %v5263_v35, %v5186_v50  ;;  %v5345_v48 = vadd.f32 %v5184_v49, %v312_v15 }
  0xc7   :  { %v5247_v16 = vpop.permute.xlu1 %137  ;;  %v5249_v17 = vpop.permute.xlu0 %192  ;;  %v898_v13 = vmul.f32 %v5275_v42, %v5200_v55  ;;  %v5322_v28 = vadd.f32 %v899_v9, %v607_v14  ;;  %v5356_v9 = vmul.f32 %v5269_v38, %v5204_v56  ;;  %v321_v14 = vmul.f32 %v5261_v34, %v5206_v57 }
  0xc8   :  { %6847 = vst [vmem:[#allocation16_spill] sm:$0xff] %v5249_v17  ;;  %6849 = vst [vmem:[#allocation18_spill] sm:$0xff] %v5271_v39  ;;  %v5489_v45 = vmul.f32 %v5271_v39, %v5225_v2 }
  0xc9   :  { %1433 = vperm.xlu0 %4572, %v98_v51   ;;  %v5416_v3 = vadd.f32 %v5214_v60, %v321_v14 }
  0xca   :  { %532 = vperm.xlu1 %4559, %v101_v18   ;;  %v314_v18 = vmul.f32 %v5271_v39, %v5186_v50  ;;  %v5329_v50 = vadd.f32 %v5184_v49, %v315_v11  ;;  %6862 = vst [vmem:[#allocation31_spill] sm:$0xff] %v5489_v45  ;;  %v331_v45 = vmul.f32 %v5263_v35, %v5247_v16 }
  0xcb   :  { %v5254_v31 = vpop.permute.xlu1 %462  ;;  %v5256_v32 = vpop.permute.xlu0 %202 }
  0xcc   :  { %6848 = vst [vmem:[#allocation17_spill] sm:$0xff] %v5256_v32  ;;  %v5348_v7 = vadd.f32 %v5184_v49, %v314_v18  ;;  %v103_v18 = vld [vmem:[%s6811_s2 + $0xa0] sm:$0xff] }
  0xcd   :  { %1441 = vperm.xlu0 %4572, %v100_v61   ;;  %v318_v61 = vmul.f32 %v5271_v39, %v5193_v53  ;;  %v605_v53 = vadd.f32 %v5191_v52, %v317_v47  ;;  %v5342_v47 = vld [vmem:[%s6811_s2 + $0xb8] sm:$0xff] }
  0xce   :  { %537 = vperm.xlu1 %4559, %v102_v33  }
  0xcf   :  { %v5281_v51 = vpop.permute.xlu1 %467  ;;  %v5283_v58 = vpop.permute.xlu0 %212  ;;  %v606_v55 = vadd.f32 %v5191_v52, %v318_v61  ;;  %v5320_v27 = vadd.f32 %v897_v8, %v605_v53  ;;  %v5331_v52 = vadd.f32 %v896_v12, %v604_v23  ;;  %v326_v61 = vmul.f32 %v5271_v39, %v5198_v54 }
  0xd0   :  { %6850 = vst [vmem:[#allocation19_spill] sm:$0xff] %v5283_v58  ;;  %v327_v8 = vmul.f32 %v5263_v35, %v5198_v54  ;;  %v335_v12 = vmul.f32 %v5263_v35, %v5204_v56  ;;  %v320_v53 = vmul.f32 %v5269_v38, %v5206_v57  ;;  %v322_v23 = vmul.f32 %v5271_v39, %v5206_v57 }
  0xd1   :  { %1449 = vperm.xlu0 %4572, %v102_v33   ;;  %v5333_v29 = vadd.f32 %v898_v13, %v606_v55  ;;  %v325_v33 = vmul.f32 %v5261_v34, %v5198_v54  ;;  %v323_v55 = vmul.f32 %v5263_v35, %v5206_v57  ;;  %v5395_v13 = vld [vmem:[%s6811_s2 + $0xc8] sm:$0xff]  ;;  %v5405_v54 = vmul.f32 %v5271_v39, %v5212_v59 }
  0xd2   :  { %4560 = vset.pattern.permute.xlu1 %v6819_v6  ;;  %6853 = vst [vmem:[#allocation22_spill] sm:$0xff] %v5395_v13  ;;  %v5409_v57 = vmul.f32 %v5263_v35, %v5212_v59  ;;  %v907_v6 = vmul.f32 %v5267_v37, %v5233_v4  ;;  %v5423_v58 = vadd.f32 %v5214_v60, %v320_v53 }
  0xd3   :  { %805 = vperm.xlu1 %4560, %v5046_v20   ;;  %v5309_v19 = vpop.permute.xlu0 %222  ;;  %v5326_v20 = vadd.f32 %v5184_v49, %v313_v10  ;;  %v333_v10 = vmul.f32 %v5261_v34, %v5204_v56  ;;  %v5365_v49 = vmul.f32 %v5271_v39, %v5204_v56  ;;  %v5401_v56 = vmul.f32 %v5261_v34, %v5212_v59 }
  0xd4   :  { %6851 = vst [vmem:[#allocation20_spill] sm:$0xff] %v5309_v19  ;;  %v5313_v25 = vpop.permute.xlu1 %749  ;;  %v5420_v19 = vadd.f32 %v5214_v60, %v323_v55  ;;  %v615_v59 = vadd.f32 %v5222_v1, %v327_v8  ;;  %v5432_v14 = vadd.f32 %v5214_v60, %v322_v23  ;;  %v5438_v55 = vmul.f32 %v5269_v38, %v5220_v62  ;;  %v5450_v60 = vld [vmem:[%s6811_s2 + $0xd8] sm:$0xff] }
  0xd5   :  { %1457 = vperm.xlu0 %4572, %v5318_v26   ;;  %v5442_v53 = vmul.f32 %v5261_v34, %v5220_v62  ;;  %v612_v8 = vadd.f32 %v5222_v1, %v324_v30  ;;  %6856 = vst [vmem:[#allocation25_spill] sm:$0xff] %v5450_v60  ;;  %v614_v17 = vadd.f32 %v5222_v1, %v326_v61 }
  0xd6   :  { %6855 = vst [vmem:[#allocation24_spill] sm:$0xff] %v5438_v55  ;;  %v913_v46 = vmul.f32 %v5265_v36, %v5313_v25  ;;  %v5463_v30 = vmul.f32 %v5271_v39, %v5220_v62  ;;  %v623_v5 = vadd.f32 %v5281_v51, %v335_v12 }
  0xd7   :  { %4561 = vset.pattern.permute.xlu1 %v6817_v0  ;;  %v5361_v11 = vpop.permute.xlu0 %232 }
  0xd8   :  { %6852 = vst [vmem:[#allocation21_spill] sm:$0xff] %v5361_v11  ;;  %217 = vperm.xlu1 %4561, %v5145_v41   ;;  %v905_v41 = vmul.f32 %v5265_v36, %v5233_v4  ;;  %v613_v11 = vadd.f32 %v5222_v1, %v325_v33  ;;  %v906_v33 = vmul.f32 %v5275_v42, %v5233_v4  ;;  %6858 = vst [vmem:[#allocation27_spill] sm:$0xff] %v5463_v30  ;;  %v5579_v30 = vld [vmem:[%s6811_s2 + $0xb0] sm:$0xff] }
  0xd9   :  { %v5376_v15 = vpop.permute.xlu1 %147  ;;  %1465 = vperm.xlu0 %4572, %v5342_v47   ;;  %v5475_v1 = vmul.f32 %v5261_v34, %v5225_v2  ;;  %6870 = vst [vmem:[#allocation37_spill] sm:$0xff] %v5579_v30 }
  0xdb   :  { %v5411_v0 = vpop.permute.xlu0 %242  ;;  %6861 = vst [vmem:[#allocation30_spill] sm:$0xff] %v5475_v1 }
  0xdc   :  { %6854 = vst [vmem:[#allocation23_spill] sm:$0xff] %v5411_v0  ;;  %542 = vperm.xlu1 %4561, %v103_v18   ;;  %v904_v18 = vmul.f32 %v5273_v40, %v5233_v4  ;;  %v5444_v0 = vadd.f32 %v905_v41, %v613_v11  ;;  %v5454_v4 = vadd.f32 %v907_v6, %v615_v59 }
  0xdd   :  { %v5425_v32 = vpop.permute.xlu1 %472  ;;  %1473 = vperm.xlu0 %4572, %v5395_v13   ;;  %v915_v11 = vmul.f32 %v5267_v37, %v5313_v25  ;;  %v5467_v41 = vmul.f32 %v5263_v35, %v5220_v62  ;;  %v5471_v6 = vmul.f32 %v5269_v38, %v5225_v2  ;;  %v621_v62 = vadd.f32 %v5281_v51, %v333_v10 }
  0xde   :  { %v5480_v59 = vadd.f32 %v904_v18, %v612_v8  ;;  %v5501_v18 = vld [vmem:[%s6811_s2 + $0xe8] sm:$0xff] }
  0xdf   :  { %v5452_v23 = vpop.permute.xlu0 %252  ;;  %6859 = vst [vmem:[#allocation28_spill] sm:$0xff] %v5467_v41  ;;  %6860 = vst [vmem:[#allocation29_spill] sm:$0xff] %v5471_v6  ;;  %v5493_v6 = vmul.f32 %v5263_v35, %v5225_v2  ;;  %v5508_v8 = vadd.f32 %v915_v11, %v623_v5  ;;  %v914_v2 = vmul.f32 %v5275_v42, %v5313_v25 }
  0xe0   :  { %6857 = vst [vmem:[#allocation26_spill] sm:$0xff] %v5452_v23  ;;  %547 = vperm.xlu1 %4561, %v5318_v26   ;;  %v5482_v23 = vadd.f32 %v906_v33, %v614_v17  ;;  %v912_v17 = vmul.f32 %v5273_v40, %v5313_v25  ;;  %6864 = vst [vmem:[#allocation33_spill] sm:$0xff] %v5501_v18  ;;  %v5506_v33 = vadd.f32 %v913_v46, %v621_v62 }
  0xe1   :  { %v5478_v61 = vpop.permute.xlu1 %477  ;;  %1481 = vperm.xlu0 %4572, %v5450_v60   ;;  %6863 = vst [vmem:[#allocation32_spill] sm:$0xff] %v5493_v6  ;;  %v328_v26 = vmul.f32 %v5269_v38, %v5247_v16  ;;  %v329_v60 = vmul.f32 %v5261_v34, %v5247_v16  ;;  %v6866_v6 = vmov 1   ;;  %v620_v46 = vadd.f32 %v5281_v51, %v5356_v9 }
  0xe2   :  { %v330_v5 = vmul.f32 %v5271_v39, %v5247_v16  ;;  %v622_v62 = vadd.f32 %v5281_v51, %v5365_v49  ;;  %v5533_v9 = vadd.f32 %v5254_v31, %v331_v45  ;;  %v5552_v45 = vld [vmem:[%s6811_s2 + $0xf8] sm:$0xff]  ;;  %v629_v51 = vadd.f32 %v5478_v61, %v5401_v56 }
  0xe3   :  { %v5503_v10 = vpop.permute.xlu0 %262  ;;  %v5536_v16 = vadd.f32 %v5254_v31, %v328_v26  ;;  %6868 = vst [vmem:[#allocation36_spill] sm:$0xff] %v5552_v45  ;;  %v628_v24 = vadd.f32 %v5478_v61, %v5390_v63 }
  0xe4   :  { %6865 = vst [vmem:[#allocation34_spill] sm:$0xff] %v5503_v10  ;;  %4562 = vset.pattern.permute.xlu1 %v6866_v6  ;;  %v5530_v10 = vadd.f32 %v5254_v31, %v329_v60  ;;  %v5545_v49 = vadd.f32 %v5254_v31, %v330_v5  ;;  %v336_v60 = vmul.f32 %v5269_v38, %v5376_v15 }
  0xe5   :  { %813 = vperm.xlu1 %4562, %v5051_v21   ;;  %1489 = vperm.xlu0 %4572, %v5501_v18   ;;  %v5538_v21 = vadd.f32 %v912_v17, %v620_v46  ;;  %v5547_v18 = vadd.f32 %v914_v2, %v622_v62  ;;  %v337_v31 = vmul.f32 %v5261_v34, %v5376_v15  ;;  %v6869_v62 = vmov 0  }
  0xe6   :  { %v758_v12 = vpop.permute.xlu1 %757  ;;  %v338_v2 = vmul.f32 %v5271_v39, %v5376_v15  ;;  %v339_v5 = vmul.f32 %v5263_v35, %v5376_v15 }
  0xe7   :  { %v5540_v25 = vpop.permute.xlu0 %272  ;;  %v921_v26 = vmul.f32 %v5265_v36, %v758_v12  ;;  %v923_v17 = vmul.f32 %v5267_v37, %v758_v12  ;;  %v920_v46 = vmul.f32 %v5273_v40, %v758_v12  ;;  %v922_v1 = vmul.f32 %v5275_v42, %v758_v12 }
  0xe8   :  { %6867 = vst [vmem:[#allocation35_spill] sm:$0xff] %v5540_v25  ;;  %v631_v25 = vadd.f32 %v5478_v61, %v5409_v57  ;;  %v5585_v56 = vadd.f32 %v5425_v32, %v339_v5  ;;  %v5588_v57 = vadd.f32 %v5425_v32, %v336_v60  ;;  %v5591_v63 = vadd.f32 %v5425_v32, %v338_v2 }
  0xe9   :  { %4563 = vset.pattern.permute.xlu1 %v6869_v62  ;;  %1497 = vperm.xlu0 %4572, %v5552_v45   ;;  %v5593_v11 = vadd.f32 %v921_v26, %v629_v51  ;;  %v5597_v13 = vadd.f32 %v920_v46, %v628_v24 }
  0xea   :  { %227 = vperm.xlu1 %4563, %v5154_v43   ;;  %v5582_v43 = vadd.f32 %v5425_v32, %v337_v31  ;;  %6871 = vst [vmem:[#allocation38_spill] sm:$0xff] %v5591_v63  ;;  %v5595_v45 = vadd.f32 %v923_v17, %v631_v25  ;;  %v630_v31 = vadd.f32 %v5478_v61, %v5405_v54 }
  0xeb   :  { %v158_v15 = vpop.permute.xlu1 %157 }
  0xec   :  { %v730_v12 = vpop.permute.xlu0 %729  ;;  %v344_v32 = vmul.f32 %v5269_v38, %v158_v15  ;;  %v345_v51 = vmul.f32 %v5261_v34, %v158_v15  ;;  %v347_v25 = vmul.f32 %v5263_v35, %v158_v15  ;;  %v5609_v24 = vadd.f32 %v922_v1, %v630_v31 }
  0xed   :  { %v893_v55 = vmul.f32 %v5265_v36, %v730_v12  ;;  %v895_v5 = vmul.f32 %v5267_v37, %v730_v12  ;;  %v892_v60 = vmul.f32 %v5273_v40, %v730_v12  ;;  %v894_v41 = vmul.f32 %v5275_v42, %v730_v12 }
  0xee   :  { %552 = vperm.xlu1 %4563, %v5579_v30   ;;  %v5618_v2 = vmul.f32 %v5271_v39, %v158_v15 }
  0xef   :  { %v5611_v26 = vpop.permute.xlu1 %482  ;;  %v1021_v54 = vadd.f32 %v893_v55, %v5326_v20  ;;  %v1023_v61 = vadd.f32 %v895_v5, %v5329_v50  ;;  %v1020_v17 = vadd.f32 %v892_v60, %v5345_v48  ;;  %v1022_v46 = vadd.f32 %v894_v41, %v5348_v7 }
  0xf0   :  { %v738_v12 = vpop.permute.xlu0 %737  ;;  %v5621_v63 = vadd.f32 %v5611_v26, %v345_v51  ;;  %v5624_v1 = vadd.f32 %v5611_v26, %v347_v25  ;;  %v5627_v31 = vadd.f32 %v5611_v26, %v344_v32  ;;  %v6874_v51 = vmax.f32 %v5320_v27, 0.0 }
  0xf1   :  { %v1149_v20 = vmax.f32 %v1021_v54, 0.0  ;;  %v1151_v55 = vmax.f32 %v1023_v61, 0.0  ;;  %v1148_v50 = vmax.f32 %v1020_v17, 0.0  ;;  %v1150_v5 = vmax.f32 %v1022_v46, 0.0 }
  0xf2   :  { %6872 = vst [vmem:[#allocation39_spill] sm:$0xff] %v5624_v1  ;;  %6873 = vst [vmem:[#allocation40_spill] sm:$0xff] %v5627_v31  ;;  %557 = vperm.xlu1 %4563, %v5342_v47   ;;  %v901_v48 = vmul.f32 %v5265_v36, %v738_v12  ;;  %v903_v7 = vmul.f32 %v5267_v37, %v738_v12  ;;  %v900_v41 = vmul.f32 %v5273_v40, %v738_v12 }
  0xf3   :  { %v902_v15 = vmul.f32 %v5275_v42, %v738_v12  ;;  %v5634_v60 = vpop.permute.xlu1 %487  ;;  %v1309_v32 = vpack.c.bf16 %v6874_v51, %v1149_v20  ;;  %v6875_v25 = vmax.f32 %v5322_v28, 0.0  ;;  %v6876_v61 = vmax.f32 %v5331_v52, 0.0 }
  0xf4   :  { %v6877_v47 = vmax.f32 %v5333_v29, 0.0  ;;  %v746_v30 = vpop.permute.xlu0 %745  ;;  %v1029_v39 = vadd.f32 %v901_v48, %v5416_v3  ;;  %v1031_v31 = vadd.f32 %v903_v7, %v5420_v19  ;;  %v1028_v12 = vadd.f32 %v900_v41, %v5423_v58 }
  0xf5   :  { %v1311_v54 = vpack.c.bf16 %v6875_v25, %v1151_v55  ;;  %v1308_v17 = vpack.c.bf16 %v6876_v61, %v1148_v50  ;;  %v1030_v1 = vadd.f32 %v902_v15, %v5432_v14  ;;  %1660 = vmatprep.subr.bf16.mxu0 %v1309_v32  ;;  %v909_v27 = vmul.f32 %v5265_v36, %v746_v30 }
  0xf6   :  { %v1310_v46 = vpack.c.bf16 %v6877_v47, %v1150_v5  ;;  %v911_v28 = vmul.f32 %v5267_v37, %v746_v30  ;;  %v908_v52 = vmul.f32 %v5273_v40, %v746_v30  ;;  %v1170_v29 = vmax.f32 %v5547_v18, 0.0  ;;  %4564 = vset.pattern.permute.xlu1 %v6866_v6 }
  0xf7   :  { %1853 = vmatprep.subr.bf16.mxu1 %v1311_v54  ;;  %1661 = vmatpush1.bf16.msra.mxu0 %v1308_v17  ;;  %v1157_v3 = vmax.f32 %v1029_v39, 0.0  ;;  %v1159_v20 = vmax.f32 %v1031_v31, 0.0  ;;  %v1156_v19 = vmax.f32 %v1028_v12, 0.0  ;;  %v1158_v55 = vmax.f32 %v1030_v1, 0.0 }
  0xf8   :  { %1854 = vmatpush1.bf16.msra.mxu1 %v1310_v46  ;;  %821 = vperm.xlu1 %4564, %v5058_v22   ;;  %v1037_v58 = vadd.f32 %v909_v27, %v5530_v10  ;;  %v1039_v14 = vadd.f32 %v911_v28, %v5533_v9  ;;  %v1036_v50 = vadd.f32 %v908_v52, %v5536_v16  ;;  %v1177_v5 = vmax.f32 %v5593_v11, 0.0  ;;  %v5658_v48 = vpop.permute.xlu1 %765  ;;  %v754_v7 = vpop.permute.xlu0 %753 }
  0xf9   :  { %v6878_v41 = vmax.f32 %v5444_v0, 0.0  ;;  %v6879_v31 = vmax.f32 %v5454_v4, 0.0  ;;  %v6880_v15 = vmax.f32 %v5480_v59, 0.0  ;;  %v6881_v10 = vmax.f32 %v5482_v23, 0.0 }
  0xfa   :  { %v1165_v9 = vmax.f32 %v1037_v58, 0.0  ;;  %v1167_v32 = vmax.f32 %v1039_v14, 0.0  ;;  %v1164_v16 = vmax.f32 %v1036_v50, 0.0  ;;  %v910_v11 = vmul.f32 %v5275_v42, %v746_v30  ;;  %v6886_v50 = vld [vmem:[#allocation28_spill] sm:$0xff] }
  0xfb   :  { %v1313_v39 = vpack.c.bf16 %v6878_v41, %v1157_v3  ;;  %v1315_v1 = vpack.c.bf16 %v6879_v31, %v1159_v20  ;;  %v1312_v22 = vpack.c.bf16 %v6880_v15, %v1156_v19  ;;  %v1314_v51 = vpack.c.bf16 %v6881_v10, %v1158_v55  ;;  %v6885_v19 = vld [vmem:[#allocation38_spill] sm:$0xff] }
  0xfc   :  { %v917_v25 = vmul.f32 %v5265_v36, %v754_v7  ;;  %v919_v0 = vmul.f32 %v5267_v37, %v754_v7  ;;  %v1179_v4 = vmax.f32 %v5595_v45, 0.0  ;;  %v916_v54 = vmul.f32 %v5273_v40, %v754_v7  ;;  %4565 = vset.pattern.permute.xlu1 %v6869_v62  ;;  %v762_v12 = vpop.permute.xlu0 %761 }
  0xfd   :  { %1662 = vmatprep.subr.bf16.mxu0 %v1313_v39  ;;  %1855 = vmatprep.subr.bf16.mxu1 %v1315_v1  ;;  %v6882_v23 = vmax.f32 %v5506_v33, 0.0  ;;  %v6883_v61 = vmax.f32 %v5508_v8, 0.0  ;;  %v6884_v30 = vmax.f32 %v5538_v21, 0.0  ;;  %v1176_v46 = vmax.f32 %v5597_v13, 0.0  ;;  %v168_v8 = vpop.permute.xlu1 %167 }
  0xfe   :  { %1663 = vmatpush1.bf16.msra.mxu0 %v1312_v22  ;;  %1856 = vmatpush1.bf16.msra.mxu1 %v1314_v51  ;;  %v1038_v45 = vadd.f32 %v910_v11, %v5545_v49  ;;  %v1045_v27 = vadd.f32 %v917_v25, %v5582_v43  ;;  %v1047_v28 = vadd.f32 %v919_v0, %v5585_v56  ;;  %v1178_v52 = vmax.f32 %v5609_v24, 0.0 }
  0xff   :  { %v1317_v59 = vpack.c.bf16 %v6882_v23, %v1165_v9  ;;  %v1319_v17 = vpack.c.bf16 %v6883_v61, %v1167_v32  ;;  %v1316_v47 = vpack.c.bf16 %v6884_v30, %v1164_v16  ;;  %v1044_v33 = vadd.f32 %v916_v54, %v5588_v57  ;;  %237 = vperm.xlu1 %4565, %v5160_v44   ;;  %v5699_v44 = vld [vmem:[%s6811_s2 + $0xc0] sm:$0xff]  ;;  %v6887_v9 = vld [vmem:[#allocation24_spill] sm:$0xff]  ;;  %v6888_v16 = vld [vmem:[#allocation39_spill] sm:$0xff] }
 0x100   :  { %v918_v21 = vmul.f32 %v5275_v42, %v754_v7  ;;  %v925_v13 = vmul.f32 %v5265_v36, %v762_v12  ;;  %v634_v3 = vadd.f32 %v5611_v26, %v5618_v2  ;;  %v5692_v49 = vmul.f32 %v5269_v38, %v168_v8  ;;  %v770_v0 = vpop.permute.xlu0 %769 }
 0x101   :  { %1664 = vmatprep.subr.bf16.mxu0 %v1317_v59  ;;  %v353_v43 = vmul.f32 %v5261_v34, %v168_v8  ;;  %v355_v56 = vmul.f32 %v5263_v35, %v168_v8  ;;  %1857 = vmatprep.subr.bf16.mxu1 %v1319_v17  ;;  %v637_v57 = vadd.f32 %v5634_v60, %v5442_v53  ;;  %v1166_v24 = vmax.f32 %v1038_v45, 0.0  ;;  %v5712_v53 = vpop.permute.xlu1 %492  ;;  %v6890_v59 = vld [vmem:[#allocation40_spill] sm:$0xff]  ;;  %v6891_v17 = vld [vmem:[#allocation27_spill] sm:$0xff] }
 0x102   :  { %1665 = vmatpush1.bf16.msra.mxu0 %v1316_v47  ;;  %v1173_v20 = vmax.f32 %v1045_v27, 0.0  ;;  %v1175_v26 = vmax.f32 %v1047_v28, 0.0  ;;  %v1172_v2 = vmax.f32 %v1044_v33, 0.0  ;;  %v1046_v55 = vadd.f32 %v918_v21, %v6885_v19  ;;  %v6893_v19 = vld [vmem:[#allocation30_spill] sm:$0xff] }
 0x103   :  { %v929_v58 = vmul.f32 %v5265_v36, %v5658_v48  ;;  %v1053_v14 = vadd.f32 %v925_v13, %v5621_v63  ;;  %v639_v7 = vadd.f32 %v5634_v60, %v6886_v50  ;;  %v1318_v41 = vpack.c.bf16 %v1170_v29, %v1166_v24  ;;  %562 = vperm.xlu1 %4565, %v5699_v44  }
 0x104   :  { %v1321_v39 = vpack.c.bf16 %v1177_v5, %v1173_v20  ;;  %v1323_v31 = vpack.c.bf16 %v1179_v4, %v1175_v26  ;;  %v1320_v1 = vpack.c.bf16 %v1176_v46, %v1172_v2  ;;  %v1174_v15 = vmax.f32 %v1046_v55, 0.0  ;;  %v6889_v4 = vld [vmem:[#allocation22_spill] sm:$0xff] }
 0x105   :  { %v1057_v22 = vadd.f32 %v929_v58, %v637_v57  ;;  %v1181_v10 = vmax.f32 %v1053_v14, 0.0  ;;  %v927_v51 = vmul.f32 %v5267_v37, %v762_v12  ;;  %1858 = vmatpush1.bf16.msra.mxu1 %v1318_v41  ;;  %v931_v63 = vmul.f32 %v5267_v37, %v5658_v48  ;;  %v498_v54 = vpop.permute.xlu1 %497  ;;  %v6892_v57 = vld [vmem:[#allocation18_spill] sm:$0xff]  ;;  %v6895_v41 = vld [vmem:[#allocation32_spill] sm:$0xff] }
 0x106   :  { %1666 = vmatprep.subr.bf16.mxu0 %v1321_v39  ;;  %v636_v18 = vadd.f32 %v5634_v60, %v6887_v9  ;;  %v924_v29 = vmul.f32 %v5273_v40, %v762_v12  ;;  %1859 = vmatprep.subr.bf16.mxu1 %v1323_v31  ;;  %v1322_v5 = vpack.c.bf16 %v1178_v52, %v1174_v15 }
 0x107   :  { %1667 = vmatpush1.bf16.msra.mxu0 %v1320_v1  ;;  %v1185_v32 = vmax.f32 %v1057_v22, 0.0  ;;  %v1055_v11 = vadd.f32 %v927_v51, %v6888_v16  ;;  %v928_v25 = vmul.f32 %v5273_v40, %v5658_v48  ;;  %567 = vperm.xlu1 %4565, %v6889_v4   ;;  %v1059_v23 = vadd.f32 %v931_v63, %v639_v7  ;;  %v6896_v22 = vld [vmem:[#allocation29_spill] sm:$0xff] }
 0x108   :  { %v1052_v61 = vadd.f32 %v924_v29, %v6890_v59  ;;  %v638_v30 = vadd.f32 %v5634_v60, %v6891_v17  ;;  %v926_v47 = vmul.f32 %v5275_v42, %v762_v12  ;;  %v930_v28 = vmul.f32 %v5275_v42, %v5658_v48  ;;  %v5754_v17 = vld [vmem:[%s6811_s2 + $0xd0] sm:$0xff] }
 0x109   :  { %v1325_v46 = vpack.c.bf16 %v1185_v32, %v1181_v10  ;;  %v1183_v45 = vmax.f32 %v1055_v11, 0.0  ;;  %v1056_v27 = vadd.f32 %v928_v25, %v636_v18  ;;  %1860 = vmatpush1.bf16.msra.mxu1 %v1322_v5  ;;  %v1187_v33 = vmax.f32 %v1059_v23, 0.0  ;;  %v6897_v11 = vld [vmem:[#allocation12_spill] sm:$0xff] }
 0x10a   :  { %v1180_v21 = vmax.f32 %v1052_v61, 0.0  ;;  %v1054_v52 = vadd.f32 %v926_v47, %v634_v3  ;;  %v641_v13 = vadd.f32 %v5712_v53, %v353_v43  ;;  %v354_v24 = vmul.f32 %v6892_v57, %v168_v8  ;;  %v6894_v3 = vld [vmem:[#allocation11_spill] sm:$0xff]  ;;  %v774_v43 = vpop.permute.xlu1 %773 }
 0x10b   :  { %1668 = vmatprep.subr.bf16.mxu0 %v1325_v46  ;;  %v1184_v20 = vmax.f32 %v1056_v27, 0.0  ;;  %v1058_v26 = vadd.f32 %v930_v28, %v638_v30  ;;  %v933_v60 = vmul.f32 %v5265_v36, %v770_v0  ;;  %v1327_v12 = vpack.c.bf16 %v1187_v33, %v1183_v45  ;;  %4566 = vset.pattern.permute.xlu1 %v6866_v6  ;;  %v6898_v30 = vld [vmem:[#allocation31_spill] sm:$0xff] }
 0x10c   :  { %v1182_v2 = vmax.f32 %v1054_v52, 0.0  ;;  %v645_v55 = vadd.f32 %v498_v54, %v6893_v19  ;;  %v643_v48 = vadd.f32 %v5712_v53, %v355_v56  ;;  %829 = vperm.xlu1 %4566, %v6894_v3   ;;  %v935_v8 = vmul.f32 %v5267_v37, %v770_v0 }
 0x10d   :  { %v1324_v58 = vpack.c.bf16 %v1184_v20, %v1180_v21  ;;  %v1186_v14 = vmax.f32 %v1058_v26, 0.0  ;;  %v1061_v50 = vadd.f32 %v933_v60, %v641_v13  ;;  %1861 = vmatprep.subr.bf16.mxu1 %v1327_v12  ;;  %v937_v7 = vmul.f32 %v5265_v36, %v774_v43 }
 0x10e   :  { %v647_v39 = vadd.f32 %v498_v54, %v6895_v41  ;;  %v939_v31 = vmul.f32 %v5267_v37, %v774_v43  ;;  %v640_v1 = vadd.f32 %v5712_v53, %v5692_v49  ;;  %v1063_v15 = vadd.f32 %v935_v8, %v643_v48 }
 0x10f   :  { %1669 = vmatpush1.bf16.msra.mxu0 %v1324_v58  ;;  %v1326_v56 = vpack.c.bf16 %v1186_v14, %v1182_v2  ;;  %v644_v10 = vadd.f32 %v498_v54, %v6896_v22  ;;  %v932_v51 = vmul.f32 %v5273_v40, %v770_v0  ;;  %v1065_v63 = vadd.f32 %v937_v7, %v645_v55  ;;  %v178_v25 = vpop.permute.xlu1 %177  ;;  %v6899_v58 = vld [vmem:[#allocation25_spill] sm:$0xff]  ;;  %v6900_v7 = vld [vmem:[#allocation15_spill] sm:$0xff] }
 0x110   :  { %v1189_v9 = vmax.f32 %v1061_v50, 0.0  ;;  %v1067_v18 = vadd.f32 %v939_v31, %v647_v39  ;;  %v936_v29 = vmul.f32 %v5273_v40, %v774_v43  ;;  %4567 = vset.pattern.permute.xlu1 %v6869_v62  ;;  %v1191_v5 = vmax.f32 %v1063_v15, 0.0 }
 0x111   :  { %1862 = vmatpush1.bf16.msra.mxu1 %v1326_v56  ;;  %v1060_v32 = vadd.f32 %v932_v51, %v640_v1  ;;  %v642_v16 = vadd.f32 %v5712_v53, %v354_v24  ;;  %v934_v49 = vmul.f32 %v5275_v42, %v770_v0  ;;  %247 = vperm.xlu1 %4567, %v6897_v11   ;;  %v1193_v4 = vmax.f32 %v1065_v63, 0.0  ;;  %v778_v0 = vpop.permute.xlu0 %777  ;;  %v4730_v51 = vld [vmem:[%s6810_s1 + $0xd8] sm:$0xff] }
 0x112   :  { %v1195_v23 = vmax.f32 %v1067_v18, 0.0  ;;  %v1064_v59 = vadd.f32 %v936_v29, %v644_v10  ;;  %v938_v61 = vmul.f32 %v5275_v42, %v774_v43  ;;  %v646_v47 = vadd.f32 %v498_v54, %v6898_v30 }
 0x113   :  { %v1329_v46 = vpack.c.bf16 %v1193_v4, %v1189_v9  ;;  %v1188_v53 = vmax.f32 %v1060_v32, 0.0  ;;  %v1062_v28 = vadd.f32 %v934_v49, %v642_v16  ;;  %v503_v21 = vpop.permute.xlu1 %502  ;;  %v360_v13 = vmul.f32 %v5269_v38, %v178_v25 }
 0x114   :  { %v1331_v45 = vpack.c.bf16 %v1195_v23, %v1191_v5  ;;  %v1192_v27 = vmax.f32 %v1064_v59, 0.0  ;;  %v1066_v33 = vadd.f32 %v938_v61, %v646_v47  ;;  %v361_v26 = vmul.f32 %v5261_v34, %v178_v25 }
 0x115   :  { %572 = vperm.xlu1 %4567, %v5754_v17   ;;  %1670 = vmatprep.subr.bf16.mxu0 %v1329_v46  ;;  %v1190_v24 = vmax.f32 %v1062_v28, 0.0  ;;  %v362_v54 = vmul.f32 %v6892_v57, %v178_v25  ;;  %v363_v60 = vmul.f32 %v5263_v35, %v178_v25  ;;  %v941_v12 = vmul.f32 %v5265_v36, %v778_v0 }
 0x116   :  { %v1328_v52 = vpack.c.bf16 %v1192_v27, %v1188_v53  ;;  %1863 = vmatprep.subr.bf16.mxu1 %v1331_v45  ;;  %v1194_v20 = vmax.f32 %v1066_v33, 0.0  ;;  %v943_v19 = vmul.f32 %v5267_v37, %v778_v0  ;;  %v940_v55 = vmul.f32 %v5273_v40, %v778_v0  ;;  %v6901_v45 = vld [vmem:[#allocation13_spill] sm:$0xff] }
 0x117   :  { %v942_v48 = vmul.f32 %v5275_v42, %v778_v0  ;;  %v508_v14 = vpop.permute.xlu1 %507  ;;  %v649_v3 = vadd.f32 %v503_v21, %v361_v26  ;;  %v651_v43 = vadd.f32 %v503_v21, %v363_v60  ;;  %v648_v50 = vadd.f32 %v503_v21, %v360_v13 }
 0x118   :  { %1671 = vmatpush1.bf16.msra.mxu0 %v1328_v52  ;;  %v1330_v2 = vpack.c.bf16 %v1194_v20, %v1190_v24  ;;  %v650_v8 = vadd.f32 %v503_v21, %v362_v54  ;;  %v364_v41 = vmul.f32 %v5269_v38, %v6900_v7  ;;  %v365_v39 = vmul.f32 %v5261_v34, %v6900_v7  ;;  %v5788_v21 = vld [vmem:[%s6811_s2 + $0xe0] sm:$0xff] }
 0x119   :  { %577 = vperm.xlu1 %4567, %v6899_v58   ;;  %v366_v31 = vmul.f32 %v6892_v57, %v6900_v7  ;;  %v367_v1 = vmul.f32 %v5263_v35, %v6900_v7  ;;  %v1069_v56 = vadd.f32 %v941_v12, %v649_v3  ;;  %v1071_v15 = vadd.f32 %v943_v19, %v651_v43  ;;  %v786_v19 = vpop.permute.xlu0 %785  ;;  %v6902_v3 = vld [vmem:[#allocation33_spill] sm:$0xff] }
 0x11a   :  { %1864 = vmatpush1.bf16.msra.mxu1 %v1330_v2  ;;  %v1068_v22 = vadd.f32 %v940_v55, %v648_v50  ;;  %v1070_v10 = vadd.f32 %v942_v48, %v650_v8  ;;  %v653_v9 = vadd.f32 %v508_v14, %v365_v39  ;;  %v652_v29 = vadd.f32 %v508_v14, %v364_v41  ;;  %v6903_v39 = vld [vmem:[#allocation16_spill] sm:$0xff] }
 0x11b   :  { %v655_v18 = vadd.f32 %v508_v14, %v367_v1  ;;  %v654_v5 = vadd.f32 %v508_v14, %v366_v31  ;;  %v1197_v61 = vmax.f32 %v1069_v56, 0.0  ;;  %v1199_v30 = vmax.f32 %v1071_v15, 0.0 }
 0x11c   :  { %v782_v63 = vpop.permute.xlu1 %781  ;;  %v1196_v47 = vmax.f32 %v1068_v22, 0.0  ;;  %v1198_v46 = vmax.f32 %v1070_v10, 0.0  ;;  %v949_v55 = vmul.f32 %v5265_v36, %v786_v19  ;;  %v951_v48 = vmul.f32 %v5267_v37, %v786_v19 }
 0x11d   :  { %4568 = vset.pattern.permute.xlu1 %v6866_v6  ;;  %v945_v32 = vmul.f32 %v5265_v36, %v782_v63  ;;  %v947_v16 = vmul.f32 %v5267_v37, %v782_v63  ;;  %v944_v49 = vmul.f32 %v5273_v40, %v782_v63  ;;  %v946_v11 = vmul.f32 %v5275_v42, %v782_v63 }
 0x11e   :  { %837 = vperm.xlu1 %4568, %v4730_v51   ;;  %v948_v58 = vmul.f32 %v5273_v40, %v786_v19  ;;  %v950_v14 = vmul.f32 %v5275_v42, %v786_v19  ;;  %v372_v31 = vmul.f32 %v5269_v38, %v6903_v39  ;;  %v373_v1 = vmul.f32 %v5261_v34, %v6903_v39 }
 0x11f   :  { %v1073_v25 = vadd.f32 %v945_v32, %v653_v9  ;;  %v1075_v4 = vadd.f32 %v947_v16, %v655_v18  ;;  %v1072_v23 = vadd.f32 %v944_v49, %v652_v29  ;;  %v1074_v59 = vadd.f32 %v946_v11, %v654_v5  ;;  %v4731_v9 = vld [vmem:[%s6810_s1 + $0xe8] sm:$0xff] }
 0x120   :  { %v374_v56 = vmul.f32 %v6892_v57, %v6903_v39  ;;  %v375_v15 = vmul.f32 %v5263_v35, %v6903_v39 }
 0x121   :  { %v188_v53 = vpop.permute.xlu1 %187  ;;  %v1201_v27 = vmax.f32 %v1073_v25, 0.0  ;;  %v1203_v0 = vmax.f32 %v1075_v4, 0.0  ;;  %v1200_v28 = vmax.f32 %v1072_v23, 0.0  ;;  %v1202_v33 = vmax.f32 %v1074_v59, 0.0 }
 0x122   :  { %4569 = vset.pattern.permute.xlu1 %v6869_v62  ;;  %v368_v54 = vmul.f32 %v5269_v38, %v188_v53  ;;  %v369_v60 = vmul.f32 %v5261_v34, %v188_v53  ;;  %v370_v12 = vmul.f32 %v6892_v57, %v188_v53  ;;  %v371_v2 = vmul.f32 %v5263_v35, %v188_v53 }
 0x123   :  { %257 = vperm.xlu1 %4569, %v6901_v45   ;;  %v1333_v52 = vpack.c.bf16 %v1201_v27, %v1197_v61  ;;  %v1335_v13 = vpack.c.bf16 %v1203_v0, %v1199_v30  ;;  %v1332_v24 = vpack.c.bf16 %v1200_v28, %v1196_v47  ;;  %v1334_v20 = vpack.c.bf16 %v1202_v33, %v1198_v46  ;;  %v4732_v27 = vld [vmem:[%s6810_s1 + $0xf0] sm:$0xff] }
 0x125   :  { %v513_v26 = vpop.permute.xlu1 %512  ;;  %1672 = vmatprep.subr.bf16.mxu0 %v1333_v52  ;;  %1865 = vmatprep.subr.bf16.mxu1 %v1335_v13 }
 0x126   :  { %1673 = vmatpush1.bf16.msra.mxu0 %v1332_v24  ;;  %1866 = vmatpush1.bf16.msra.mxu1 %v1334_v20  ;;  %v657_v50 = vadd.f32 %v513_v26, %v369_v60  ;;  %v659_v8 = vadd.f32 %v513_v26, %v371_v2  ;;  %v656_v7 = vadd.f32 %v513_v26, %v368_v54  ;;  %v5823_v24 = vld [vmem:[%s6811_s2 + $0xf0] sm:$0xff] }
 0x127   :  { %582 = vperm.xlu1 %4569, %v5788_v21   ;;  %v658_v41 = vadd.f32 %v513_v26, %v370_v12  ;;  %v794_v12 = vpop.permute.xlu0 %793 }
 0x128   :  { %v1077_v22 = vadd.f32 %v949_v55, %v657_v50  ;;  %v1079_v10 = vadd.f32 %v951_v48, %v659_v8  ;;  %v1076_v51 = vadd.f32 %v948_v58, %v656_v7  ;;  %v957_v58 = vmul.f32 %v5265_v36, %v794_v12  ;;  %v6904_v50 = vld [vmem:[#allocation36_spill] sm:$0xff] }
 0x129   :  { %v518_v43 = vpop.permute.xlu1 %517  ;;  %v1078_v63 = vadd.f32 %v950_v14, %v658_v41  ;;  %v959_v14 = vmul.f32 %v5267_v37, %v794_v12 }
 0x12a   :  { %v661_v29 = vadd.f32 %v518_v43, %v373_v1  ;;  %v663_v5 = vadd.f32 %v518_v43, %v375_v15  ;;  %v660_v32 = vadd.f32 %v518_v43, %v372_v31  ;;  %v662_v16 = vadd.f32 %v518_v43, %v374_v56  ;;  %v6905_v1 = vld [vmem:[#allocation17_spill] sm:$0xff] }
 0x12b   :  { %587 = vperm.xlu1 %4569, %v6902_v3   ;;  %v1205_v47 = vmax.f32 %v1077_v22, 0.0  ;;  %v1207_v46 = vmax.f32 %v1079_v10, 0.0  ;;  %v1204_v45 = vmax.f32 %v1076_v51, 0.0  ;;  %v1206_v53 = vmax.f32 %v1078_v63, 0.0 }
 0x12c   :  { %v956_v3 = vmul.f32 %v5273_v40, %v794_v12  ;;  %v958_v43 = vmul.f32 %v5275_v42, %v794_v12  ;;  %v380_v56 = vmul.f32 %v5269_v38, %v6905_v1  ;;  %v381_v15 = vmul.f32 %v5261_v34, %v6905_v1  ;;  %v4735_v12 = vld [vmem:[%s6811_s2 + $0x10] sm:$0xff] }
 0x12d   :  { %v382_v22 = vmul.f32 %v6892_v57, %v6905_v1  ;;  %v383_v10 = vmul.f32 %v5263_v35, %v6905_v1 }
 0x12e   :  { %v790_v18 = vpop.permute.xlu1 %789 }
 0x12f   :  { %4570 = vset.pattern.permute.xlu1 %v6866_v6  ;;  %v953_v49 = vmul.f32 %v5265_v36, %v790_v18  ;;  %v955_v11 = vmul.f32 %v5267_v37, %v790_v18  ;;  %v952_v25 = vmul.f32 %v5273_v40, %v790_v18  ;;  %v954_v4 = vmul.f32 %v5275_v42, %v790_v18 }
 0x130   :  { %845 = vperm.xlu1 %4570, %v4731_v9  }
 0x131   :  { %v1081_v23 = vadd.f32 %v953_v49, %v661_v29  ;;  %v1083_v59 = vadd.f32 %v955_v11, %v663_v5  ;;  %v1080_v61 = vadd.f32 %v952_v25, %v660_v32  ;;  %v1082_v30 = vadd.f32 %v954_v4, %v662_v16  ;;  %v4733_v29 = vld [vmem:[%s6810_s1 + $0xf8] sm:$0xff] }
 0x133   :  { %v198_v0 = vpop.permute.xlu1 %197  ;;  %v1209_v28 = vmax.f32 %v1081_v23, 0.0  ;;  %v1211_v33 = vmax.f32 %v1083_v59, 0.0  ;;  %v1208_v52 = vmax.f32 %v1080_v61, 0.0  ;;  %v1210_v13 = vmax.f32 %v1082_v30, 0.0 }
 0x134   :  { %4571 = vset.pattern.permute.xlu1 %v6869_v62  ;;  %v376_v2 = vmul.f32 %v5269_v38, %v198_v0  ;;  %v377_v19 = vmul.f32 %v5261_v34, %v198_v0  ;;  %v378_v55 = vmul.f32 %v6892_v57, %v198_v0  ;;  %v379_v48 = vmul.f32 %v5263_v35, %v198_v0 }
 0x135   :  { %267 = vperm.xlu1 %4571, %v4732_v27   ;;  %v1337_v62 = vpack.c.bf16 %v1209_v28, %v1205_v47  ;;  %v1339_v20 = vpack.c.bf16 %v1211_v33, %v1207_v46  ;;  %v1336_v26 = vpack.c.bf16 %v1208_v52, %v1204_v45  ;;  %v1338_v54 = vpack.c.bf16 %v1210_v13, %v1206_v53  ;;  %v4734_v46 = vld [vmem:[%s6811_s2] sm:$0xff] }
 0x137   :  { %v523_v60 = vpop.permute.xlu1 %522  ;;  %1674 = vmatprep.subr.bf16.mxu0 %v1337_v62  ;;  %1867 = vmatprep.subr.bf16.mxu1 %v1339_v20 }
 0x138   :  { %1675 = vmatpush1.bf16.msra.mxu0 %v1336_v26  ;;  %1868 = vmatpush1.bf16.msra.mxu1 %v1338_v54  ;;  %v665_v7 = vadd.f32 %v523_v60, %v377_v19  ;;  %v667_v41 = vadd.f32 %v523_v60, %v379_v48  ;;  %v664_v39 = vadd.f32 %v523_v60, %v376_v2  ;;  %v4588_v19 = vld [vmem:[%s6812_s3 + $0x4] ss:$8 sps:$4 sm:$0xff]   ;;  %v802_v48 = vpop.permute.xlu0 %801 }
 0x139   :  { %592 = vperm.xlu1 %4571, %v5823_v24   ;;  %v666_v31 = vadd.f32 %v523_v60, %v378_v55  ;;  %1692 = vmatprep.mubr.bf16.mxu0 %v4588_v19 }
 0x13a   :  { %v1085_v51 = vadd.f32 %v957_v58, %v665_v7  ;;  %v1087_v63 = vadd.f32 %v959_v14, %v667_v41  ;;  %v1084_v9 = vadd.f32 %v956_v3, %v664_v39  ;;  %1885 = vmatprep.mubr.bf16.mxu1 %v4588_v19  ;;  %v964_v7 = vmul.f32 %v5273_v40, %v802_v48 }
 0x13b   :  { %v528_v8 = vpop.permute.xlu1 %527  ;;  %v1086_v18 = vadd.f32 %v958_v43, %v666_v31  ;;  %v4736_v43 = vld [vmem:[%s6811_s2 + $0x20] sm:$0xff]  ;;  %v966_v41 = vmul.f32 %v5275_v42, %v802_v48 }
 0x13c   :  { %v669_v32 = vadd.f32 %v528_v8, %v381_v15  ;;  %v671_v16 = vadd.f32 %v528_v8, %v383_v10  ;;  %v668_v49 = vadd.f32 %v528_v8, %v380_v56  ;;  %v670_v11 = vadd.f32 %v528_v8, %v382_v22  ;;  %v6906_v22 = vld [vmem:[#allocation19_spill] sm:$0xff] }
 0x13d   :  { %597 = vperm.xlu1 %4571, %v6904_v50   ;;  %v1213_v45 = vmax.f32 %v1085_v51, 0.0  ;;  %v1215_v53 = vmax.f32 %v1087_v63, 0.0  ;;  %v1212_v27 = vmax.f32 %v1084_v9, 0.0  ;;  %v1214_v0 = vmax.f32 %v1086_v18, 0.0  ;;  %v4737_v18 = vld [vmem:[%s6811_s2 + $0x30] sm:$0xff] }
 0x13e   :  { %v965_v50 = vmul.f32 %v5265_v36, %v802_v48  ;;  %v967_v8 = vmul.f32 %v5267_v37, %v802_v48  ;;  %v388_v10 = vmul.f32 %v5269_v38, %v6906_v22  ;;  %v389_v51 = vmul.f32 %v5261_v34, %v6906_v22 }
 0x13f   :  { %v390_v63 = vmul.f32 %v6892_v57, %v6906_v22  ;;  %v391_v9 = vmul.f32 %v5263_v35, %v6906_v22 }
 0x140   :  { %v798_v5 = vpop.permute.xlu1 %797 }
 0x141   :  { %4573 = vset.pattern.permute.xlu1 %v6866_v6  ;;  %v961_v25 = vmul.f32 %v5265_v36, %v798_v5  ;;  %v963_v4 = vmul.f32 %v5267_v37, %v798_v5  ;;  %v960_v6 = vmul.f32 %v5273_v40, %v798_v5  ;;  %v962_v23 = vmul.f32 %v5275_v42, %v798_v5 }
 0x142   :  { %853 = vperm.xlu1 %4573, %v4733_v29  }
 0x143   :  { %v1089_v59 = vadd.f32 %v961_v25, %v669_v32  ;;  %v1091_v61 = vadd.f32 %v963_v4, %v671_v16  ;;  %v1088_v30 = vadd.f32 %v960_v6, %v668_v49  ;;  %v1090_v47 = vadd.f32 %v962_v23, %v670_v11 }
 0x145   :  { %v208_v28 = vpop.permute.xlu1 %207  ;;  %v1217_v33 = vmax.f32 %v1089_v59, 0.0  ;;  %v1219_v52 = vmax.f32 %v1091_v61, 0.0  ;;  %v1216_v13 = vmax.f32 %v1088_v30, 0.0  ;;  %v1218_v62 = vmax.f32 %v1090_v47, 0.0  ;;  %v4738_v47 = vld [vmem:[%s6811_s2 + $0x40] sm:$0xff] }
 0x146   :  { %1373 = vperm.xlu1 %4573, %v4734_v46   ;;  %v384_v55 = vmul.f32 %v5269_v38, %v208_v28  ;;  %v385_v58 = vmul.f32 %v5261_v34, %v208_v28  ;;  %v386_v14 = vmul.f32 %v6892_v57, %v208_v28  ;;  %v387_v3 = vmul.f32 %v5263_v35, %v208_v28 }
 0x147   :  { %v1341_v20 = vpack.c.bf16 %v1217_v33, %v1213_v45  ;;  %v1343_v26 = vpack.c.bf16 %v1219_v52, %v1215_v53  ;;  %v1340_v54 = vpack.c.bf16 %v1216_v13, %v1212_v27  ;;  %v1342_v60 = vpack.c.bf16 %v1218_v62, %v1214_v0 }
 0x149   :  { %v533_v2 = vpop.permute.xlu1 %532  ;;  %1676 = vmatprep.subr.bf16.mxu0 %v1341_v20  ;;  %1869 = vmatprep.subr.bf16.mxu1 %v1343_v26 }
 0x14a   :  { %1381 = vperm.xlu1 %4573, %v4735_v12   ;;  %1677 = vmatpush1.bf16.msra.mxu0 %v1340_v54  ;;  %v673_v31 = vadd.f32 %v533_v2, %v385_v58  ;;  %v675_v1 = vadd.f32 %v533_v2, %v387_v3  ;;  %v672_v56 = vadd.f32 %v533_v2, %v384_v55  ;;  %v4740_v58 = vld [vmem:[%s6811_s2 + $0x60] sm:$0xff] }
 0x14b   :  { %1870 = vmatpush1.bf16.msra.mxu1 %v1342_v60  ;;  %v674_v15 = vadd.f32 %v533_v2, %v386_v14  ;;  %v4739_v60 = vld [vmem:[%s6811_s2 + $0x50] sm:$0xff]  ;;  %v810_v14 = vpop.permute.xlu0 %809 }
 0x14c   :  { %v1093_v29 = vadd.f32 %v965_v50, %v673_v31  ;;  %v1095_v5 = vadd.f32 %v967_v8, %v675_v1  ;;  %v1092_v32 = vadd.f32 %v964_v7, %v672_v56  ;;  %v973_v7 = vmul.f32 %v5265_v36, %v810_v14 }
 0x14d   :  { %v538_v39 = vpop.permute.xlu1 %537  ;;  %v1094_v16 = vadd.f32 %v966_v41, %v674_v15  ;;  %v975_v41 = vmul.f32 %v5267_v37, %v810_v14  ;;  %v974_v31 = vmul.f32 %v5275_v42, %v810_v14 }
 0x14e   :  { %1389 = vperm.xlu1 %4573, %v4736_v43   ;;  %v677_v11 = vadd.f32 %v538_v39, %v389_v51  ;;  %v679_v25 = vadd.f32 %v538_v39, %v391_v9  ;;  %v676_v4 = vadd.f32 %v538_v39, %v388_v10  ;;  %v678_v6 = vadd.f32 %v538_v39, %v390_v63  ;;  %v4741_v51 = vld [vmem:[%s6811_s2 + $0x70] sm:$0xff] }
 0x14f   :  { %v1221_v0 = vmax.f32 %v1093_v29, 0.0  ;;  %v1223_v28 = vmax.f32 %v1095_v5, 0.0  ;;  %v1220_v33 = vmax.f32 %v1092_v32, 0.0  ;;  %v1222_v52 = vmax.f32 %v1094_v16, 0.0  ;;  %v6907_v63 = vld [vmem:[#allocation20_spill] sm:$0xff] }
 0x150   :  { %v972_v39 = vmul.f32 %v5273_v40, %v810_v14  ;;  %v396_v9 = vmul.f32 %v5269_v38, %v6907_v63  ;;  %v398_v29 = vmul.f32 %v6892_v57, %v6907_v63  ;;  %v399_v5 = vmul.f32 %v5263_v35, %v6907_v63  ;;  %v4744_v14 = vld [vmem:[%s6811_s2 + $0xa0] sm:$0xff] }
 0x152   :  { %1397 = vperm.xlu1 %4573, %v4737_v18   ;;  %v806_v49 = vpop.permute.xlu1 %805  ;;  %v397_v18 = vmul.f32 %v5261_v34, %v6907_v63 }
 0x153   :  { %v969_v23 = vmul.f32 %v5265_v36, %v806_v49  ;;  %v971_v59 = vmul.f32 %v5267_v37, %v806_v49  ;;  %v968_v61 = vmul.f32 %v5273_v40, %v806_v49  ;;  %v970_v30 = vmul.f32 %v5275_v42, %v806_v49 }
 0x155   :  { %v1097_v46 = vadd.f32 %v969_v23, %v677_v11  ;;  %v1099_v45 = vadd.f32 %v971_v59, %v679_v25  ;;  %v1096_v53 = vadd.f32 %v968_v61, %v676_v4  ;;  %v1098_v27 = vadd.f32 %v970_v30, %v678_v6  ;;  %v4742_v25 = vld [vmem:[%s6811_s2 + $0x80] sm:$0xff] }
 0x156   :  { %1405 = vperm.xlu1 %4573, %v4738_v47  }
 0x157   :  { %v218_v13 = vpop.permute.xlu1 %217  ;;  %v1225_v62 = vmax.f32 %v1097_v46, 0.0  ;;  %v1227_v20 = vmax.f32 %v1099_v45, 0.0  ;;  %v1224_v26 = vmax.f32 %v1096_v53, 0.0  ;;  %v1226_v54 = vmax.f32 %v1098_v27, 0.0 }
 0x158   :  { %v392_v3 = vmul.f32 %v5269_v38, %v218_v13  ;;  %v393_v43 = vmul.f32 %v5261_v34, %v218_v13  ;;  %v394_v50 = vmul.f32 %v6892_v57, %v218_v13  ;;  %v395_v8 = vmul.f32 %v5263_v35, %v218_v13 }
 0x159   :  { %v1345_v12 = vpack.c.bf16 %v1225_v62, %v1221_v0  ;;  %v1347_v2 = vpack.c.bf16 %v1227_v20, %v1223_v28  ;;  %v1344_v19 = vpack.c.bf16 %v1224_v26, %v1220_v33  ;;  %v1346_v55 = vpack.c.bf16 %v1226_v54, %v1222_v52  ;;  %v4743_v33 = vld [vmem:[%s6811_s2 + $0x90] sm:$0xff] }
 0x15a   :  { %1413 = vperm.xlu1 %4573, %v4739_v60  }
 0x15b   :  { %v543_v48 = vpop.permute.xlu1 %542  ;;  %1678 = vmatprep.subr.bf16.mxu0 %v1345_v12  ;;  %1871 = vmatprep.subr.bf16.mxu1 %v1347_v2 }
 0x15c   :  { %1679 = vmatpush1.bf16.msra.mxu0 %v1344_v19  ;;  %1872 = vmatpush1.bf16.msra.mxu1 %v1346_v55  ;;  %v681_v56 = vadd.f32 %v543_v48, %v393_v43  ;;  %v683_v15 = vadd.f32 %v543_v48, %v395_v8  ;;  %v680_v22 = vadd.f32 %v543_v48, %v392_v3  ;;  %v6908_v43 = vld [vmem:[#allocation37_spill] sm:$0xff] }
 0x15d   :  { %v682_v10 = vadd.f32 %v543_v48, %v394_v50  ;;  %v6909_v50 = vld [vmem:[#allocation21_spill] sm:$0xff] }
 0x15e   :  { %1421 = vperm.xlu1 %4573, %v4740_v58   ;;  %v1101_v32 = vadd.f32 %v973_v7, %v681_v56  ;;  %v1103_v16 = vadd.f32 %v975_v41, %v683_v15  ;;  %v1100_v49 = vadd.f32 %v972_v39, %v680_v22  ;;  %v404_v8 = vmul.f32 %v5269_v38, %v6909_v50 }
 0x15f   :  { %v548_v1 = vpop.permute.xlu1 %547  ;;  %v1102_v11 = vadd.f32 %v974_v31, %v682_v10  ;;  %v405_v7 = vmul.f32 %v5261_v34, %v6909_v50  ;;  %v406_v41 = vmul.f32 %v6892_v57, %v6909_v50  ;;  %v407_v39 = vmul.f32 %v5263_v35, %v6909_v50 }
 0x160   :  { %v685_v6 = vadd.f32 %v548_v1, %v397_v18  ;;  %v687_v23 = vadd.f32 %v548_v1, %v399_v5  ;;  %v684_v59 = vadd.f32 %v548_v1, %v396_v9  ;;  %v686_v61 = vadd.f32 %v548_v1, %v398_v29  ;;  %v818_v1 = vpop.permute.xlu0 %817 }
 0x161   :  { %v1229_v52 = vmax.f32 %v1101_v32, 0.0  ;;  %v1231_v13 = vmax.f32 %v1103_v16, 0.0  ;;  %v1228_v62 = vmax.f32 %v1100_v49, 0.0  ;;  %v1230_v20 = vmax.f32 %v1102_v11, 0.0 }
 0x162   :  { %1429 = vperm.xlu1 %4573, %v4741_v51   ;;  %v981_v51 = vmul.f32 %v5265_v36, %v818_v1  ;;  %v983_v63 = vmul.f32 %v5267_v37, %v818_v1  ;;  %v980_v9 = vmul.f32 %v5273_v40, %v818_v1  ;;  %v982_v18 = vmul.f32 %v5275_v42, %v818_v1 }
 0x164   :  { %v814_v4 = vpop.permute.xlu1 %813 }
 0x165   :  { %v977_v30 = vmul.f32 %v5265_v36, %v814_v4  ;;  %v979_v47 = vmul.f32 %v5267_v37, %v814_v4  ;;  %v976_v46 = vmul.f32 %v5273_v40, %v814_v4  ;;  %v978_v45 = vmul.f32 %v5275_v42, %v814_v4 }
 0x166   :  { %1437 = vperm.xlu1 %4573, %v4742_v25  }
 0x167   :  { %v1105_v53 = vadd.f32 %v977_v30, %v685_v6  ;;  %v1107_v27 = vadd.f32 %v979_v47, %v687_v23  ;;  %v1104_v0 = vadd.f32 %v976_v46, %v684_v59  ;;  %v1106_v28 = vadd.f32 %v978_v45, %v686_v61 }
 0x169   :  { %v228_v26 = vpop.permute.xlu1 %227  ;;  %v1233_v54 = vmax.f32 %v1105_v53, 0.0  ;;  %v1235_v60 = vmax.f32 %v1107_v27, 0.0  ;;  %v1232_v12 = vmax.f32 %v1104_v0, 0.0  ;;  %v1234_v2 = vmax.f32 %v1106_v28, 0.0 }
 0x16a   :  { %1445 = vperm.xlu1 %4573, %v4743_v33   ;;  %v400_v56 = vmul.f32 %v5269_v38, %v228_v26  ;;  %v401_v15 = vmul.f32 %v5261_v34, %v228_v26  ;;  %v402_v22 = vmul.f32 %v6892_v57, %v228_v26  ;;  %v403_v10 = vmul.f32 %v5263_v35, %v228_v26 }
 0x16b   :  { %v1349_v19 = vpack.c.bf16 %v1233_v54, %v1229_v52  ;;  %v1351_v55 = vpack.c.bf16 %v1235_v60, %v1231_v13  ;;  %v1348_v48 = vpack.c.bf16 %v1232_v12, %v1228_v62  ;;  %v1350_v58 = vpack.c.bf16 %v1234_v2, %v1230_v20 }
 0x16d   :  { %v553_v3 = vpop.permute.xlu1 %552  ;;  %1680 = vmatprep.subr.bf16.mxu0 %v1349_v19  ;;  %1873 = vmatprep.subr.bf16.mxu1 %v1351_v55 }
 0x16e   :  { %1453 = vperm.xlu1 %4573, %v4744_v14   ;;  %1681 = vmatpush1.bf16.msra.mxu0 %v1348_v48  ;;  %v689_v29 = vadd.f32 %v553_v3, %v401_v15  ;;  %v691_v5 = vadd.f32 %v553_v3, %v403_v10  ;;  %v688_v32 = vadd.f32 %v553_v3, %v400_v56  ;;  %v6910_v15 = vld [vmem:[#allocation23_spill] sm:$0xff] }
 0x16f   :  { %1874 = vmatpush1.bf16.msra.mxu1 %v1350_v58  ;;  %v690_v16 = vadd.f32 %v553_v3, %v402_v22  ;;  %v826_v58 = vpop.permute.xlu0 %825  ;;  %v412_v22 = vmul.f32 %v5269_v38, %v6910_v15  ;;  %v413_v10 = vmul.f32 %v5261_v34, %v6910_v15 }
 0x170   :  { %v1111_v47 = vadd.f32 %v983_v63, %v691_v5  ;;  %v1108_v46 = vadd.f32 %v980_v9, %v688_v32  ;;  %v989_v50 = vmul.f32 %v5265_v36, %v826_v58  ;;  %v415_v63 = vmul.f32 %v5263_v35, %v6910_v15 }
 0x171   :  { %v558_v31 = vpop.permute.xlu1 %557  ;;  %v1110_v45 = vadd.f32 %v982_v18, %v690_v16 }
 0x172   :  { %1461 = vperm.xlu1 %4573, %v6908_v43   ;;  %v693_v11 = vadd.f32 %v558_v31, %v405_v7  ;;  %v695_v25 = vadd.f32 %v558_v31, %v407_v39  ;;  %v692_v4 = vadd.f32 %v558_v31, %v404_v8  ;;  %v694_v6 = vadd.f32 %v558_v31, %v406_v41 }
 0x173   :  { %v1239_v54 = vmax.f32 %v1111_v47, 0.0  ;;  %v1236_v60 = vmax.f32 %v1108_v46, 0.0  ;;  %v1238_v12 = vmax.f32 %v1110_v45, 0.0  ;;  %v991_v8 = vmul.f32 %v5267_v37, %v826_v58 }
 0x174   :  { %v990_v7 = vmul.f32 %v5275_v42, %v826_v58 }
 0x176   :  { %1469 = vperm.xlu1 %4573, %v5699_v44   ;;  %v1109_v44 = vadd.f32 %v981_v51, %v689_v29  ;;  %v414_v51 = vmul.f32 %v6892_v57, %v6910_v15 }
 0x177   :  { %v822_v49 = vpop.permute.xlu1 %821 }
 0x178   :  { %v985_v23 = vmul.f32 %v5265_v36, %v822_v49  ;;  %v987_v59 = vmul.f32 %v5267_v37, %v822_v49  ;;  %v984_v61 = vmul.f32 %v5273_v40, %v822_v49  ;;  %v986_v30 = vmul.f32 %v5275_v42, %v822_v49 }
 0x179   :  { %v1237_v26 = vmax.f32 %v1109_v44, 0.0 }
 0x17a   :  { %1477 = vperm.xlu1 %4573, %v5754_v17   ;;  %v1113_v53 = vadd.f32 %v985_v23, %v693_v11  ;;  %v1115_v27 = vadd.f32 %v987_v59, %v695_v25  ;;  %v1112_v0 = vadd.f32 %v984_v61, %v692_v4  ;;  %v1114_v28 = vadd.f32 %v986_v30, %v694_v6 }
 0x17c   :  { %v1241_v33 = vmax.f32 %v1113_v53, 0.0  ;;  %v1243_v52 = vmax.f32 %v1115_v27, 0.0  ;;  %v1240_v13 = vmax.f32 %v1112_v0, 0.0  ;;  %v1242_v62 = vmax.f32 %v1114_v28, 0.0 }
 0x17e   :  { %1485 = vperm.xlu1 %4573, %v5788_v21   ;;  %v238_v20 = vpop.permute.xlu1 %237  ;;  %v1353_v17 = vpack.c.bf16 %v1241_v33, %v1237_v26  ;;  %v1355_v2 = vpack.c.bf16 %v1243_v52, %v1239_v54  ;;  %v1352_v19 = vpack.c.bf16 %v1240_v13, %v1236_v60  ;;  %v1354_v55 = vpack.c.bf16 %v1242_v62, %v1238_v12 }
 0x17f   :  { %v408_v14 = vmul.f32 %v5269_v38, %v238_v20  ;;  %v409_v21 = vmul.f32 %v5261_v34, %v238_v20  ;;  %v410_v3 = vmul.f32 %v6892_v57, %v238_v20  ;;  %v411_v43 = vmul.f32 %v5263_v35, %v238_v20 }
 0x180   :  { %1682 = vmatprep.subr.bf16.mxu0 %v1353_v17  ;;  %1875 = vmatprep.subr.bf16.mxu1 %v1355_v2 }
 0x181   :  { %1683 = vmatpush1.bf16.msra.mxu0 %v1352_v19  ;;  %1876 = vmatpush1.bf16.msra.mxu1 %v1354_v55 }
 0x182   :  { %1493 = vperm.xlu1 %4573, %v5823_v24   ;;  %v563_v48 = vpop.permute.xlu1 %562  ;;  %v988_v24 = vmul.f32 %v5273_v40, %v826_v58 }
 0x183   :  { %v697_v39 = vadd.f32 %v563_v48, %v409_v21  ;;  %v699_v31 = vadd.f32 %v563_v48, %v411_v43  ;;  %v696_v1 = vadd.f32 %v563_v48, %v408_v14  ;;  %v698_v56 = vadd.f32 %v563_v48, %v410_v3  ;;  %v834_v3 = vpop.permute.xlu0 %833 }
 0x184   :  { %v997_v43 = vmul.f32 %v5265_v36, %v834_v3 }
 0x185   :  { %v1117_v9 = vadd.f32 %v989_v50, %v697_v39  ;;  %v1119_v18 = vadd.f32 %v991_v8, %v699_v31  ;;  %v1116_v29 = vadd.f32 %v988_v24, %v696_v1  ;;  %v1118_v5 = vadd.f32 %v990_v7, %v698_v56  ;;  %v6911_v7 = vld [vmem:[#allocation26_spill] sm:$0xff] }
 0x186   :  { %v568_v41 = vpop.permute.xlu1 %567  ;;  %v999_v50 = vmul.f32 %v5267_v37, %v834_v3  ;;  %v996_v8 = vmul.f32 %v5273_v40, %v834_v3  ;;  %v998_v24 = vmul.f32 %v5275_v42, %v834_v3  ;;  %v421_v39 = vmul.f32 %v5261_v34, %v6911_v7 }
 0x187   :  { %v701_v16 = vadd.f32 %v568_v41, %v413_v10  ;;  %v703_v49 = vadd.f32 %v568_v41, %v415_v63  ;;  %v700_v11 = vadd.f32 %v568_v41, %v412_v22  ;;  %v702_v25 = vadd.f32 %v568_v41, %v414_v51 }
 0x188   :  { %v1245_v46 = vmax.f32 %v1117_v9, 0.0  ;;  %v1247_v45 = vmax.f32 %v1119_v18, 0.0  ;;  %v1244_v53 = vmax.f32 %v1116_v29, 0.0  ;;  %v1246_v27 = vmax.f32 %v1118_v5, 0.0 }
 0x189   :  { %v420_v41 = vmul.f32 %v5269_v38, %v6911_v7  ;;  %v422_v31 = vmul.f32 %v6892_v57, %v6911_v7  ;;  %v423_v1 = vmul.f32 %v5263_v35, %v6911_v7 }
 0x18b   :  { %v830_v32 = vpop.permute.xlu1 %829 }
 0x18c   :  { %v993_v4 = vmul.f32 %v5265_v36, %v830_v32  ;;  %v995_v6 = vmul.f32 %v5267_v37, %v830_v32  ;;  %v992_v23 = vmul.f32 %v5273_v40, %v830_v32  ;;  %v994_v59 = vmul.f32 %v5275_v42, %v830_v32 }
 0x18e   :  { %v1121_v61 = vadd.f32 %v993_v4, %v701_v16  ;;  %v1123_v30 = vadd.f32 %v995_v6, %v703_v49  ;;  %v1120_v44 = vadd.f32 %v992_v23, %v700_v11  ;;  %v1122_v47 = vadd.f32 %v994_v59, %v702_v25 }
 0x190   :  { %v248_v0 = vpop.permute.xlu1 %247  ;;  %v1249_v28 = vmax.f32 %v1121_v61, 0.0  ;;  %v1251_v33 = vmax.f32 %v1123_v30, 0.0  ;;  %v1248_v52 = vmax.f32 %v1120_v44, 0.0  ;;  %v1250_v13 = vmax.f32 %v1122_v47, 0.0 }
 0x191   :  { %v416_v12 = vmul.f32 %v5269_v38, %v248_v0  ;;  %v417_v17 = vmul.f32 %v5261_v34, %v248_v0  ;;  %v418_v2 = vmul.f32 %v6892_v57, %v248_v0  ;;  %v419_v19 = vmul.f32 %v5263_v35, %v248_v0 }
 0x192   :  { %v1357_v62 = vpack.c.bf16 %v1249_v28, %v1245_v46  ;;  %v1359_v20 = vpack.c.bf16 %v1251_v33, %v1247_v45  ;;  %v1356_v26 = vpack.c.bf16 %v1248_v52, %v1244_v53  ;;  %v1358_v54 = vpack.c.bf16 %v1250_v13, %v1246_v27 }
 0x194   :  { %v573_v60 = vpop.permute.xlu1 %572  ;;  %1684 = vmatprep.subr.bf16.mxu0 %v1357_v62  ;;  %1877 = vmatprep.subr.bf16.mxu1 %v1359_v20 }
 0x195   :  { %1685 = vmatpush1.bf16.msra.mxu0 %v1356_v26  ;;  %1878 = vmatpush1.bf16.msra.mxu1 %v1358_v54  ;;  %v705_v48 = vadd.f32 %v573_v60, %v417_v17  ;;  %v707_v58 = vadd.f32 %v573_v60, %v419_v19  ;;  %v704_v14 = vadd.f32 %v573_v60, %v416_v12  ;;  %v842_v19 = vpop.permute.xlu0 %841 }
 0x196   :  { %v706_v21 = vadd.f32 %v573_v60, %v418_v2 }
 0x197   :  { %v1125_v56 = vadd.f32 %v997_v43, %v705_v48  ;;  %v1127_v15 = vadd.f32 %v999_v50, %v707_v58  ;;  %v1124_v22 = vadd.f32 %v996_v8, %v704_v14  ;;  %v1007_v48 = vmul.f32 %v5267_v37, %v842_v19 }
 0x198   :  { %v578_v55 = vpop.permute.xlu1 %577  ;;  %v1126_v10 = vadd.f32 %v998_v24, %v706_v21  ;;  %v1004_v58 = vmul.f32 %v5273_v40, %v842_v19  ;;  %v1006_v14 = vmul.f32 %v5275_v42, %v842_v19  ;;  %v6912_v21 = vld [vmem:[#allocation34_spill] sm:$0xff] }
 0x199   :  { %v709_v63 = vadd.f32 %v578_v55, %v421_v39  ;;  %v711_v9 = vadd.f32 %v578_v55, %v423_v1  ;;  %v708_v18 = vadd.f32 %v578_v55, %v420_v41  ;;  %v710_v29 = vadd.f32 %v578_v55, %v422_v31 }
 0x19a   :  { %v1253_v23 = vmax.f32 %v1125_v56, 0.0  ;;  %v1255_v59 = vmax.f32 %v1127_v15, 0.0  ;;  %v1252_v61 = vmax.f32 %v1124_v22, 0.0  ;;  %v1254_v30 = vmax.f32 %v1126_v10, 0.0 }
 0x19b   :  { %v1005_v55 = vmul.f32 %v5265_v36, %v842_v19  ;;  %v428_v3 = vmul.f32 %v5269_v38, %v6912_v21  ;;  %v429_v43 = vmul.f32 %v5261_v34, %v6912_v21  ;;  %v430_v50 = vmul.f32 %v6892_v57, %v6912_v21 }
 0x19c   :  { %v431_v8 = vmul.f32 %v5263_v35, %v6912_v21 }
 0x19d   :  { %v838_v51 = vpop.permute.xlu1 %837 }
 0x19e   :  { %v1001_v5 = vmul.f32 %v5265_v36, %v838_v51  ;;  %v1003_v32 = vmul.f32 %v5267_v37, %v838_v51  ;;  %v1000_v16 = vmul.f32 %v5273_v40, %v838_v51  ;;  %v1002_v49 = vmul.f32 %v5275_v42, %v838_v51 }
 0x1a0   :  { %v1129_v11 = vadd.f32 %v1001_v5, %v709_v63  ;;  %v1131_v25 = vadd.f32 %v1003_v32, %v711_v9  ;;  %v1128_v4 = vadd.f32 %v1000_v16, %v708_v18  ;;  %v1130_v6 = vadd.f32 %v1002_v49, %v710_v29 }
 0x1a2   :  { %v258_v44 = vpop.permute.xlu1 %257  ;;  %v1257_v47 = vmax.f32 %v1129_v11, 0.0  ;;  %v1259_v46 = vmax.f32 %v1131_v25, 0.0  ;;  %v1256_v45 = vmax.f32 %v1128_v4, 0.0  ;;  %v1258_v53 = vmax.f32 %v1130_v6, 0.0 }
 0x1a3   :  { %v424_v13 = vmul.f32 %v5269_v38, %v258_v44  ;;  %v425_v62 = vmul.f32 %v5261_v34, %v258_v44  ;;  %v426_v20 = vmul.f32 %v6892_v57, %v258_v44  ;;  %v427_v26 = vmul.f32 %v5263_v35, %v258_v44 }
 0x1a4   :  { %v1361_v27 = vpack.c.bf16 %v1257_v47, %v1253_v23  ;;  %v1363_v0 = vpack.c.bf16 %v1259_v46, %v1255_v59  ;;  %v1360_v28 = vpack.c.bf16 %v1256_v45, %v1252_v61  ;;  %v1362_v33 = vpack.c.bf16 %v1258_v53, %v1254_v30 }
 0x1a6   :  { %v583_v52 = vpop.permute.xlu1 %582  ;;  %1686 = vmatprep.subr.bf16.mxu0 %v1361_v27  ;;  %1879 = vmatprep.subr.bf16.mxu1 %v1363_v0 }
 0x1a7   :  { %1687 = vmatpush1.bf16.msra.mxu0 %v1360_v28  ;;  %1880 = vmatpush1.bf16.msra.mxu1 %v1362_v33  ;;  %v713_v60 = vadd.f32 %v583_v52, %v425_v62  ;;  %v715_v12 = vadd.f32 %v583_v52, %v427_v26  ;;  %v712_v17 = vadd.f32 %v583_v52, %v424_v13  ;;  %v850_v26 = vpop.permute.xlu0 %849 }
 0x1a8   :  { %v714_v2 = vadd.f32 %v583_v52, %v426_v20 }
 0x1a9   :  { %v1133_v24 = vadd.f32 %v1005_v55, %v713_v60  ;;  %v1135_v7 = vadd.f32 %v1007_v48, %v715_v12  ;;  %v1132_v41 = vadd.f32 %v1004_v58, %v712_v17  ;;  %v1015_v60 = vmul.f32 %v5267_v37, %v850_v26 }
 0x1aa   :  { %v588_v54 = vpop.permute.xlu1 %587  ;;  %v1134_v39 = vadd.f32 %v1006_v14, %v714_v2  ;;  %v1012_v12 = vmul.f32 %v5273_v40, %v850_v26  ;;  %v1014_v17 = vmul.f32 %v5275_v42, %v850_v26  ;;  %v6913_v2 = vld [vmem:[#allocation35_spill] sm:$0xff] }
 0x1ab   :  { %v717_v1 = vadd.f32 %v588_v54, %v429_v43  ;;  %v719_v56 = vadd.f32 %v588_v54, %v431_v8  ;;  %v716_v15 = vadd.f32 %v588_v54, %v428_v3  ;;  %v718_v22 = vadd.f32 %v588_v54, %v430_v50 }
 0x1ac   :  { %v1261_v16 = vmax.f32 %v1133_v24, 0.0  ;;  %v1263_v49 = vmax.f32 %v1135_v7, 0.0  ;;  %v1260_v11 = vmax.f32 %v1132_v41, 0.0  ;;  %v1262_v25 = vmax.f32 %v1134_v39, 0.0 }
 0x1ad   :  { %v1013_v54 = vmul.f32 %v5265_v36, %v850_v26  ;;  %v436_v19 = vmul.f32 %v5269_v38, %v6913_v2  ;;  %v437_v55 = vmul.f32 %v5261_v34, %v6913_v2  ;;  %v438_v48 = vmul.f32 %v6892_v57, %v6913_v2  ;;  %v4625_v26 = vld [vmem:[%s6812_s3 + $0xd4] ss:$8 sps:$4 sm:$0xff]  }
 0x1ae   :  { %v439_v58 = vmul.f32 %v5263_v35, %v6913_v2  ;;  %v4633_v2 = vld [vmem:[%s6812_s3 + $0xf0] ss:$8 sps:$4 sm:$0xff]  }
 0x1af   :  { %v846_v31 = vpop.permute.xlu1 %845 }
 0x1b0   :  { %v1009_v10 = vmul.f32 %v5265_v36, %v846_v31  ;;  %v1011_v51 = vmul.f32 %v5267_v37, %v846_v31  ;;  %v1008_v63 = vmul.f32 %v5273_v40, %v846_v31  ;;  %v1010_v9 = vmul.f32 %v5275_v42, %v846_v31 }
 0x1b2   :  { %v1137_v18 = vadd.f32 %v1009_v10, %v717_v1  ;;  %v1139_v29 = vadd.f32 %v1011_v51, %v719_v56  ;;  %v1136_v5 = vadd.f32 %v1008_v63, %v716_v15  ;;  %v1138_v32 = vadd.f32 %v1010_v9, %v718_v22 }
 0x1b4   :  { %v268_v4 = vpop.permute.xlu1 %267  ;;  %v1265_v6 = vmax.f32 %v1137_v18, 0.0  ;;  %v1267_v23 = vmax.f32 %v1139_v29, 0.0  ;;  %v1264_v59 = vmax.f32 %v1136_v5, 0.0  ;;  %v1266_v61 = vmax.f32 %v1138_v32, 0.0 }
 0x1b5   :  { %v432_v53 = vmul.f32 %v5269_v38, %v268_v4  ;;  %v433_v27 = vmul.f32 %v5261_v34, %v268_v4  ;;  %v434_v0 = vmul.f32 %v6892_v57, %v268_v4  ;;  %v435_v28 = vmul.f32 %v5263_v35, %v268_v4  ;;  %v4597_v4 = vld [vmem:[%s6812_s3 + $0x30] ss:$8 sps:$4 sm:$0xff]  }
 0x1b6   :  { %v1365_v30 = vpack.c.bf16 %v1265_v6, %v1261_v16  ;;  %v1367_v44 = vpack.c.bf16 %v1267_v23, %v1263_v49  ;;  %v1364_v47 = vpack.c.bf16 %v1264_v59, %v1260_v11  ;;  %v1366_v46 = vpack.c.bf16 %v1266_v61, %v1262_v25  ;;  %v4591_v16 = vld [vmem:[%s6812_s3 + $0x10] ss:$8 sps:$4 sm:$0xff]   ;;  %v4592_v49 = vld [vmem:[%s6812_s3 + $0x24] ss:$8 sps:$4 sm:$0xff]   ;;  %v4594_v11 = vld [vmem:[%s6812_s3 + $0x20] ss:$8 sps:$4 sm:$0xff]  }
 0x1b7   :  { %v4595_v25 = vld [vmem:[%s6812_s3 + $0x34] ss:$8 sps:$4 sm:$0xff]   ;;  %v4598_v6 = vld [vmem:[%s6812_s3 + $0x44] ss:$8 sps:$4 sm:$0xff]   ;;  %v4600_v23 = vld [vmem:[%s6812_s3 + $0x40] ss:$8 sps:$4 sm:$0xff]  }
 0x1b8   :  { %v593_v45 = vpop.permute.xlu1 %592  ;;  %1688 = vmatprep.subr.bf16.mxu0 %v1365_v30  ;;  %1881 = vmatprep.subr.bf16.mxu1 %v1367_v44  ;;  %v4601_v59 = vld [vmem:[%s6812_s3 + $0x54] ss:$8 sps:$4 sm:$0xff]   ;;  %v4603_v61 = vld [vmem:[%s6812_s3 + $0x50] ss:$8 sps:$4 sm:$0xff]   ;;  %v4604_v30 = vld [vmem:[%s6812_s3 + $0x64] ss:$8 sps:$4 sm:$0xff]  }
 0x1b9   :  { %1689 = vmatpush1.bf16.msra.mxu0 %v1364_v47  ;;  %1882 = vmatpush1.bf16.msra.mxu1 %v1366_v46  ;;  %v721_v52 = vadd.f32 %v593_v45, %v433_v27  ;;  %v723_v13 = vadd.f32 %v593_v45, %v435_v28  ;;  %v720_v62 = vadd.f32 %v593_v45, %v432_v53  ;;  %v4606_v44 = vld [vmem:[%s6812_s3 + $0x60] ss:$8 sps:$4 sm:$0xff]   ;;  %v4607_v47 = vld [vmem:[%s6812_s3 + $0x74] ss:$8 sps:$4 sm:$0xff]   ;;  %v4609_v46 = vld [vmem:[%s6812_s3 + $0x70] ss:$8 sps:$4 sm:$0xff]  }
 0x1ba   :  { %v722_v20 = vadd.f32 %v593_v45, %v434_v0  ;;  %v4610_v45 = vld [vmem:[%s6812_s3 + $0x84] ss:$8 sps:$4 sm:$0xff]   ;;  %v4612_v53 = vld [vmem:[%s6812_s3 + $0x80] ss:$8 sps:$4 sm:$0xff]   ;;  %v4613_v27 = vld [vmem:[%s6812_s3 + $0x94] ss:$8 sps:$4 sm:$0xff]  }
 0x1bb   :  { %v1141_v14 = vadd.f32 %v1013_v54, %v721_v52  ;;  %v1143_v21 = vadd.f32 %v1015_v60, %v723_v13  ;;  %v1140_v3 = vadd.f32 %v1012_v12, %v720_v62  ;;  %v4615_v0 = vld [vmem:[%s6812_s3 + $0x90] ss:$8 sps:$4 sm:$0xff]   ;;  %v4616_v28 = vld [vmem:[%s6812_s3 + $0xa4] ss:$8 sps:$4 sm:$0xff]   ;;  %v4619_v52 = vld [vmem:[%s6812_s3 + $0xb4] ss:$8 sps:$4 sm:$0xff]  }
 0x1bc   :  { %v598_v33 = vpop.permute.xlu1 %597  ;;  %v1142_v43 = vadd.f32 %v1014_v17, %v722_v20  ;;  %v4621_v13 = vld [vmem:[%s6812_s3 + $0xb0] ss:$8 sps:$4 sm:$0xff]   ;;  %v4622_v62 = vld [vmem:[%s6812_s3 + $0xc4] ss:$8 sps:$4 sm:$0xff]   ;;  %v4624_v20 = vld [vmem:[%s6812_s3 + $0xc0] ss:$8 sps:$4 sm:$0xff]  }
 0x1bd   :  { %v725_v8 = vadd.f32 %v598_v33, %v437_v55  ;;  %v727_v24 = vadd.f32 %v598_v33, %v439_v58  ;;  %v724_v7 = vadd.f32 %v598_v33, %v436_v19  ;;  %v726_v41 = vadd.f32 %v598_v33, %v438_v48  ;;  %v4618_v33 = vld [vmem:[%s6812_s3 + $0xa0] ss:$8 sps:$4 sm:$0xff]   ;;  %v4627_v54 = vld [vmem:[%s6812_s3 + $0xd0] ss:$8 sps:$4 sm:$0xff]   ;;  %v4628_v60 = vld [vmem:[%s6812_s3 + $0xe4] ss:$8 sps:$4 sm:$0xff]   ;;  %v1378_v19 = vpop.permute.xlu0 %1377 }
 0x1be   :  { %v1269_v15 = vmax.f32 %v1141_v14, 0.0  ;;  %v1271_v22 = vmax.f32 %v1143_v21, 0.0  ;;  %v1268_v10 = vmax.f32 %v1140_v3, 0.0  ;;  %v1270_v51 = vmax.f32 %v1142_v43, 0.0  ;;  %v4630_v12 = vld [vmem:[%s6812_s3 + $0xe0] ss:$8 sps:$4 sm:$0xff]  }
 0x1bf   :  { %v4631_v17 = vld [vmem:[%s6812_s3 + $0xf4] ss:$8 sps:$4 sm:$0xff]  }
 0x1c1   :  { %v854_v50 = vpop.permute.xlu1 %853 }
 0x1c2   :  { %v1017_v38 = vmul.f32 %v5265_v36, %v854_v50  ;;  %v1019_v39 = vmul.f32 %v5267_v37, %v854_v50  ;;  %v1016_v34 = vmul.f32 %v5273_v40, %v854_v50  ;;  %v1018_v57 = vmul.f32 %v5275_v42, %v854_v50  ;;  %v4586_v40 = vld [vmem:[%s6812_s3] ss:$8 sps:$4 sm:$0xff]   ;;  %v4589_v42 = vld [vmem:[%s6812_s3 + $0x14] ss:$8 sps:$4 sm:$0xff]  }
 0x1c4   :  { %v1145_v31 = vadd.f32 %v1017_v38, %v725_v8  ;;  %v1147_v1 = vadd.f32 %v1019_v39, %v727_v24  ;;  %v1144_v35 = vadd.f32 %v1016_v34, %v724_v7  ;;  %v1146_v56 = vadd.f32 %v1018_v57, %v726_v41 }
 0x1c5   :  { %v1374_v55 = vpop.permute.xlu1 %1373 }
 0x1c6   :  { %v1273_v63 = vmax.f32 %v1145_v31, 0.0  ;;  %v1275_v9 = vmax.f32 %v1147_v1, 0.0  ;;  %v1272_v18 = vmax.f32 %v1144_v35, 0.0  ;;  %v1274_v29 = vmax.f32 %v1146_v56, 0.0  ;;  %v4636_v1 = vld [vmem:[%s6813_s4 + $0x4] ss:$8 sps:$4 sm:$0xff]  }
 0x1c8   :  { %v1369_v5 = vpack.c.bf16 %v1273_v63, %v1269_v15  ;;  %v1371_v36 = vpack.c.bf16 %v1275_v9, %v1271_v22  ;;  %v1368_v32 = vpack.c.bf16 %v1272_v18, %v1268_v10  ;;  %v1370_v37 = vpack.c.bf16 %v1274_v29, %v1270_v51  ;;  %v1386_v18 = vpop.permute.xlu0 %1385 }
 0x1c9   :  { %v1382_v29 = vpop.permute.xlu1 %1381 }
 0x1ca   :  { %1690 = vmatprep.subr.bf16.mxu0 %v1369_v5  ;;  %1883 = vmatprep.subr.bf16.mxu1 %v1371_v36 }
 0x1cb   :  { %1691 = vmatpush1.bf16.msra.mxu0 %v1368_v32  ;;  %1884 = vmatpush1.bf16.msra.mxu1 %v1370_v37 }
 0x1ce   :  { %1693 = vmatmul.mubr.bf16.vlgmr.msra.gmra.mrb[0].mxu0 %v4586_v40  ;;  %1886 = vmatmul.mubr.bf16.vlgmr.msra.gmra.mrb[0].mxu1 %v4586_v40 }
 0x1cf   :  { %1702 = vmatprep.mubr.bf16.mxu0 %v4589_v42  ;;  %1895 = vmatprep.mubr.bf16.mxu1 %v4589_v42 }
 0x1d6   :  { %1703 = vmatmul.mubr.bf16.gmra.mrb[4].mxu0 %v4591_v16  ;;  %1896 = vmatmul.mubr.bf16.gmra.mrb[4].mxu1 %v4591_v16 }
 0x1d7   :  { %1712 = vmatprep.mubr.bf16.mxu0 %v4592_v49  ;;  %1905 = vmatprep.mubr.bf16.mxu1 %v4592_v49 }
 0x1de   :  { %1713 = vmatmul.mubr.bf16.gmra.mrb[8].mxu0 %v4594_v11  ;;  %1906 = vmatmul.mubr.bf16.gmra.mrb[8].mxu1 %v4594_v11 }
 0x1df   :  { %1722 = vmatprep.mubr.bf16.mxu0 %v4595_v25  ;;  %1915 = vmatprep.mubr.bf16.mxu1 %v4595_v25 }
 0x1e6   :  { %1723 = vmatmul.mubr.bf16.gmra.mrb[12].mxu0 %v4597_v4  ;;  %1916 = vmatmul.mubr.bf16.gmra.mrb[12].mxu1 %v4597_v4 }
 0x1e7   :  { %1732 = vmatprep.mubr.bf16.mxu0 %v4598_v6  ;;  %1925 = vmatprep.mubr.bf16.mxu1 %v4598_v6 }
 0x1ee   :  { %1733 = vmatmul.mubr.bf16.gmra.mrb[16].mxu0 %v4600_v23  ;;  %1926 = vmatmul.mubr.bf16.gmra.mrb[16].mxu1 %v4600_v23 }
 0x1ef   :  { %1742 = vmatprep.mubr.bf16.mxu0 %v4601_v59  ;;  %1935 = vmatprep.mubr.bf16.mxu1 %v4601_v59 }
 0x1f6   :  { %1743 = vmatmul.mubr.bf16.gmra.mrb[20].mxu0 %v4603_v61  ;;  %1936 = vmatmul.mubr.bf16.gmra.mrb[20].mxu1 %v4603_v61 }
 0x1f7   :  { %1752 = vmatprep.mubr.bf16.mxu0 %v4604_v30  ;;  %1945 = vmatprep.mubr.bf16.mxu1 %v4604_v30 }
 0x1fe   :  { %1753 = vmatmul.mubr.bf16.gmra.mrb[24].mxu0 %v4606_v44  ;;  %1946 = vmatmul.mubr.bf16.gmra.mrb[24].mxu1 %v4606_v44 }
 0x1ff   :  { %1762 = vmatprep.mubr.bf16.mxu0 %v4607_v47  ;;  %1955 = vmatprep.mubr.bf16.mxu1 %v4607_v47 }
 0x206   :  { %1763 = vmatmul.mubr.bf16.gmra.mrb[28].mxu0 %v4609_v46  ;;  %1956 = vmatmul.mubr.bf16.gmra.mrb[28].mxu1 %v4609_v46 }
 0x207   :  { %1772 = vmatprep.mubr.bf16.mxu0 %v4610_v45  ;;  %1965 = vmatprep.mubr.bf16.mxu1 %v4610_v45 }
 0x20e   :  { %1773 = vmatmul.mubr.bf16.gmra.mrb[32].mxu0 %v4612_v53  ;;  %1966 = vmatmul.mubr.bf16.gmra.mrb[32].mxu1 %v4612_v53 }
 0x20f   :  { %1782 = vmatprep.mubr.bf16.mxu0 %v4613_v27  ;;  %1975 = vmatprep.mubr.bf16.mxu1 %v4613_v27 }
 0x216   :  { %1783 = vmatmul.mubr.bf16.gmra.mrb[36].mxu0 %v4615_v0  ;;  %1976 = vmatmul.mubr.bf16.gmra.mrb[36].mxu1 %v4615_v0 }
 0x217   :  { %1792 = vmatprep.mubr.bf16.mxu0 %v4616_v28  ;;  %1985 = vmatprep.mubr.bf16.mxu1 %v4616_v28 }
 0x21e   :  { %1793 = vmatmul.mubr.bf16.gmra.mrb[40].mxu0 %v4618_v33  ;;  %1986 = vmatmul.mubr.bf16.gmra.mrb[40].mxu1 %v4618_v33 }
 0x21f   :  { %1802 = vmatprep.mubr.bf16.mxu0 %v4619_v52  ;;  %1995 = vmatprep.mubr.bf16.mxu1 %v4619_v52 }
 0x226   :  { %1803 = vmatmul.mubr.bf16.gmra.mrb[44].mxu0 %v4621_v13  ;;  %1996 = vmatmul.mubr.bf16.gmra.mrb[44].mxu1 %v4621_v13 }
 0x227   :  { %1812 = vmatprep.mubr.bf16.mxu0 %v4622_v62  ;;  %2005 = vmatprep.mubr.bf16.mxu1 %v4622_v62 }
 0x22e   :  { %1813 = vmatmul.mubr.bf16.gmra.mrb[48].mxu0 %v4624_v20  ;;  %2006 = vmatmul.mubr.bf16.gmra.mrb[48].mxu1 %v4624_v20  ;;  %v1394_v20 = vpop.permute.xlu0 %1393 }
 0x22f   :  { %1822 = vmatprep.mubr.bf16.mxu0 %v4625_v26  ;;  %2015 = vmatprep.mubr.bf16.mxu1 %v4625_v26  ;;  %v1390_v26 = vpop.permute.xlu1 %1389 }
 0x236   :  { %1823 = vmatmul.mubr.bf16.gmra.mrb[52].mxu0 %v4627_v54  ;;  %2016 = vmatmul.mubr.bf16.gmra.mrb[52].mxu1 %v4627_v54 }
 0x237   :  { %1832 = vmatprep.mubr.bf16.mxu0 %v4628_v60  ;;  %2025 = vmatprep.mubr.bf16.mxu1 %v4628_v60 }
 0x23e   :  { %1833 = vmatmul.mubr.bf16.gmra.mrb[56].mxu0 %v4630_v12  ;;  %2026 = vmatmul.mubr.bf16.gmra.mrb[56].mxu1 %v4630_v12 }
 0x23f   :  { %1842 = vmatprep.mubr.bf16.mxu0 %v4631_v17  ;;  %2035 = vmatprep.mubr.bf16.mxu1 %v4631_v17 }
 0x246   :  { %1843 = vmatmul.mubr.bf16.gmra.mrb[60].mxu0 %v4633_v2  ;;  %2036 = vmatmul.mubr.bf16.gmra.mrb[60].mxu1 %v4633_v2 }
 0x247   :  { %2590 = vmatprep.mubr.bf16.mxu0 %v4636_v1  ;;  %2783 = vmatprep.mubr.bf16.mxu1 %v4636_v1 }
 0x2a1   :  { %v1694_v48 = vpop.f32.mrb[0].mxu0  ;;  %v1887_v58 = vpop.f32.mrb[0].mxu1 }
 0x2a2   :  { %v1695_v14 = vadd.f32 %v1694_v48, %v1374_v55  ;;  %v1888_v21 = vadd.f32 %v1887_v58, %v1374_v55  ;;  %v1696_v3 = vpop.f32.mrb[1].mxu0  ;;  %v1889_v43 = vpop.f32.mrb[1].mxu1 }
 0x2a3   :  { %v1697_v50 = vadd.f32 %v1696_v3, %v1374_v55  ;;  %v1890_v8 = vadd.f32 %v1889_v43, %v1374_v55  ;;  %v1698_v24 = vpop.f32.mrb[2].mxu0  ;;  %v1891_v7 = vpop.f32.mrb[2].mxu1 }
 0x2a4   :  { %v1699_v41 = vadd.f32 %v1698_v24, %v1378_v19  ;;  %v1892_v38 = vadd.f32 %v1891_v7, %v1378_v19  ;;  %v1700_v39 = vpop.f32.mrb[3].mxu0  ;;  %v1893_v34 = vpop.f32.mrb[3].mxu1  ;;  %v2046_v35 = vmax.f32 %v1695_v14, 0.0  ;;  %v2048_v56 = vmax.f32 %v1888_v21, 0.0 }
 0x2a5   :  { %v1701_v57 = vadd.f32 %v1700_v39, %v1378_v19  ;;  %v1894_v31 = vadd.f32 %v1893_v34, %v1378_v19  ;;  %v2047_v10 = vmax.f32 %v1697_v50, 0.0  ;;  %v2049_v51 = vmax.f32 %v1890_v8, 0.0 }
 0x2a6   :  { %v2050_v15 = vmax.f32 %v1699_v41, 0.0  ;;  %v2052_v22 = vmax.f32 %v1892_v38, 0.0 }
 0x2a7   :  { %v2051_v63 = vmax.f32 %v1701_v57, 0.0  ;;  %v2053_v9 = vmax.f32 %v1894_v31, 0.0 }
 0x2a8   :  { %v2206_v5 = vpack.c.bf16 %v2050_v15, %v2046_v35  ;;  %v2208_v36 = vpack.c.bf16 %v2052_v22, %v2048_v56 }
 0x2a9   :  { %v2207_v32 = vpack.c.bf16 %v2051_v63, %v2047_v10  ;;  %v2209_v37 = vpack.c.bf16 %v2053_v9, %v2049_v51  ;;  %v1704_v40 = vpop.f32.mrb[4].mxu0  ;;  %v1897_v42 = vpop.f32.mrb[4].mxu1 }
 0x2aa   :  { %v1705_v16 = vadd.f32 %v1704_v40, %v1382_v29  ;;  %v1898_v49 = vadd.f32 %v1897_v42, %v1382_v29  ;;  %v1706_v11 = vpop.f32.mrb[5].mxu0  ;;  %v1899_v25 = vpop.f32.mrb[5].mxu1  ;;  %v4746_v40 = vld [vmem:[%s6811_s2 + $0x8] sm:$0xff] }
 0x2ab   :  { %v1707_v4 = vadd.f32 %v1706_v11, %v1382_v29  ;;  %v1900_v6 = vadd.f32 %v1899_v25, %v1382_v29  ;;  %v1708_v23 = vpop.f32.mrb[6].mxu0  ;;  %v1901_v59 = vpop.f32.mrb[6].mxu1  ;;  %2558 = vmatprep.subr.bf16.mxu0 %v2207_v32  ;;  %2751 = vmatprep.subr.bf16.mxu1 %v2209_v37  ;;  %v4745_v37 = vld [vmem:[%s6811_s2] sm:$0xff] }
 0x2ac   :  { %v1709_v61 = vadd.f32 %v1708_v23, %v1386_v18  ;;  %v1902_v30 = vadd.f32 %v1901_v59, %v1386_v18  ;;  %v1710_v44 = vpop.f32.mrb[7].mxu0  ;;  %v1903_v47 = vpop.f32.mrb[7].mxu1  ;;  %2559 = vmatpush1.bf16.msra.mxu0 %v2206_v5  ;;  %2752 = vmatpush1.bf16.msra.mxu1 %v2208_v36  ;;  %v2054_v53 = vmax.f32 %v1705_v16, 0.0  ;;  %v2056_v27 = vmax.f32 %v1898_v49, 0.0 }
 0x2ad   :  { %v1711_v46 = vadd.f32 %v1710_v44, %v1386_v18  ;;  %v1904_v45 = vadd.f32 %v1903_v47, %v1386_v18  ;;  %v2055_v33 = vmax.f32 %v1707_v4, 0.0  ;;  %v2057_v52 = vmax.f32 %v1900_v6, 0.0  ;;  %v1402_v10 = vpop.permute.xlu0 %1401  ;;  %v1398_v51 = vpop.permute.xlu1 %1397 }
 0x2ae   :  { %v2058_v0 = vmax.f32 %v1709_v61, 0.0  ;;  %v2060_v28 = vmax.f32 %v1902_v30, 0.0  ;;  %v4888_v18 = vmov 2  }
 0x2af   :  { %v2059_v13 = vmax.f32 %v1711_v46, 0.0  ;;  %v2061_v62 = vmax.f32 %v1904_v45, 0.0  ;;  %4574 = vset.pattern.permute.xlu1 %v4888_v18  ;;  %4575 = vset.pattern.permute.xlu0 %v4888_v18  ;;  %v4747_v45 = vld [vmem:[%s6811_s2 + $0x10] sm:$0xff] }
 0x2b0   :  { %v2210_v54 = vpack.c.bf16 %v2058_v0, %v2054_v53  ;;  %v2212_v60 = vpack.c.bf16 %v2060_v28, %v2056_v27  ;;  %2271 = vperm.xlu1 %4574, %v4745_v37   ;;  %2275 = vperm.xlu0 %4575, %v4746_v40   ;;  %v4748_v53 = vld [vmem:[%s6811_s2 + $0x20] sm:$0xff] }
 0x2b1   :  { %v2211_v12 = vpack.c.bf16 %v2059_v13, %v2055_v33  ;;  %v2213_v17 = vpack.c.bf16 %v2061_v62, %v2057_v52  ;;  %v1714_v2 = vpop.f32.mrb[8].mxu0  ;;  %v1907_v19 = vpop.f32.mrb[8].mxu1 }
 0x2b2   :  { %v1715_v55 = vadd.f32 %v1714_v2, %v1390_v26  ;;  %v1908_v48 = vadd.f32 %v1907_v19, %v1390_v26  ;;  %v1716_v58 = vpop.f32.mrb[9].mxu0  ;;  %v1909_v14 = vpop.f32.mrb[9].mxu1 }
 0x2b3   :  { %v1717_v21 = vadd.f32 %v1716_v58, %v1390_v26  ;;  %v1910_v3 = vadd.f32 %v1909_v14, %v1390_v26  ;;  %v1718_v43 = vpop.f32.mrb[10].mxu0  ;;  %v1911_v50 = vpop.f32.mrb[10].mxu1  ;;  %2560 = vmatprep.subr.bf16.mxu0 %v2211_v12  ;;  %2753 = vmatprep.subr.bf16.mxu1 %v2213_v17  ;;  %v4750_v58 = vld [vmem:[%s6811_s2 + $0x30] sm:$0xff] }
 0x2b4   :  { %v1719_v8 = vadd.f32 %v1718_v43, %v1394_v20  ;;  %v1912_v24 = vadd.f32 %v1911_v50, %v1394_v20  ;;  %v1720_v7 = vpop.f32.mrb[11].mxu0  ;;  %v1913_v41 = vpop.f32.mrb[11].mxu1  ;;  %2561 = vmatpush1.bf16.msra.mxu0 %v2210_v54  ;;  %2754 = vmatpush1.bf16.msra.mxu1 %v2212_v60  ;;  %v2062_v38 = vmax.f32 %v1715_v55, 0.0  ;;  %v2064_v57 = vmax.f32 %v1908_v48, 0.0  ;;  %v4749_v48 = vld [vmem:[%s6811_s2 + $0x18] sm:$0xff] }
 0x2b5   :  { %v1721_v39 = vadd.f32 %v1720_v7, %v1394_v20  ;;  %v1914_v34 = vadd.f32 %v1913_v41, %v1394_v20  ;;  %v2063_v31 = vmax.f32 %v1717_v21, 0.0  ;;  %v2065_v56 = vmax.f32 %v1910_v3, 0.0  ;;  %2279 = vperm.xlu1 %4574, %v4747_v45   ;;  %2287 = vperm.xlu0 %4575, %v4748_v53   ;;  %v1410_v26 = vpop.permute.xlu0 %1409  ;;  %v1406_v54 = vpop.permute.xlu1 %1405 }
 0x2b6   :  { %v2066_v1 = vmax.f32 %v1719_v8, 0.0  ;;  %v2068_v35 = vmax.f32 %v1912_v24, 0.0 }
 0x2b7   :  { %v2067_v15 = vmax.f32 %v1721_v39, 0.0  ;;  %v2069_v22 = vmax.f32 %v1914_v34, 0.0 }
 0x2b8   :  { %v2214_v63 = vpack.c.bf16 %v2066_v1, %v2062_v38  ;;  %v2216_v9 = vpack.c.bf16 %v2068_v35, %v2064_v57  ;;  %v4751_v1 = vld [vmem:[%s6811_s2 + $0x28] sm:$0xff]  ;;  %v4752_v35 = vld [vmem:[%s6811_s2 + $0x40] sm:$0xff] }
 0x2b9   :  { %v2215_v29 = vpack.c.bf16 %v2067_v15, %v2063_v31  ;;  %v2217_v5 = vpack.c.bf16 %v2069_v22, %v2065_v56  ;;  %v1724_v36 = vpop.f32.mrb[12].mxu0  ;;  %v1917_v32 = vpop.f32.mrb[12].mxu1  ;;  %2283 = vperm.xlu1 %4574, %v4749_v48   ;;  %2295 = vperm.xlu0 %4575, %v4750_v58  }
 0x2ba   :  { %v1725_v42 = vadd.f32 %v1724_v36, %v1398_v51  ;;  %v1918_v16 = vadd.f32 %v1917_v32, %v1398_v51  ;;  %v1726_v49 = vpop.f32.mrb[13].mxu0  ;;  %v1919_v11 = vpop.f32.mrb[13].mxu1 }
 0x2bb   :  { %v1727_v25 = vadd.f32 %v1726_v49, %v1398_v51  ;;  %v1920_v4 = vadd.f32 %v1919_v11, %v1398_v51  ;;  %v1728_v6 = vpop.f32.mrb[14].mxu0  ;;  %v1921_v23 = vpop.f32.mrb[14].mxu1  ;;  %2562 = vmatprep.subr.bf16.mxu0 %v2215_v29  ;;  %2755 = vmatprep.subr.bf16.mxu1 %v2217_v5  ;;  %v4753_v49 = vld [vmem:[%s6811_s2 + $0x38] sm:$0xff]  ;;  %v4754_v11 = vld [vmem:[%s6811_s2 + $0x50] sm:$0xff] }
 0x2bc   :  { %v1729_v59 = vadd.f32 %v1728_v6, %v1402_v10  ;;  %v1922_v61 = vadd.f32 %v1921_v23, %v1402_v10  ;;  %v1730_v30 = vpop.f32.mrb[15].mxu0  ;;  %v1923_v44 = vpop.f32.mrb[15].mxu1  ;;  %2563 = vmatpush1.bf16.msra.mxu0 %v2214_v63  ;;  %2756 = vmatpush1.bf16.msra.mxu1 %v2216_v9  ;;  %v2070_v27 = vmax.f32 %v1725_v42, 0.0  ;;  %v2072_v0 = vmax.f32 %v1918_v16, 0.0 }
 0x2bd   :  { %v1731_v47 = vadd.f32 %v1730_v30, %v1402_v10  ;;  %v1924_v46 = vadd.f32 %v1923_v44, %v1402_v10  ;;  %v2071_v52 = vmax.f32 %v1727_v25, 0.0  ;;  %v2073_v13 = vmax.f32 %v1920_v4, 0.0  ;;  %2291 = vperm.xlu1 %4574, %v4751_v1   ;;  %2303 = vperm.xlu0 %4575, %v4752_v35   ;;  %v1418_v29 = vpop.permute.xlu0 %1417  ;;  %v1414_v5 = vpop.permute.xlu1 %1413 }
 0x2be   :  { %v2074_v28 = vmax.f32 %v1729_v59, 0.0  ;;  %v2076_v33 = vmax.f32 %v1922_v61, 0.0 }
 0x2bf   :  { %v2075_v62 = vmax.f32 %v1731_v47, 0.0  ;;  %v2077_v20 = vmax.f32 %v1924_v46, 0.0 }
 0x2c0   :  { %v2218_v60 = vpack.c.bf16 %v2074_v28, %v2070_v27  ;;  %v2220_v12 = vpack.c.bf16 %v2076_v33, %v2072_v0  ;;  %v4755_v28 = vld [vmem:[%s6811_s2 + $0x48] sm:$0xff]  ;;  %v4756_v33 = vld [vmem:[%s6811_s2 + $0x60] sm:$0xff] }
 0x2c1   :  { %v2219_v17 = vpack.c.bf16 %v2075_v62, %v2071_v52  ;;  %v2221_v2 = vpack.c.bf16 %v2077_v20, %v2073_v13  ;;  %v1734_v19 = vpop.f32.mrb[16].mxu0  ;;  %v1927_v55 = vpop.f32.mrb[16].mxu1  ;;  %2299 = vperm.xlu1 %4574, %v4753_v49   ;;  %2311 = vperm.xlu0 %4575, %v4754_v11  }
 0x2c2   :  { %v1735_v14 = vadd.f32 %v1734_v19, %v1406_v54  ;;  %v1928_v21 = vadd.f32 %v1927_v55, %v1406_v54  ;;  %v1736_v3 = vpop.f32.mrb[17].mxu0  ;;  %v1929_v43 = vpop.f32.mrb[17].mxu1 }
 0x2c3   :  { %v1737_v50 = vadd.f32 %v1736_v3, %v1406_v54  ;;  %v1930_v8 = vadd.f32 %v1929_v43, %v1406_v54  ;;  %v1738_v24 = vpop.f32.mrb[18].mxu0  ;;  %v1931_v7 = vpop.f32.mrb[18].mxu1  ;;  %2564 = vmatprep.subr.bf16.mxu0 %v2219_v17  ;;  %2757 = vmatprep.subr.bf16.mxu1 %v2221_v2  ;;  %v4757_v3 = vld [vmem:[%s6811_s2 + $0x58] sm:$0xff]  ;;  %v4758_v43 = vld [vmem:[%s6811_s2 + $0x70] sm:$0xff] }
 0x2c4   :  { %v1739_v41 = vadd.f32 %v1738_v24, %v1410_v26  ;;  %v1932_v38 = vadd.f32 %v1931_v7, %v1410_v26  ;;  %v1740_v39 = vpop.f32.mrb[19].mxu0  ;;  %v1933_v34 = vpop.f32.mrb[19].mxu1  ;;  %2565 = vmatpush1.bf16.msra.mxu0 %v2218_v60  ;;  %2758 = vmatpush1.bf16.msra.mxu1 %v2220_v12  ;;  %v2078_v56 = vmax.f32 %v1735_v14, 0.0  ;;  %v2080_v15 = vmax.f32 %v1928_v21, 0.0 }
 0x2c5   :  { %v1741_v57 = vadd.f32 %v1740_v39, %v1410_v26  ;;  %v1934_v31 = vadd.f32 %v1933_v34, %v1410_v26  ;;  %v2079_v51 = vmax.f32 %v1737_v50, 0.0  ;;  %v2081_v63 = vmax.f32 %v1930_v8, 0.0  ;;  %2307 = vperm.xlu1 %4574, %v4755_v28   ;;  %2319 = vperm.xlu0 %4575, %v4756_v33   ;;  %v1426_v17 = vpop.permute.xlu0 %1425  ;;  %v1422_v2 = vpop.permute.xlu1 %1421 }
 0x2c6   :  { %v2082_v22 = vmax.f32 %v1739_v41, 0.0  ;;  %v2084_v10 = vmax.f32 %v1932_v38, 0.0 }
 0x2c7   :  { %v2083_v9 = vmax.f32 %v1741_v57, 0.0  ;;  %v2085_v18 = vmax.f32 %v1934_v31, 0.0 }
 0x2c8   :  { %v2222_v36 = vpack.c.bf16 %v2082_v22, %v2078_v56  ;;  %v2224_v32 = vpack.c.bf16 %v2084_v10, %v2080_v15  ;;  %v4759_v22 = vld [vmem:[%s6811_s2 + $0x68] sm:$0xff]  ;;  %v4760_v10 = vld [vmem:[%s6811_s2 + $0x80] sm:$0xff] }
 0x2c9   :  { %v2223_v37 = vpack.c.bf16 %v2083_v9, %v2079_v51  ;;  %v2225_v40 = vpack.c.bf16 %v2085_v18, %v2081_v63  ;;  %v1744_v42 = vpop.f32.mrb[20].mxu0  ;;  %v1937_v16 = vpop.f32.mrb[20].mxu1  ;;  %2315 = vperm.xlu1 %4574, %v4757_v3   ;;  %2327 = vperm.xlu0 %4575, %v4758_v43  }
 0x2ca   :  { %v1745_v25 = vadd.f32 %v1744_v42, %v1414_v5  ;;  %v1938_v4 = vadd.f32 %v1937_v16, %v1414_v5  ;;  %v1746_v6 = vpop.f32.mrb[21].mxu0  ;;  %v1939_v23 = vpop.f32.mrb[21].mxu1 }
 0x2cb   :  { %v1747_v59 = vadd.f32 %v1746_v6, %v1414_v5  ;;  %v1940_v61 = vadd.f32 %v1939_v23, %v1414_v5  ;;  %v1748_v30 = vpop.f32.mrb[22].mxu0  ;;  %v1941_v44 = vpop.f32.mrb[22].mxu1  ;;  %2566 = vmatprep.subr.bf16.mxu0 %v2223_v37  ;;  %2759 = vmatprep.subr.bf16.mxu1 %v2225_v40  ;;  %v4761_v6 = vld [vmem:[%s6811_s2 + $0x78] sm:$0xff]  ;;  %v4762_v23 = vld [vmem:[%s6811_s2 + $0x90] sm:$0xff] }
 0x2cc   :  { %v1749_v47 = vadd.f32 %v1748_v30, %v1418_v29  ;;  %v1942_v46 = vadd.f32 %v1941_v44, %v1418_v29  ;;  %v1750_v45 = vpop.f32.mrb[23].mxu0  ;;  %v1943_v53 = vpop.f32.mrb[23].mxu1  ;;  %2567 = vmatpush1.bf16.msra.mxu0 %v2222_v36  ;;  %2760 = vmatpush1.bf16.msra.mxu1 %v2224_v32  ;;  %v2086_v52 = vmax.f32 %v1745_v25, 0.0  ;;  %v2088_v13 = vmax.f32 %v1938_v4, 0.0 }
 0x2cd   :  { %v1751_v27 = vadd.f32 %v1750_v45, %v1418_v29  ;;  %v1944_v0 = vadd.f32 %v1943_v53, %v1418_v29  ;;  %v2087_v26 = vmax.f32 %v1747_v59, 0.0  ;;  %v2089_v54 = vmax.f32 %v1940_v61, 0.0  ;;  %2323 = vperm.xlu1 %4574, %v4759_v22   ;;  %2335 = vperm.xlu0 %4575, %v4760_v10   ;;  %v1434_v37 = vpop.permute.xlu0 %1433  ;;  %v1430_v40 = vpop.permute.xlu1 %1429 }
 0x2ce   :  { %v2090_v62 = vmax.f32 %v1749_v47, 0.0  ;;  %v2092_v20 = vmax.f32 %v1942_v46, 0.0 }
 0x2cf   :  { %v2091_v60 = vmax.f32 %v1751_v27, 0.0  ;;  %v2093_v12 = vmax.f32 %v1944_v0, 0.0 }
 0x2d0   :  { %v2226_v19 = vpack.c.bf16 %v2090_v62, %v2086_v52  ;;  %v2228_v55 = vpack.c.bf16 %v2092_v20, %v2088_v13  ;;  %v4763_v62 = vld [vmem:[%s6811_s2 + $0x88] sm:$0xff]  ;;  %v4764_v20 = vld [vmem:[%s6811_s2 + $0xa0] sm:$0xff] }
 0x2d1   :  { %v2227_v48 = vpack.c.bf16 %v2091_v60, %v2087_v26  ;;  %v2229_v58 = vpack.c.bf16 %v2093_v12, %v2089_v54  ;;  %v1754_v14 = vpop.f32.mrb[24].mxu0  ;;  %v1947_v21 = vpop.f32.mrb[24].mxu1  ;;  %2331 = vperm.xlu1 %4574, %v4761_v6   ;;  %2343 = vperm.xlu0 %4575, %v4762_v23  }
 0x2d2   :  { %v1755_v50 = vadd.f32 %v1754_v14, %v1422_v2  ;;  %v1948_v8 = vadd.f32 %v1947_v21, %v1422_v2  ;;  %v1756_v24 = vpop.f32.mrb[25].mxu0  ;;  %v1949_v7 = vpop.f32.mrb[25].mxu1 }
 0x2d3   :  { %v1757_v41 = vadd.f32 %v1756_v24, %v1422_v2  ;;  %v1950_v38 = vadd.f32 %v1949_v7, %v1422_v2  ;;  %v1758_v39 = vpop.f32.mrb[26].mxu0  ;;  %v1951_v34 = vpop.f32.mrb[26].mxu1  ;;  %2568 = vmatprep.subr.bf16.mxu0 %v2227_v48  ;;  %2761 = vmatprep.subr.bf16.mxu1 %v2229_v58  ;;  %v4765_v24 = vld [vmem:[%s6811_s2 + $0x98] sm:$0xff]  ;;  %v4766_v7 = vld [vmem:[%s6811_s2 + $0xb0] sm:$0xff] }
 0x2d4   :  { %v1759_v57 = vadd.f32 %v1758_v39, %v1426_v17  ;;  %v1952_v31 = vadd.f32 %v1951_v34, %v1426_v17  ;;  %v1760_v1 = vpop.f32.mrb[27].mxu0  ;;  %v1953_v35 = vpop.f32.mrb[27].mxu1  ;;  %2569 = vmatpush1.bf16.msra.mxu0 %v2226_v19  ;;  %2762 = vmatpush1.bf16.msra.mxu1 %v2228_v55  ;;  %v2094_v51 = vmax.f32 %v1755_v50, 0.0  ;;  %v2096_v63 = vmax.f32 %v1948_v8, 0.0 }
 0x2d5   :  { %v1761_v56 = vadd.f32 %v1760_v1, %v1426_v17  ;;  %v1954_v15 = vadd.f32 %v1953_v35, %v1426_v17  ;;  %v2095_v29 = vmax.f32 %v1757_v41, 0.0  ;;  %v2097_v5 = vmax.f32 %v1950_v38, 0.0  ;;  %2339 = vperm.xlu1 %4574, %v4763_v62   ;;  %2351 = vperm.xlu0 %4575, %v4764_v20   ;;  %v1442_v48 = vpop.permute.xlu0 %1441  ;;  %v1438_v58 = vpop.permute.xlu1 %1437 }
 0x2d6   :  { %v2098_v9 = vmax.f32 %v1759_v57, 0.0  ;;  %v2100_v18 = vmax.f32 %v1952_v31, 0.0 }
 0x2d7   :  { %v2099_v36 = vmax.f32 %v1761_v56, 0.0  ;;  %v2101_v32 = vmax.f32 %v1954_v15, 0.0 }
 0x2d8   :  { %v2230_v42 = vpack.c.bf16 %v2098_v9, %v2094_v51  ;;  %v2232_v16 = vpack.c.bf16 %v2100_v18, %v2096_v63  ;;  %v4767_v9 = vld [vmem:[%s6811_s2 + $0xa8] sm:$0xff]  ;;  %v4768_v18 = vld [vmem:[%s6811_s2 + $0xc0] sm:$0xff] }
 0x2d9   :  { %v2231_v49 = vpack.c.bf16 %v2099_v36, %v2095_v29  ;;  %v2233_v11 = vpack.c.bf16 %v2101_v32, %v2097_v5  ;;  %v1764_v25 = vpop.f32.mrb[28].mxu0  ;;  %v1957_v4 = vpop.f32.mrb[28].mxu1  ;;  %2347 = vperm.xlu1 %4574, %v4765_v24   ;;  %2359 = vperm.xlu0 %4575, %v4766_v7  }
 0x2da   :  { %v1765_v59 = vadd.f32 %v1764_v25, %v1430_v40  ;;  %v1958_v61 = vadd.f32 %v1957_v4, %v1430_v40  ;;  %v1766_v30 = vpop.f32.mrb[29].mxu0  ;;  %v1959_v44 = vpop.f32.mrb[29].mxu1 }
 0x2db   :  { %v1767_v47 = vadd.f32 %v1766_v30, %v1430_v40  ;;  %v1960_v46 = vadd.f32 %v1959_v44, %v1430_v40  ;;  %v1768_v45 = vpop.f32.mrb[30].mxu0  ;;  %v1961_v53 = vpop.f32.mrb[30].mxu1  ;;  %2570 = vmatprep.subr.bf16.mxu0 %v2231_v49  ;;  %2763 = vmatprep.subr.bf16.mxu1 %v2233_v11  ;;  %v4769_v30 = vld [vmem:[%s6811_s2 + $0xb8] sm:$0xff]  ;;  %v4770_v44 = vld [vmem:[%s6811_s2 + $0xd0] sm:$0xff] }
 0x2dc   :  { %v1769_v27 = vadd.f32 %v1768_v45, %v1434_v37  ;;  %v1962_v0 = vadd.f32 %v1961_v53, %v1434_v37  ;;  %v1770_v28 = vpop.f32.mrb[31].mxu0  ;;  %v1963_v33 = vpop.f32.mrb[31].mxu1  ;;  %2571 = vmatpush1.bf16.msra.mxu0 %v2230_v42  ;;  %2764 = vmatpush1.bf16.msra.mxu1 %v2232_v16  ;;  %v2102_v26 = vmax.f32 %v1765_v59, 0.0  ;;  %v2104_v54 = vmax.f32 %v1958_v61, 0.0 }
 0x2dd   :  { %v1771_v52 = vadd.f32 %v1770_v28, %v1434_v37  ;;  %v1964_v13 = vadd.f32 %v1963_v33, %v1434_v37  ;;  %v2103_v17 = vmax.f32 %v1767_v47, 0.0  ;;  %v2105_v2 = vmax.f32 %v1960_v46, 0.0  ;;  %2355 = vperm.xlu1 %4574, %v4767_v9   ;;  %2367 = vperm.xlu0 %4575, %v4768_v18   ;;  %v1450_v49 = vpop.permute.xlu0 %1449  ;;  %v1446_v11 = vpop.permute.xlu1 %1445 }
 0x2de   :  { %v2106_v60 = vmax.f32 %v1769_v27, 0.0  ;;  %v2108_v12 = vmax.f32 %v1962_v0, 0.0 }
 0x2df   :  { %v2107_v19 = vmax.f32 %v1771_v52, 0.0  ;;  %v2109_v55 = vmax.f32 %v1964_v13, 0.0 }
 0x2e0   :  { %v2234_v14 = vpack.c.bf16 %v2106_v60, %v2102_v26  ;;  %v2236_v21 = vpack.c.bf16 %v2108_v12, %v2104_v54  ;;  %v4771_v60 = vld [vmem:[%s6811_s2 + $0xc8] sm:$0xff]  ;;  %v4772_v12 = vld [vmem:[%s6811_s2 + $0xe0] sm:$0xff] }
 0x2e1   :  { %v2235_v3 = vpack.c.bf16 %v2107_v19, %v2103_v17  ;;  %v2237_v43 = vpack.c.bf16 %v2109_v55, %v2105_v2  ;;  %v1774_v50 = vpop.f32.mrb[32].mxu0  ;;  %v1967_v8 = vpop.f32.mrb[32].mxu1  ;;  %2363 = vperm.xlu1 %4574, %v4769_v30   ;;  %2375 = vperm.xlu0 %4575, %v4770_v44  }
 0x2e2   :  { %v1775_v41 = vadd.f32 %v1774_v50, %v1438_v58  ;;  %v1968_v38 = vadd.f32 %v1967_v8, %v1438_v58  ;;  %v1776_v39 = vpop.f32.mrb[33].mxu0  ;;  %v1969_v34 = vpop.f32.mrb[33].mxu1 }
 0x2e3   :  { %v1777_v57 = vadd.f32 %v1776_v39, %v1438_v58  ;;  %v1970_v31 = vadd.f32 %v1969_v34, %v1438_v58  ;;  %v1778_v1 = vpop.f32.mrb[34].mxu0  ;;  %v1971_v35 = vpop.f32.mrb[34].mxu1  ;;  %2572 = vmatprep.subr.bf16.mxu0 %v2235_v3  ;;  %2765 = vmatprep.subr.bf16.mxu1 %v2237_v43  ;;  %v4773_v39 = vld [vmem:[%s6811_s2 + $0xd8] sm:$0xff]  ;;  %v4774_v34 = vld [vmem:[%s6811_s2 + $0xf0] sm:$0xff] }
 0x2e4   :  { %v1779_v56 = vadd.f32 %v1778_v1, %v1442_v48  ;;  %v1972_v15 = vadd.f32 %v1971_v35, %v1442_v48  ;;  %v1780_v22 = vpop.f32.mrb[35].mxu0  ;;  %v1973_v10 = vpop.f32.mrb[35].mxu1  ;;  %2573 = vmatpush1.bf16.msra.mxu0 %v2234_v14  ;;  %2766 = vmatpush1.bf16.msra.mxu1 %v2236_v21  ;;  %v2110_v29 = vmax.f32 %v1775_v41, 0.0  ;;  %v2112_v5 = vmax.f32 %v1968_v38, 0.0 }
 0x2e5   :  { %v1781_v51 = vadd.f32 %v1780_v22, %v1442_v48  ;;  %v1974_v63 = vadd.f32 %v1973_v10, %v1442_v48  ;;  %v2111_v37 = vmax.f32 %v1777_v57, 0.0  ;;  %v2113_v40 = vmax.f32 %v1970_v31, 0.0  ;;  %2371 = vperm.xlu1 %4574, %v4771_v60   ;;  %2383 = vperm.xlu0 %4575, %v4772_v12   ;;  %v1458_v3 = vpop.permute.xlu0 %1457  ;;  %v1454_v43 = vpop.permute.xlu1 %1453 }
 0x2e6   :  { %v2114_v36 = vmax.f32 %v1779_v56, 0.0  ;;  %v2116_v32 = vmax.f32 %v1972_v15, 0.0 }
 0x2e7   :  { %v2115_v42 = vmax.f32 %v1781_v51, 0.0  ;;  %v2117_v16 = vmax.f32 %v1974_v63, 0.0 }
 0x2e8   :  { %v2238_v25 = vpack.c.bf16 %v2114_v36, %v2110_v29  ;;  %v2240_v4 = vpack.c.bf16 %v2116_v32, %v2112_v5  ;;  %v4775_v36 = vld [vmem:[%s6811_s2 + $0xe8] sm:$0xff] }
 0x2e9   :  { %v2239_v6 = vpack.c.bf16 %v2115_v42, %v2111_v37  ;;  %v2241_v23 = vpack.c.bf16 %v2117_v16, %v2113_v40  ;;  %v1784_v59 = vpop.f32.mrb[36].mxu0  ;;  %v1977_v61 = vpop.f32.mrb[36].mxu1  ;;  %2379 = vperm.xlu1 %4574, %v4773_v39   ;;  %2391 = vperm.xlu0 %4575, %v4774_v34  }
 0x2ea   :  { %v1785_v47 = vadd.f32 %v1784_v59, %v1446_v11  ;;  %v1978_v46 = vadd.f32 %v1977_v61, %v1446_v11  ;;  %v1786_v45 = vpop.f32.mrb[37].mxu0  ;;  %v1979_v53 = vpop.f32.mrb[37].mxu1 }
 0x2eb   :  { %v1787_v27 = vadd.f32 %v1786_v45, %v1446_v11  ;;  %v1980_v0 = vadd.f32 %v1979_v53, %v1446_v11  ;;  %v1788_v28 = vpop.f32.mrb[38].mxu0  ;;  %v1981_v33 = vpop.f32.mrb[38].mxu1  ;;  %2574 = vmatprep.subr.bf16.mxu0 %v2239_v6  ;;  %2767 = vmatprep.subr.bf16.mxu1 %v2241_v23 }
 0x2ec   :  { %v1789_v52 = vadd.f32 %v1788_v28, %v1450_v49  ;;  %v1982_v13 = vadd.f32 %v1981_v33, %v1450_v49  ;;  %v1790_v62 = vpop.f32.mrb[39].mxu0  ;;  %v1983_v20 = vpop.f32.mrb[39].mxu1  ;;  %2575 = vmatpush1.bf16.msra.mxu0 %v2238_v25  ;;  %2768 = vmatpush1.bf16.msra.mxu1 %v2240_v4  ;;  %v2118_v17 = vmax.f32 %v1785_v47, 0.0  ;;  %v2120_v2 = vmax.f32 %v1978_v46, 0.0  ;;  %v4776_v46 = vld [vmem:[%s6811_s2 + $0xf8] sm:$0xff] }
 0x2ed   :  { %v1791_v26 = vadd.f32 %v1790_v62, %v1450_v49  ;;  %v1984_v54 = vadd.f32 %v1983_v20, %v1450_v49  ;;  %v2119_v48 = vmax.f32 %v1787_v27, 0.0  ;;  %v2121_v58 = vmax.f32 %v1980_v0, 0.0  ;;  %2387 = vperm.xlu1 %4574, %v4775_v36   ;;  %v1466_v4 = vpop.permute.xlu0 %1465  ;;  %v1462_v6 = vpop.permute.xlu1 %1461 }
 0x2ee   :  { %v2122_v19 = vmax.f32 %v1789_v52, 0.0  ;;  %v2124_v55 = vmax.f32 %v1982_v13, 0.0 }
 0x2ef   :  { %v2123_v14 = vmax.f32 %v1791_v26, 0.0  ;;  %v2125_v21 = vmax.f32 %v1984_v54, 0.0 }
 0x2f0   :  { %v2242_v50 = vpack.c.bf16 %v2122_v19, %v2118_v17  ;;  %v2244_v8 = vpack.c.bf16 %v2124_v55, %v2120_v2 }
 0x2f1   :  { %v2243_v24 = vpack.c.bf16 %v2123_v14, %v2119_v48  ;;  %v2245_v7 = vpack.c.bf16 %v2125_v21, %v2121_v58  ;;  %v1794_v41 = vpop.f32.mrb[40].mxu0  ;;  %v1987_v38 = vpop.f32.mrb[40].mxu1  ;;  %2395 = vperm.xlu1 %4574, %v4776_v46  }
 0x2f2   :  { %v1795_v57 = vadd.f32 %v1794_v41, %v1454_v43  ;;  %v1988_v31 = vadd.f32 %v1987_v38, %v1454_v43  ;;  %v1796_v1 = vpop.f32.mrb[41].mxu0  ;;  %v1989_v35 = vpop.f32.mrb[41].mxu1 }
 0x2f3   :  { %v1797_v56 = vadd.f32 %v1796_v1, %v1454_v43  ;;  %v1990_v15 = vadd.f32 %v1989_v35, %v1454_v43  ;;  %v1798_v22 = vpop.f32.mrb[42].mxu0  ;;  %v1991_v10 = vpop.f32.mrb[42].mxu1  ;;  %2576 = vmatprep.subr.bf16.mxu0 %v2243_v24  ;;  %2769 = vmatprep.subr.bf16.mxu1 %v2245_v7 }
 0x2f4   :  { %v1799_v51 = vadd.f32 %v1798_v22, %v1458_v3  ;;  %v1992_v63 = vadd.f32 %v1991_v10, %v1458_v3  ;;  %v1800_v9 = vpop.f32.mrb[43].mxu0  ;;  %v1993_v18 = vpop.f32.mrb[43].mxu1  ;;  %2577 = vmatpush1.bf16.msra.mxu0 %v2242_v50  ;;  %2770 = vmatpush1.bf16.msra.mxu1 %v2244_v8  ;;  %v2126_v32 = vmax.f32 %v1795_v57, 0.0  ;;  %v2128_v37 = vmax.f32 %v1988_v31, 0.0 }
 0x2f5   :  { %v1801_v29 = vadd.f32 %v1800_v9, %v1458_v3  ;;  %v1994_v5 = vadd.f32 %v1993_v18, %v1458_v3  ;;  %v2127_v16 = vmax.f32 %v1797_v56, 0.0  ;;  %v2129_v49 = vmax.f32 %v1990_v15, 0.0  ;;  %v1474_v3 = vpop.permute.xlu0 %1473  ;;  %v1470_v43 = vpop.permute.xlu1 %1469 }
 0x2f6   :  { %v2130_v40 = vmax.f32 %v1799_v51, 0.0  ;;  %v2132_v42 = vmax.f32 %v1992_v63, 0.0 }
 0x2f7   :  { %v2131_v11 = vmax.f32 %v1801_v29, 0.0  ;;  %v2133_v25 = vmax.f32 %v1994_v5, 0.0 }
 0x2f8   :  { %v2246_v23 = vpack.c.bf16 %v2130_v40, %v2126_v32  ;;  %v2248_v59 = vpack.c.bf16 %v2132_v42, %v2128_v37 }
 0x2f9   :  { %v2247_v61 = vpack.c.bf16 %v2131_v11, %v2127_v16  ;;  %v2249_v30 = vpack.c.bf16 %v2133_v25, %v2129_v49  ;;  %v1804_v44 = vpop.f32.mrb[44].mxu0  ;;  %v1997_v47 = vpop.f32.mrb[44].mxu1 }
 0x2fa   :  { %v1805_v45 = vadd.f32 %v1804_v44, %v1462_v6  ;;  %v1998_v53 = vadd.f32 %v1997_v47, %v1462_v6  ;;  %v1806_v27 = vpop.f32.mrb[45].mxu0  ;;  %v1999_v0 = vpop.f32.mrb[45].mxu1 }
 0x2fb   :  { %v1807_v28 = vadd.f32 %v1806_v27, %v1462_v6  ;;  %v2000_v33 = vadd.f32 %v1999_v0, %v1462_v6  ;;  %v1808_v52 = vpop.f32.mrb[46].mxu0  ;;  %v2001_v13 = vpop.f32.mrb[46].mxu1  ;;  %2578 = vmatprep.subr.bf16.mxu0 %v2247_v61  ;;  %2771 = vmatprep.subr.bf16.mxu1 %v2249_v30 }
 0x2fc   :  { %v1809_v62 = vadd.f32 %v1808_v52, %v1466_v4  ;;  %v2002_v20 = vadd.f32 %v2001_v13, %v1466_v4  ;;  %v1810_v26 = vpop.f32.mrb[47].mxu0  ;;  %v2003_v54 = vpop.f32.mrb[47].mxu1  ;;  %2579 = vmatpush1.bf16.msra.mxu0 %v2246_v23  ;;  %2772 = vmatpush1.bf16.msra.mxu1 %v2248_v59  ;;  %v2134_v17 = vmax.f32 %v1805_v45, 0.0  ;;  %v2136_v2 = vmax.f32 %v1998_v53, 0.0 }
 0x2fd   :  { %v1811_v60 = vadd.f32 %v1810_v26, %v1466_v4  ;;  %v2004_v12 = vadd.f32 %v2003_v54, %v1466_v4  ;;  %v2135_v48 = vmax.f32 %v1807_v28, 0.0  ;;  %v2137_v58 = vmax.f32 %v2000_v33, 0.0  ;;  %v1482_v49 = vpop.permute.xlu0 %1481  ;;  %v1478_v11 = vpop.permute.xlu1 %1477 }
 0x2fe   :  { %v2138_v19 = vmax.f32 %v1809_v62, 0.0  ;;  %v2140_v55 = vmax.f32 %v2002_v20, 0.0 }
 0x2ff   :  { %v2139_v14 = vmax.f32 %v1811_v60, 0.0  ;;  %v2141_v21 = vmax.f32 %v2004_v12, 0.0 }
 0x300   :  { %v2250_v50 = vpack.c.bf16 %v2138_v19, %v2134_v17  ;;  %v2252_v8 = vpack.c.bf16 %v2140_v55, %v2136_v2 }
 0x301   :  { %v2251_v24 = vpack.c.bf16 %v2139_v14, %v2135_v48  ;;  %v2253_v7 = vpack.c.bf16 %v2141_v21, %v2137_v58  ;;  %v1814_v41 = vpop.f32.mrb[48].mxu0  ;;  %v2007_v38 = vpop.f32.mrb[48].mxu1 }
 0x302   :  { %v1815_v39 = vadd.f32 %v1814_v41, %v1470_v43  ;;  %v2008_v34 = vadd.f32 %v2007_v38, %v1470_v43  ;;  %v1816_v57 = vpop.f32.mrb[49].mxu0  ;;  %v2009_v31 = vpop.f32.mrb[49].mxu1 }
 0x303   :  { %v1817_v1 = vadd.f32 %v1816_v57, %v1470_v43  ;;  %v2010_v35 = vadd.f32 %v2009_v31, %v1470_v43  ;;  %v1818_v56 = vpop.f32.mrb[50].mxu0  ;;  %v2011_v15 = vpop.f32.mrb[50].mxu1  ;;  %2580 = vmatprep.subr.bf16.mxu0 %v2251_v24  ;;  %2773 = vmatprep.subr.bf16.mxu1 %v2253_v7 }
 0x304   :  { %v1819_v22 = vadd.f32 %v1818_v56, %v1474_v3  ;;  %v2012_v10 = vadd.f32 %v2011_v15, %v1474_v3  ;;  %v1820_v51 = vpop.f32.mrb[51].mxu0  ;;  %v2013_v63 = vpop.f32.mrb[51].mxu1  ;;  %2581 = vmatpush1.bf16.msra.mxu0 %v2250_v50  ;;  %2774 = vmatpush1.bf16.msra.mxu1 %v2252_v8  ;;  %v2142_v29 = vmax.f32 %v1815_v39, 0.0  ;;  %v2144_v5 = vmax.f32 %v2008_v34, 0.0 }
 0x305   :  { %v1821_v9 = vadd.f32 %v1820_v51, %v1474_v3  ;;  %v2014_v18 = vadd.f32 %v2013_v63, %v1474_v3  ;;  %v2143_v37 = vmax.f32 %v1817_v1, 0.0  ;;  %v2145_v40 = vmax.f32 %v2010_v35, 0.0  ;;  %v1490_v48 = vpop.permute.xlu0 %1489  ;;  %v1486_v58 = vpop.permute.xlu1 %1485 }
 0x306   :  { %v2146_v36 = vmax.f32 %v1819_v22, 0.0  ;;  %v2148_v32 = vmax.f32 %v2012_v10, 0.0 }
 0x307   :  { %v2147_v42 = vmax.f32 %v1821_v9, 0.0  ;;  %v2149_v16 = vmax.f32 %v2014_v18, 0.0 }
 0x308   :  { %v2254_v25 = vpack.c.bf16 %v2146_v36, %v2142_v29  ;;  %v2256_v4 = vpack.c.bf16 %v2148_v32, %v2144_v5 }
 0x309   :  { %v2255_v6 = vpack.c.bf16 %v2147_v42, %v2143_v37  ;;  %v2257_v23 = vpack.c.bf16 %v2149_v16, %v2145_v40  ;;  %v1824_v59 = vpop.f32.mrb[52].mxu0  ;;  %v2017_v61 = vpop.f32.mrb[52].mxu1 }
 0x30a   :  { %v1825_v30 = vadd.f32 %v1824_v59, %v1478_v11  ;;  %v2018_v44 = vadd.f32 %v2017_v61, %v1478_v11  ;;  %v1826_v47 = vpop.f32.mrb[53].mxu0  ;;  %v2019_v46 = vpop.f32.mrb[53].mxu1 }
 0x30b   :  { %v1827_v45 = vadd.f32 %v1826_v47, %v1478_v11  ;;  %v2020_v53 = vadd.f32 %v2019_v46, %v1478_v11  ;;  %v1828_v27 = vpop.f32.mrb[54].mxu0  ;;  %v2021_v0 = vpop.f32.mrb[54].mxu1  ;;  %2582 = vmatprep.subr.bf16.mxu0 %v2255_v6  ;;  %2775 = vmatprep.subr.bf16.mxu1 %v2257_v23 }
 0x30c   :  { %v1829_v28 = vadd.f32 %v1828_v27, %v1482_v49  ;;  %v2022_v33 = vadd.f32 %v2021_v0, %v1482_v49  ;;  %v1830_v52 = vpop.f32.mrb[55].mxu0  ;;  %v2023_v13 = vpop.f32.mrb[55].mxu1  ;;  %2583 = vmatpush1.bf16.msra.mxu0 %v2254_v25  ;;  %2776 = vmatpush1.bf16.msra.mxu1 %v2256_v4  ;;  %v2150_v26 = vmax.f32 %v1825_v30, 0.0  ;;  %v2152_v54 = vmax.f32 %v2018_v44, 0.0 }
 0x30d   :  { %v1831_v62 = vadd.f32 %v1830_v52, %v1482_v49  ;;  %v2024_v20 = vadd.f32 %v2023_v13, %v1482_v49  ;;  %v2151_v17 = vmax.f32 %v1827_v45, 0.0  ;;  %v2153_v2 = vmax.f32 %v2020_v53, 0.0  ;;  %v1498_v37 = vpop.permute.xlu0 %1497  ;;  %v1494_v40 = vpop.permute.xlu1 %1493 }
 0x30e   :  { %v2154_v60 = vmax.f32 %v1829_v28, 0.0  ;;  %v2156_v12 = vmax.f32 %v2022_v33, 0.0 }
 0x30f   :  { %v2155_v19 = vmax.f32 %v1831_v62, 0.0  ;;  %v2157_v55 = vmax.f32 %v2024_v20, 0.0 }
 0x310   :  { %v2258_v14 = vpack.c.bf16 %v2154_v60, %v2150_v26  ;;  %v2260_v21 = vpack.c.bf16 %v2156_v12, %v2152_v54 }
 0x311   :  { %v2259_v3 = vpack.c.bf16 %v2155_v19, %v2151_v17  ;;  %v2261_v43 = vpack.c.bf16 %v2157_v55, %v2153_v2  ;;  %v1834_v50 = vpop.f32.mrb[56].mxu0  ;;  %v2027_v8 = vpop.f32.mrb[56].mxu1 }
 0x312   :  { %v1835_v24 = vadd.f32 %v1834_v50, %v1486_v58  ;;  %v2028_v7 = vadd.f32 %v2027_v8, %v1486_v58  ;;  %v1836_v41 = vpop.f32.mrb[57].mxu0  ;;  %v2029_v38 = vpop.f32.mrb[57].mxu1  ;;  %v4645_v50 = vld [vmem:[%s6813_s4 + $0x30] ss:$8 sps:$4 sm:$0xff]   ;;  %v4646_v8 = vld [vmem:[%s6813_s4 + $0x44] ss:$8 sps:$4 sm:$0xff]  }
 0x313   :  { %v1837_v39 = vadd.f32 %v1836_v41, %v1486_v58  ;;  %v2030_v34 = vadd.f32 %v2029_v38, %v1486_v58  ;;  %v1838_v57 = vpop.f32.mrb[58].mxu0  ;;  %v2031_v31 = vpop.f32.mrb[58].mxu1  ;;  %2584 = vmatprep.subr.bf16.mxu0 %v2259_v3  ;;  %2777 = vmatprep.subr.bf16.mxu1 %v2261_v43  ;;  %v4637_v58 = vld [vmem:[%s6813_s4 + $0x14] ss:$8 sps:$4 sm:$0xff]   ;;  %v4642_v3 = vld [vmem:[%s6813_s4 + $0x20] ss:$8 sps:$4 sm:$0xff]  }
 0x314   :  { %v1839_v1 = vadd.f32 %v1838_v57, %v1490_v48  ;;  %v2032_v35 = vadd.f32 %v2031_v31, %v1490_v48  ;;  %v1840_v56 = vpop.f32.mrb[59].mxu0  ;;  %v2033_v15 = vpop.f32.mrb[59].mxu1  ;;  %2585 = vmatpush1.bf16.msra.mxu0 %v2258_v14  ;;  %2778 = vmatpush1.bf16.msra.mxu1 %v2260_v21  ;;  %v2158_v51 = vmax.f32 %v1835_v24, 0.0  ;;  %v2160_v63 = vmax.f32 %v2028_v7, 0.0  ;;  %v4639_v14 = vld [vmem:[%s6813_s4 + $0x10] ss:$8 sps:$4 sm:$0xff]  }
 0x315   :  { %v1841_v22 = vadd.f32 %v1840_v56, %v1490_v48  ;;  %v2034_v10 = vadd.f32 %v2033_v15, %v1490_v48  ;;  %v2159_v29 = vmax.f32 %v1837_v39, 0.0  ;;  %v2161_v5 = vmax.f32 %v2030_v34, 0.0  ;;  %v4634_v48 = vld [vmem:[%s6813_s4] ss:$8 sps:$4 sm:$0xff]   ;;  %v4640_v21 = vld [vmem:[%s6813_s4 + $0x24] ss:$8 sps:$4 sm:$0xff]  }
 0x316   :  { %v2162_v9 = vmax.f32 %v1839_v1, 0.0  ;;  %v2164_v18 = vmax.f32 %v2032_v35, 0.0  ;;  %v4643_v43 = vld [vmem:[%s6813_s4 + $0x34] ss:$8 sps:$4 sm:$0xff]   ;;  %v4648_v24 = vld [vmem:[%s6813_s4 + $0x40] ss:$8 sps:$4 sm:$0xff]  }
 0x317   :  { %v2163_v36 = vmax.f32 %v1841_v22, 0.0  ;;  %v2165_v32 = vmax.f32 %v2034_v10, 0.0  ;;  %v4649_v7 = vld [vmem:[%s6813_s4 + $0x54] ss:$8 sps:$4 sm:$0xff]   ;;  %v4651_v41 = vld [vmem:[%s6813_s4 + $0x50] ss:$8 sps:$4 sm:$0xff]  }
 0x318   :  { %v2262_v42 = vpack.c.bf16 %v2162_v9, %v2158_v51  ;;  %v2264_v16 = vpack.c.bf16 %v2164_v18, %v2160_v63  ;;  %v4652_v38 = vld [vmem:[%s6813_s4 + $0x64] ss:$8 sps:$4 sm:$0xff]   ;;  %v4654_v39 = vld [vmem:[%s6813_s4 + $0x60] ss:$8 sps:$4 sm:$0xff]   ;;  %v4655_v34 = vld [vmem:[%s6813_s4 + $0x74] ss:$8 sps:$4 sm:$0xff]  }
 0x319   :  { %v2263_v49 = vpack.c.bf16 %v2163_v36, %v2159_v29  ;;  %v2265_v11 = vpack.c.bf16 %v2165_v32, %v2161_v5  ;;  %v1844_v25 = vpop.f32.mrb[60].mxu0  ;;  %v2037_v4 = vpop.f32.mrb[60].mxu1  ;;  %v4657_v57 = vld [vmem:[%s6813_s4 + $0x70] ss:$8 sps:$4 sm:$0xff]   ;;  %v4658_v31 = vld [vmem:[%s6813_s4 + $0x84] ss:$8 sps:$4 sm:$0xff]  }
 0x31a   :  { %v1845_v6 = vadd.f32 %v1844_v25, %v1494_v40  ;;  %v2038_v23 = vadd.f32 %v2037_v4, %v1494_v40  ;;  %v1846_v59 = vpop.f32.mrb[61].mxu0  ;;  %v2039_v61 = vpop.f32.mrb[61].mxu1  ;;  %v4660_v1 = vld [vmem:[%s6813_s4 + $0x80] ss:$8 sps:$4 sm:$0xff]   ;;  %v4661_v35 = vld [vmem:[%s6813_s4 + $0x94] ss:$8 sps:$4 sm:$0xff]  }
 0x31b   :  { %v1847_v30 = vadd.f32 %v1846_v59, %v1494_v40  ;;  %v2040_v44 = vadd.f32 %v2039_v61, %v1494_v40  ;;  %v1848_v47 = vpop.f32.mrb[62].mxu0  ;;  %v2041_v46 = vpop.f32.mrb[62].mxu1  ;;  %2586 = vmatprep.subr.bf16.mxu0 %v2263_v49  ;;  %2779 = vmatprep.subr.bf16.mxu1 %v2265_v11  ;;  %v4663_v56 = vld [vmem:[%s6813_s4 + $0x90] ss:$8 sps:$4 sm:$0xff]   ;;  %v4664_v15 = vld [vmem:[%s6813_s4 + $0xa4] ss:$8 sps:$4 sm:$0xff]  }
 0x31c   :  { %v1849_v45 = vadd.f32 %v1848_v47, %v1498_v37  ;;  %v2042_v53 = vadd.f32 %v2041_v46, %v1498_v37  ;;  %v1850_v27 = vpop.f32.mrb[63].mxu0  ;;  %v2043_v0 = vpop.f32.mrb[63].mxu1  ;;  %2587 = vmatpush1.bf16.msra.mxu0 %v2262_v42  ;;  %2780 = vmatpush1.bf16.msra.mxu1 %v2264_v16  ;;  %v2166_v52 = vmax.f32 %v1845_v6, 0.0  ;;  %v2168_v13 = vmax.f32 %v2038_v23, 0.0  ;;  %v4666_v22 = vld [vmem:[%s6813_s4 + $0xa0] ss:$8 sps:$4 sm:$0xff]  }
 0x31d   :  { %v1851_v28 = vadd.f32 %v1850_v27, %v1498_v37  ;;  %v2044_v33 = vadd.f32 %v2043_v0, %v1498_v37  ;;  %v2167_v26 = vmax.f32 %v1847_v30, 0.0  ;;  %v2169_v54 = vmax.f32 %v2040_v44, 0.0  ;;  %v4667_v10 = vld [vmem:[%s6813_s4 + $0xb4] ss:$8 sps:$4 sm:$0xff]   ;;  %v4669_v51 = vld [vmem:[%s6813_s4 + $0xb0] ss:$8 sps:$4 sm:$0xff]  }
 0x31e   :  { %v2170_v62 = vmax.f32 %v1849_v45, 0.0  ;;  %v2172_v20 = vmax.f32 %v2042_v53, 0.0  ;;  %v4670_v63 = vld [vmem:[%s6813_s4 + $0xc4] ss:$8 sps:$4 sm:$0xff]   ;;  %v4672_v9 = vld [vmem:[%s6813_s4 + $0xc0] ss:$8 sps:$4 sm:$0xff]  }
 0x31f   :  { %v2171_v60 = vmax.f32 %v1851_v28, 0.0  ;;  %v2173_v12 = vmax.f32 %v2044_v33, 0.0  ;;  %v4673_v18 = vld [vmem:[%s6813_s4 + $0xd4] ss:$8 sps:$4 sm:$0xff]   ;;  %v4675_v29 = vld [vmem:[%s6813_s4 + $0xd0] ss:$8 sps:$4 sm:$0xff]  }
 0x320   :  { %v2266_v17 = vpack.c.bf16 %v2170_v62, %v2166_v52  ;;  %v2268_v2 = vpack.c.bf16 %v2172_v20, %v2168_v13  ;;  %v4676_v5 = vld [vmem:[%s6813_s4 + $0xe4] ss:$8 sps:$4 sm:$0xff]   ;;  %v4678_v36 = vld [vmem:[%s6813_s4 + $0xe0] ss:$8 sps:$4 sm:$0xff]   ;;  %v4679_v32 = vld [vmem:[%s6813_s4 + $0xf4] ss:$8 sps:$4 sm:$0xff]  }
 0x321   :  { %v2267_v19 = vpack.c.bf16 %v2171_v60, %v2167_v26  ;;  %v2269_v55 = vpack.c.bf16 %v2173_v12, %v2169_v54  ;;  %v4681_v37 = vld [vmem:[%s6813_s4 + $0xf0] ss:$8 sps:$4 sm:$0xff]   ;;  %v4684_v28 = vld [vmem:[#allocation5 + $0x4] ss:$8 sps:$4 sm:$0xff]  }
 0x323   :  { %2588 = vmatprep.subr.bf16.mxu0 %v2267_v19  ;;  %2781 = vmatprep.subr.bf16.mxu1 %v2269_v55 }
 0x324   :  { %2589 = vmatpush1.bf16.msra.mxu0 %v2266_v17  ;;  %2782 = vmatpush1.bf16.msra.mxu1 %v2268_v2 }
 0x327   :  { %2591 = vmatmul.mubr.bf16.vlgmr.msra.gmra.mrb[64].mxu0 %v4634_v48  ;;  %2784 = vmatmul.mubr.bf16.vlgmr.msra.gmra.mrb[64].mxu1 %v4634_v48 }
 0x328   :  { %2600 = vmatprep.mubr.bf16.mxu0 %v4637_v58  ;;  %2793 = vmatprep.mubr.bf16.mxu1 %v4637_v58 }
 0x32f   :  { %2601 = vmatmul.mubr.bf16.gmra.mrb[68].mxu0 %v4639_v14  ;;  %2794 = vmatmul.mubr.bf16.gmra.mrb[68].mxu1 %v4639_v14  ;;  %v2272_v40 = vpop.permute.xlu1 %2271  ;;  %v2276_v16 = vpop.permute.xlu0 %2275 }
 0x330   :  { %2610 = vmatprep.mubr.bf16.mxu0 %v4640_v21  ;;  %2803 = vmatprep.mubr.bf16.mxu1 %v4640_v21 }
 0x334   :  { %v2280_v42 = vpop.permute.xlu1 %2279 }
 0x337   :  { %2611 = vmatmul.mubr.bf16.gmra.mrb[72].mxu0 %v4642_v3  ;;  %2804 = vmatmul.mubr.bf16.gmra.mrb[72].mxu1 %v4642_v3 }
 0x338   :  { %2620 = vmatprep.mubr.bf16.mxu0 %v4643_v43  ;;  %2813 = vmatprep.mubr.bf16.mxu1 %v4643_v43  ;;  %v2284_v12 = vpop.permute.xlu1 %2283 }
 0x33f   :  { %2621 = vmatmul.mubr.bf16.gmra.mrb[76].mxu0 %v4645_v50  ;;  %2814 = vmatmul.mubr.bf16.gmra.mrb[76].mxu1 %v4645_v50 }
 0x340   :  { %2630 = vmatprep.mubr.bf16.mxu0 %v4646_v8  ;;  %2823 = vmatprep.mubr.bf16.mxu1 %v4646_v8 }
 0x347   :  { %2631 = vmatmul.mubr.bf16.gmra.mrb[80].mxu0 %v4648_v24  ;;  %2824 = vmatmul.mubr.bf16.gmra.mrb[80].mxu1 %v4648_v24 }
 0x348   :  { %2640 = vmatprep.mubr.bf16.mxu0 %v4649_v7  ;;  %2833 = vmatprep.mubr.bf16.mxu1 %v4649_v7 }
 0x34f   :  { %2641 = vmatmul.mubr.bf16.gmra.mrb[84].mxu0 %v4651_v41  ;;  %2834 = vmatmul.mubr.bf16.gmra.mrb[84].mxu1 %v4651_v41 }
 0x350   :  { %2650 = vmatprep.mubr.bf16.mxu0 %v4652_v38  ;;  %2843 = vmatprep.mubr.bf16.mxu1 %v4652_v38 }
 0x357   :  { %2651 = vmatmul.mubr.bf16.gmra.mrb[88].mxu0 %v4654_v39  ;;  %2844 = vmatmul.mubr.bf16.gmra.mrb[88].mxu1 %v4654_v39 }
 0x358   :  { %2660 = vmatprep.mubr.bf16.mxu0 %v4655_v34  ;;  %2853 = vmatprep.mubr.bf16.mxu1 %v4655_v34 }
 0x35f   :  { %2661 = vmatmul.mubr.bf16.gmra.mrb[92].mxu0 %v4657_v57  ;;  %2854 = vmatmul.mubr.bf16.gmra.mrb[92].mxu1 %v4657_v57 }
 0x360   :  { %2670 = vmatprep.mubr.bf16.mxu0 %v4658_v31  ;;  %2863 = vmatprep.mubr.bf16.mxu1 %v4658_v31 }
 0x367   :  { %2671 = vmatmul.mubr.bf16.gmra.mrb[96].mxu0 %v4660_v1  ;;  %2864 = vmatmul.mubr.bf16.gmra.mrb[96].mxu1 %v4660_v1 }
 0x368   :  { %2680 = vmatprep.mubr.bf16.mxu0 %v4661_v35  ;;  %2873 = vmatprep.mubr.bf16.mxu1 %v4661_v35 }
 0x36f   :  { %2681 = vmatmul.mubr.bf16.gmra.mrb[100].mxu0 %v4663_v56  ;;  %2874 = vmatmul.mubr.bf16.gmra.mrb[100].mxu1 %v4663_v56 }
 0x370   :  { %2690 = vmatprep.mubr.bf16.mxu0 %v4664_v15  ;;  %2883 = vmatprep.mubr.bf16.mxu1 %v4664_v15 }
 0x377   :  { %2691 = vmatmul.mubr.bf16.gmra.mrb[104].mxu0 %v4666_v22  ;;  %2884 = vmatmul.mubr.bf16.gmra.mrb[104].mxu1 %v4666_v22 }
 0x378   :  { %2700 = vmatprep.mubr.bf16.mxu0 %v4667_v10  ;;  %2893 = vmatprep.mubr.bf16.mxu1 %v4667_v10 }
 0x37f   :  { %2701 = vmatmul.mubr.bf16.gmra.mrb[108].mxu0 %v4669_v51  ;;  %2894 = vmatmul.mubr.bf16.gmra.mrb[108].mxu1 %v4669_v51 }
 0x380   :  { %2710 = vmatprep.mubr.bf16.mxu0 %v4670_v63  ;;  %2903 = vmatprep.mubr.bf16.mxu1 %v4670_v63 }
 0x387   :  { %2711 = vmatmul.mubr.bf16.gmra.mrb[112].mxu0 %v4672_v9  ;;  %2904 = vmatmul.mubr.bf16.gmra.mrb[112].mxu1 %v4672_v9  ;;  %v2292_v9 = vpop.permute.xlu1 %2291 }
 0x388   :  { %2720 = vmatprep.mubr.bf16.mxu0 %v4673_v18  ;;  %2913 = vmatprep.mubr.bf16.mxu1 %v4673_v18  ;;  %v2288_v18 = vpop.permute.xlu0 %2287 }
 0x38f   :  { %2721 = vmatmul.mubr.bf16.gmra.mrb[116].mxu0 %v4675_v29  ;;  %2914 = vmatmul.mubr.bf16.gmra.mrb[116].mxu1 %v4675_v29 }
 0x390   :  { %2730 = vmatprep.mubr.bf16.mxu0 %v4676_v5  ;;  %2923 = vmatprep.mubr.bf16.mxu1 %v4676_v5 }
 0x397   :  { %2731 = vmatmul.mubr.bf16.gmra.mrb[120].mxu0 %v4678_v36  ;;  %2924 = vmatmul.mubr.bf16.gmra.mrb[120].mxu1 %v4678_v36 }
 0x398   :  { %2740 = vmatprep.mubr.bf16.mxu0 %v4679_v32  ;;  %2933 = vmatprep.mubr.bf16.mxu1 %v4679_v32 }
 0x39f   :  { %2741 = vmatmul.mubr.bf16.gmra.mrb[124].mxu0 %v4681_v37  ;;  %2934 = vmatmul.mubr.bf16.gmra.mrb[124].mxu1 %v4681_v37 }
 0x3a0   :  { %3488 = vmatprep.mubr.bf16.mxu0 %v4684_v28  ;;  %3681 = vmatprep.mubr.bf16.mxu1 %v4684_v28 }
 0x3fa   :  { %v2592_v49 = vpop.f32.mrb[64].mxu0  ;;  %v2785_v11 = vpop.f32.mrb[64].mxu1 }
 0x3fb   :  { %v2593_v25 = vadd.f32 %v2592_v49, %v2272_v40  ;;  %v2786_v4 = vadd.f32 %v2785_v11, %v2272_v40  ;;  %v2594_v6 = vpop.f32.mrb[65].mxu0  ;;  %v2787_v23 = vpop.f32.mrb[65].mxu1 }
 0x3fc   :  { %v2595_v59 = vadd.f32 %v2594_v6, %v2272_v40  ;;  %v2788_v61 = vadd.f32 %v2787_v23, %v2272_v40  ;;  %v2596_v30 = vpop.f32.mrb[66].mxu0  ;;  %v2789_v44 = vpop.f32.mrb[66].mxu1 }
 0x3fd   :  { %v2597_v47 = vadd.f32 %v2596_v30, %v2276_v16  ;;  %v2790_v46 = vadd.f32 %v2789_v44, %v2276_v16  ;;  %v2598_v45 = vpop.f32.mrb[67].mxu0  ;;  %v2791_v53 = vpop.f32.mrb[67].mxu1  ;;  %v2944_v33 = vmax.f32 %v2593_v25, 0.0  ;;  %v2946_v52 = vmax.f32 %v2786_v4, 0.0 }
 0x3fe   :  { %v2599_v27 = vadd.f32 %v2598_v45, %v2276_v16  ;;  %v2792_v0 = vadd.f32 %v2791_v53, %v2276_v16  ;;  %v2945_v20 = vmax.f32 %v2595_v59, 0.0  ;;  %v2947_v26 = vmax.f32 %v2788_v61, 0.0 }
 0x3ff   :  { %v2948_v13 = vmax.f32 %v2597_v47, 0.0  ;;  %v2950_v62 = vmax.f32 %v2790_v46, 0.0 }
 0x400   :  { %v2949_v54 = vmax.f32 %v2599_v27, 0.0  ;;  %v2951_v60 = vmax.f32 %v2792_v0, 0.0 }
 0x401   :  { %v3104_v17 = vpack.c.bf16 %v2948_v13, %v2944_v33  ;;  %v3106_v2 = vpack.c.bf16 %v2950_v62, %v2946_v52  ;;  %v2300_v62 = vpop.permute.xlu1 %2299 }
 0x402   :  { %v3105_v19 = vpack.c.bf16 %v2949_v54, %v2945_v20  ;;  %v3107_v55 = vpack.c.bf16 %v2951_v60, %v2947_v26  ;;  %v2602_v48 = vpop.f32.mrb[68].mxu0  ;;  %v2795_v58 = vpop.f32.mrb[68].mxu1  ;;  %v4889_v60 = vmov 3  }
 0x403   :  { %v2603_v14 = vadd.f32 %v2602_v48, %v2280_v42  ;;  %v2796_v21 = vadd.f32 %v2795_v58, %v2280_v42  ;;  %v2604_v3 = vpop.f32.mrb[69].mxu0  ;;  %v2797_v43 = vpop.f32.mrb[69].mxu1  ;;  %4576 = vset.pattern.permute.xlu1 %v4889_v60 }
 0x404   :  { %v2605_v50 = vadd.f32 %v2604_v3, %v2280_v42  ;;  %v2798_v8 = vadd.f32 %v2797_v43, %v2280_v42  ;;  %v2606_v24 = vpop.f32.mrb[70].mxu0  ;;  %v2799_v7 = vpop.f32.mrb[70].mxu1  ;;  %3456 = vmatprep.subr.bf16.mxu0 %v3105_v19  ;;  %3649 = vmatprep.subr.bf16.mxu1 %v3107_v55  ;;  %v6321_v55 = vld [vmem:[%s6811_s2 + $0x8] sm:$0xff] }
 0x405   :  { %v2607_v41 = vadd.f32 %v2606_v24, %v2284_v12  ;;  %v2800_v38 = vadd.f32 %v2799_v7, %v2284_v12  ;;  %v2608_v39 = vpop.f32.mrb[71].mxu0  ;;  %v2801_v34 = vpop.f32.mrb[71].mxu1  ;;  %3457 = vmatpush1.bf16.msra.mxu0 %v3104_v17  ;;  %3650 = vmatpush1.bf16.msra.mxu1 %v3106_v2  ;;  %v2952_v1 = vmax.f32 %v2603_v14, 0.0  ;;  %v2954_v35 = vmax.f32 %v2796_v21, 0.0 }
 0x406   :  { %v2609_v57 = vadd.f32 %v2608_v39, %v2284_v12  ;;  %v2802_v31 = vadd.f32 %v2801_v34, %v2284_v12  ;;  %v2953_v22 = vmax.f32 %v2605_v50, 0.0  ;;  %v2955_v10 = vmax.f32 %v2798_v8, 0.0  ;;  %v2296_v20 = vpop.permute.xlu0 %2295  ;;  %3173 = vperm.xlu1 %4576, %v6321_v55  }
 0x407   :  { %v2956_v56 = vmax.f32 %v2607_v41, 0.0  ;;  %v2958_v15 = vmax.f32 %v2800_v38, 0.0 }
 0x408   :  { %v2957_v51 = vmax.f32 %v2609_v57, 0.0  ;;  %v2959_v63 = vmax.f32 %v2802_v31, 0.0  ;;  %v6327_v57 = vld [vmem:[%s6811_s2 + $0x10] sm:$0xff] }
 0x409   :  { %v3108_v29 = vpack.c.bf16 %v2956_v56, %v2952_v1  ;;  %v3110_v5 = vpack.c.bf16 %v2958_v15, %v2954_v35 }
 0x40a   :  { %v3109_v36 = vpack.c.bf16 %v2957_v51, %v2953_v22  ;;  %v3111_v32 = vpack.c.bf16 %v2959_v63, %v2955_v10  ;;  %v2612_v37 = vpop.f32.mrb[72].mxu0  ;;  %v2805_v40 = vpop.f32.mrb[72].mxu1  ;;  %3177 = vperm.xlu1 %4576, %v6327_v57  }
 0x40b   :  { %v2613_v42 = vadd.f32 %v2612_v37, %v2288_v18  ;;  %v2806_v16 = vadd.f32 %v2805_v40, %v2288_v18  ;;  %v2614_v49 = vpop.f32.mrb[73].mxu0  ;;  %v2807_v11 = vpop.f32.mrb[73].mxu1  ;;  %v6333_v40 = vld [vmem:[%s6811_s2 + $0x20] sm:$0xff] }
 0x40c   :  { %v2615_v25 = vadd.f32 %v2614_v49, %v2288_v18  ;;  %v2808_v4 = vadd.f32 %v2807_v11, %v2288_v18  ;;  %v2616_v6 = vpop.f32.mrb[74].mxu0  ;;  %v2809_v23 = vpop.f32.mrb[74].mxu1  ;;  %3458 = vmatprep.subr.bf16.mxu0 %v3109_v36  ;;  %3651 = vmatprep.subr.bf16.mxu1 %v3111_v32 }
 0x40d   :  { %v2617_v59 = vadd.f32 %v2616_v6, %v2292_v9  ;;  %v2810_v61 = vadd.f32 %v2809_v23, %v2292_v9  ;;  %v2618_v30 = vpop.f32.mrb[75].mxu0  ;;  %v2811_v44 = vpop.f32.mrb[75].mxu1  ;;  %3459 = vmatpush1.bf16.msra.mxu0 %v3108_v29  ;;  %3652 = vmatpush1.bf16.msra.mxu1 %v3110_v5  ;;  %v2960_v47 = vmax.f32 %v2613_v42, 0.0  ;;  %v2962_v53 = vmax.f32 %v2806_v16, 0.0 }
 0x40e   :  { %v2619_v46 = vadd.f32 %v2618_v30, %v2292_v9  ;;  %v2812_v45 = vadd.f32 %v2811_v44, %v2292_v9  ;;  %v2961_v27 = vmax.f32 %v2615_v25, 0.0  ;;  %v2963_v33 = vmax.f32 %v2808_v4, 0.0  ;;  %v2308_v63 = vpop.permute.xlu1 %2307  ;;  %v2304_v9 = vpop.permute.xlu0 %2303  ;;  %3185 = vperm.xlu1 %4576, %v6333_v40   ;;  %v6340_v4 = vld [vmem:[%s6811_s2] sm:$0xff] }
 0x40f   :  { %v2964_v0 = vmax.f32 %v2617_v59, 0.0  ;;  %v2966_v28 = vmax.f32 %v2810_v61, 0.0  ;;  %v4890_v42 = vmov 4  }
 0x410   :  { %v2965_v52 = vmax.f32 %v2619_v46, 0.0  ;;  %v2967_v13 = vmax.f32 %v2812_v45, 0.0  ;;  %4577 = vset.pattern.permute.xlu0 %v4890_v42 }
 0x411   :  { %v3112_v26 = vpack.c.bf16 %v2964_v0, %v2960_v47  ;;  %v3114_v54 = vpack.c.bf16 %v2966_v28, %v2962_v53  ;;  %3971 = vperm.xlu0 %4577, %v6340_v4  }
 0x412   :  { %v3113_v12 = vpack.c.bf16 %v2965_v52, %v2961_v27  ;;  %v3115_v17 = vpack.c.bf16 %v2967_v13, %v2963_v33  ;;  %v2622_v2 = vpop.f32.mrb[76].mxu0  ;;  %v2815_v19 = vpop.f32.mrb[76].mxu1  ;;  %v6346_v27 = vld [vmem:[%s6811_s2 + $0x30] sm:$0xff]  ;;  %v6352_v13 = vld [vmem:[%s6811_s2 + $0x18] sm:$0xff] }
 0x413   :  { %v2623_v48 = vadd.f32 %v2622_v2, %v2296_v20  ;;  %v2816_v58 = vadd.f32 %v2815_v19, %v2296_v20  ;;  %v2624_v14 = vpop.f32.mrb[77].mxu0  ;;  %v2817_v21 = vpop.f32.mrb[77].mxu1  ;;  %3193 = vperm.xlu1 %4576, %v6346_v27  }
 0x414   :  { %v2625_v3 = vadd.f32 %v2624_v14, %v2296_v20  ;;  %v2818_v43 = vadd.f32 %v2817_v21, %v2296_v20  ;;  %v2626_v50 = vpop.f32.mrb[78].mxu0  ;;  %v2819_v8 = vpop.f32.mrb[78].mxu1  ;;  %3460 = vmatprep.subr.bf16.mxu0 %v3113_v12  ;;  %3653 = vmatprep.subr.bf16.mxu1 %v3115_v17 }
 0x415   :  { %v2627_v24 = vadd.f32 %v2626_v50, %v2300_v62  ;;  %v2820_v7 = vadd.f32 %v2819_v8, %v2300_v62  ;;  %v2628_v41 = vpop.f32.mrb[79].mxu0  ;;  %v2821_v38 = vpop.f32.mrb[79].mxu1  ;;  %3461 = vmatpush1.bf16.msra.mxu0 %v3112_v26  ;;  %3654 = vmatpush1.bf16.msra.mxu1 %v3114_v54  ;;  %v2968_v31 = vmax.f32 %v2623_v48, 0.0  ;;  %v2970_v1 = vmax.f32 %v2816_v58, 0.0 }
 0x416   :  { %v2629_v39 = vadd.f32 %v2628_v41, %v2300_v62  ;;  %v2822_v34 = vadd.f32 %v2821_v38, %v2300_v62  ;;  %v2969_v15 = vmax.f32 %v2625_v3, 0.0  ;;  %v2971_v22 = vmax.f32 %v2818_v43, 0.0  ;;  %3983 = vperm.xlu0 %4577, %v6352_v13   ;;  %v2316_v12 = vpop.permute.xlu1 %2315  ;;  %v2312_v17 = vpop.permute.xlu0 %2311  ;;  %v6358_v3 = vld [vmem:[%s6811_s2 + $0x40] sm:$0xff] }
 0x417   :  { %v2972_v35 = vmax.f32 %v2627_v24, 0.0  ;;  %v2974_v56 = vmax.f32 %v2820_v7, 0.0  ;;  %3201 = vperm.xlu1 %4576, %v6358_v3   ;;  %v6364_v7 = vld [vmem:[%s6811_s2 + $0x28] sm:$0xff] }
 0x418   :  { %v2973_v10 = vmax.f32 %v2629_v39, 0.0  ;;  %v2975_v51 = vmax.f32 %v2822_v34, 0.0 }
 0x419   :  { %v3116_v18 = vpack.c.bf16 %v2972_v35, %v2968_v31  ;;  %v3118_v29 = vpack.c.bf16 %v2974_v56, %v2970_v1 }
 0x41a   :  { %v3117_v5 = vpack.c.bf16 %v2973_v10, %v2969_v15  ;;  %v3119_v36 = vpack.c.bf16 %v2975_v51, %v2971_v22  ;;  %v2632_v32 = vpop.f32.mrb[80].mxu0  ;;  %v2825_v37 = vpop.f32.mrb[80].mxu1  ;;  %3991 = vperm.xlu0 %4577, %v6364_v7   ;;  %v6370_v10 = vld [vmem:[%s6811_s2 + $0x50] sm:$0xff] }
 0x41b   :  { %v2633_v16 = vadd.f32 %v2632_v32, %v2304_v9  ;;  %v2826_v49 = vadd.f32 %v2825_v37, %v2304_v9  ;;  %v2634_v11 = vpop.f32.mrb[81].mxu0  ;;  %v2827_v25 = vpop.f32.mrb[81].mxu1  ;;  %3209 = vperm.xlu1 %4576, %v6370_v10  }
 0x41c   :  { %v2635_v6 = vadd.f32 %v2634_v11, %v2304_v9  ;;  %v2828_v23 = vadd.f32 %v2827_v25, %v2304_v9  ;;  %v2636_v59 = vpop.f32.mrb[82].mxu0  ;;  %v2829_v61 = vpop.f32.mrb[82].mxu1  ;;  %3462 = vmatprep.subr.bf16.mxu0 %v3117_v5  ;;  %3655 = vmatprep.subr.bf16.mxu1 %v3119_v36 }
 0x41d   :  { %v2637_v30 = vadd.f32 %v2636_v59, %v2308_v63  ;;  %v2830_v44 = vadd.f32 %v2829_v61, %v2308_v63  ;;  %v2638_v47 = vpop.f32.mrb[83].mxu0  ;;  %v2831_v46 = vpop.f32.mrb[83].mxu1  ;;  %3463 = vmatpush1.bf16.msra.mxu0 %v3116_v18  ;;  %3656 = vmatpush1.bf16.msra.mxu1 %v3118_v29  ;;  %v2976_v0 = vmax.f32 %v2633_v16, 0.0  ;;  %v2978_v28 = vmax.f32 %v2826_v49, 0.0  ;;  %v6376_v29 = vld [vmem:[%s6811_s2 + $0x38] sm:$0xff] }
 0x41e   :  { %v2639_v45 = vadd.f32 %v2638_v47, %v2308_v63  ;;  %v2832_v53 = vadd.f32 %v2831_v46, %v2308_v63  ;;  %v2977_v62 = vmax.f32 %v2635_v6, 0.0  ;;  %v2979_v20 = vmax.f32 %v2828_v23, 0.0  ;;  %3999 = vperm.xlu0 %4577, %v6376_v29   ;;  %v2324_v16 = vpop.permute.xlu1 %2323  ;;  %v2320_v49 = vpop.permute.xlu0 %2319 }
 0x41f   :  { %v2980_v33 = vmax.f32 %v2637_v30, 0.0  ;;  %v2982_v52 = vmax.f32 %v2830_v44, 0.0  ;;  %v6382_v30 = vld [vmem:[%s6811_s2 + $0x60] sm:$0xff] }
 0x420   :  { %v2981_v26 = vmax.f32 %v2639_v45, 0.0  ;;  %v2983_v54 = vmax.f32 %v2832_v53, 0.0  ;;  %3217 = vperm.xlu1 %4576, %v6382_v30   ;;  %v6388_v53 = vld [vmem:[%s6811_s2 + $0x48] sm:$0xff] }
 0x421   :  { %v3120_v2 = vpack.c.bf16 %v2980_v33, %v2976_v0  ;;  %v3122_v19 = vpack.c.bf16 %v2982_v52, %v2978_v28 }
 0x422   :  { %v3121_v48 = vpack.c.bf16 %v2981_v26, %v2977_v62  ;;  %v3123_v58 = vpack.c.bf16 %v2983_v54, %v2979_v20  ;;  %v2642_v14 = vpop.f32.mrb[84].mxu0  ;;  %v2835_v21 = vpop.f32.mrb[84].mxu1  ;;  %4007 = vperm.xlu0 %4577, %v6388_v53  }
 0x423   :  { %v2643_v43 = vadd.f32 %v2642_v14, %v2312_v17  ;;  %v2836_v50 = vadd.f32 %v2835_v21, %v2312_v17  ;;  %v2644_v8 = vpop.f32.mrb[85].mxu0  ;;  %v2837_v24 = vpop.f32.mrb[85].mxu1  ;;  %v6400_v21 = vld [vmem:[%s6811_s2 + $0x58] sm:$0xff] }
 0x424   :  { %v2645_v41 = vadd.f32 %v2644_v8, %v2312_v17  ;;  %v2838_v38 = vadd.f32 %v2837_v24, %v2312_v17  ;;  %v2646_v39 = vpop.f32.mrb[86].mxu0  ;;  %v2839_v34 = vpop.f32.mrb[86].mxu1  ;;  %3464 = vmatprep.subr.bf16.mxu0 %v3121_v48  ;;  %3657 = vmatprep.subr.bf16.mxu1 %v3123_v58 }
 0x425   :  { %v2647_v31 = vadd.f32 %v2646_v39, %v2316_v12  ;;  %v2840_v1 = vadd.f32 %v2839_v34, %v2316_v12  ;;  %v2648_v35 = vpop.f32.mrb[87].mxu0  ;;  %v2841_v56 = vpop.f32.mrb[87].mxu1  ;;  %3465 = vmatpush1.bf16.msra.mxu0 %v3120_v2  ;;  %3658 = vmatpush1.bf16.msra.mxu1 %v3122_v19  ;;  %v2984_v51 = vmax.f32 %v2643_v43, 0.0  ;;  %v2986_v63 = vmax.f32 %v2836_v50, 0.0  ;;  %v6394_v2 = vld [vmem:[%s6811_s2 + $0x70] sm:$0xff] }
 0x426   :  { %v2649_v15 = vadd.f32 %v2648_v35, %v2316_v12  ;;  %v2842_v22 = vadd.f32 %v2841_v56, %v2316_v12  ;;  %v2985_v5 = vmax.f32 %v2645_v41, 0.0  ;;  %v2987_v36 = vmax.f32 %v2838_v38, 0.0  ;;  %3225 = vperm.xlu1 %4576, %v6394_v2   ;;  %4015 = vperm.xlu0 %4577, %v6400_v21   ;;  %v2332_v41 = vpop.permute.xlu1 %2331  ;;  %v2328_v38 = vpop.permute.xlu0 %2327 }
 0x427   :  { %v2988_v9 = vmax.f32 %v2647_v31, 0.0  ;;  %v2990_v18 = vmax.f32 %v2840_v1, 0.0 }
 0x428   :  { %v2989_v32 = vmax.f32 %v2649_v15, 0.0  ;;  %v2991_v37 = vmax.f32 %v2842_v22, 0.0  ;;  %v6406_v15 = vld [vmem:[%s6811_s2 + $0x80] sm:$0xff] }
 0x429   :  { %v3124_v11 = vpack.c.bf16 %v2988_v9, %v2984_v51  ;;  %v3126_v25 = vpack.c.bf16 %v2990_v18, %v2986_v63  ;;  %v6412_v18 = vld [vmem:[%s6811_s2 + $0x68] sm:$0xff] }
 0x42a   :  { %v3125_v6 = vpack.c.bf16 %v2989_v32, %v2985_v5  ;;  %v3127_v23 = vpack.c.bf16 %v2991_v37, %v2987_v36  ;;  %v2652_v59 = vpop.f32.mrb[88].mxu0  ;;  %v2845_v61 = vpop.f32.mrb[88].mxu1  ;;  %3233 = vperm.xlu1 %4576, %v6406_v15   ;;  %4023 = vperm.xlu0 %4577, %v6412_v18  }
 0x42b   :  { %v2653_v44 = vadd.f32 %v2652_v59, %v2320_v49  ;;  %v2846_v47 = vadd.f32 %v2845_v61, %v2320_v49  ;;  %v2654_v46 = vpop.f32.mrb[89].mxu0  ;;  %v2847_v45 = vpop.f32.mrb[89].mxu1  ;;  %v6418_v59 = vld [vmem:[%s6811_s2 + $0x90] sm:$0xff] }
 0x42c   :  { %v2655_v0 = vadd.f32 %v2654_v46, %v2320_v49  ;;  %v2848_v28 = vadd.f32 %v2847_v45, %v2320_v49  ;;  %v2656_v33 = vpop.f32.mrb[90].mxu0  ;;  %v2849_v52 = vpop.f32.mrb[90].mxu1  ;;  %3466 = vmatprep.subr.bf16.mxu0 %v3125_v6  ;;  %3659 = vmatprep.subr.bf16.mxu1 %v3127_v23  ;;  %v6424_v45 = vld [vmem:[%s6811_s2 + $0x78] sm:$0xff] }
 0x42d   :  { %v2657_v62 = vadd.f32 %v2656_v33, %v2324_v16  ;;  %v2850_v20 = vadd.f32 %v2849_v52, %v2324_v16  ;;  %v2658_v26 = vpop.f32.mrb[91].mxu0  ;;  %v2851_v54 = vpop.f32.mrb[91].mxu1  ;;  %3467 = vmatpush1.bf16.msra.mxu0 %v3124_v11  ;;  %3660 = vmatpush1.bf16.msra.mxu1 %v3126_v25  ;;  %v2992_v19 = vmax.f32 %v2653_v44, 0.0  ;;  %v2994_v48 = vmax.f32 %v2846_v47, 0.0 }
 0x42e   :  { %v2659_v12 = vadd.f32 %v2658_v26, %v2324_v16  ;;  %v2852_v17 = vadd.f32 %v2851_v54, %v2324_v16  ;;  %v2993_v43 = vmax.f32 %v2655_v0, 0.0  ;;  %v2995_v50 = vmax.f32 %v2848_v28, 0.0  ;;  %3241 = vperm.xlu1 %4576, %v6418_v59   ;;  %4031 = vperm.xlu0 %4577, %v6424_v45  }
 0x42f   :  { %v2996_v58 = vmax.f32 %v2657_v62, 0.0  ;;  %v2998_v14 = vmax.f32 %v2850_v20, 0.0  ;;  %v2340_v62 = vpop.permute.xlu1 %2339  ;;  %v2336_v20 = vpop.permute.xlu0 %2335 }
 0x430   :  { %v2997_v8 = vmax.f32 %v2659_v12, 0.0  ;;  %v2999_v24 = vmax.f32 %v2852_v17, 0.0 }
 0x431   :  { %v3128_v39 = vpack.c.bf16 %v2996_v58, %v2992_v19  ;;  %v3130_v34 = vpack.c.bf16 %v2998_v14, %v2994_v48  ;;  %v6430_v58 = vld [vmem:[%s6811_s2 + $0xa0] sm:$0xff] }
 0x432   :  { %v3129_v31 = vpack.c.bf16 %v2997_v8, %v2993_v43  ;;  %v3131_v1 = vpack.c.bf16 %v2999_v24, %v2995_v50  ;;  %v2662_v35 = vpop.f32.mrb[92].mxu0  ;;  %v2855_v56 = vpop.f32.mrb[92].mxu1  ;;  %3249 = vperm.xlu1 %4576, %v6430_v58   ;;  %v6436_v24 = vld [vmem:[%s6811_s2 + $0x88] sm:$0xff] }
 0x433   :  { %v2663_v22 = vadd.f32 %v2662_v35, %v2328_v38  ;;  %v2856_v51 = vadd.f32 %v2855_v56, %v2328_v38  ;;  %v2664_v63 = vpop.f32.mrb[93].mxu0  ;;  %v2857_v9 = vpop.f32.mrb[93].mxu1  ;;  %4039 = vperm.xlu0 %4577, %v6436_v24  }
 0x434   :  { %v2665_v5 = vadd.f32 %v2664_v63, %v2328_v38  ;;  %v2858_v36 = vadd.f32 %v2857_v9, %v2328_v38  ;;  %v2666_v32 = vpop.f32.mrb[94].mxu0  ;;  %v2859_v37 = vpop.f32.mrb[94].mxu1  ;;  %3468 = vmatprep.subr.bf16.mxu0 %v3129_v31  ;;  %3661 = vmatprep.subr.bf16.mxu1 %v3131_v1  ;;  %v6442_v63 = vld [vmem:[%s6811_s2 + $0xb0] sm:$0xff] }
 0x435   :  { %v2667_v16 = vadd.f32 %v2666_v32, %v2332_v41  ;;  %v2860_v49 = vadd.f32 %v2859_v37, %v2332_v41  ;;  %v2668_v11 = vpop.f32.mrb[95].mxu0  ;;  %v2861_v25 = vpop.f32.mrb[95].mxu1  ;;  %3469 = vmatpush1.bf16.msra.mxu0 %v3128_v39  ;;  %3662 = vmatpush1.bf16.msra.mxu1 %v3130_v34  ;;  %v3000_v61 = vmax.f32 %v2663_v22, 0.0  ;;  %v3002_v44 = vmax.f32 %v2856_v51, 0.0  ;;  %v6448_v37 = vld [vmem:[%s6811_s2 + $0x98] sm:$0xff] }
 0x436   :  { %v2669_v6 = vadd.f32 %v2668_v11, %v2332_v41  ;;  %v2862_v23 = vadd.f32 %v2861_v25, %v2332_v41  ;;  %v3001_v0 = vmax.f32 %v2665_v5, 0.0  ;;  %v3003_v28 = vmax.f32 %v2858_v36, 0.0  ;;  %3257 = vperm.xlu1 %4576, %v6442_v63  }
 0x437   :  { %v3004_v47 = vmax.f32 %v2667_v16, 0.0  ;;  %v3006_v46 = vmax.f32 %v2860_v49, 0.0  ;;  %4047 = vperm.xlu0 %4577, %v6448_v37  }
 0x438   :  { %v3005_v33 = vmax.f32 %v2669_v6, 0.0  ;;  %v3007_v52 = vmax.f32 %v2862_v23, 0.0  ;;  %v2348_v6 = vpop.permute.xlu1 %2347  ;;  %v2344_v23 = vpop.permute.xlu0 %2343 }
 0x439   :  { %v3132_v26 = vpack.c.bf16 %v3004_v47, %v3000_v61  ;;  %v3134_v54 = vpack.c.bf16 %v3006_v46, %v3002_v44 }
 0x43a   :  { %v3133_v12 = vpack.c.bf16 %v3005_v33, %v3001_v0  ;;  %v3135_v17 = vpack.c.bf16 %v3007_v52, %v3003_v28  ;;  %v2672_v19 = vpop.f32.mrb[96].mxu0  ;;  %v2865_v48 = vpop.f32.mrb[96].mxu1  ;;  %v6454_v33 = vld [vmem:[%s6811_s2 + $0xc0] sm:$0xff] }
 0x43b   :  { %v2673_v14 = vadd.f32 %v2672_v19, %v2336_v20  ;;  %v2866_v43 = vadd.f32 %v2865_v48, %v2336_v20  ;;  %v2674_v50 = vpop.f32.mrb[97].mxu0  ;;  %v2867_v8 = vpop.f32.mrb[97].mxu1  ;;  %3265 = vperm.xlu1 %4576, %v6454_v33  }
 0x43c   :  { %v2675_v41 = vadd.f32 %v2674_v50, %v2336_v20  ;;  %v2868_v38 = vadd.f32 %v2867_v8, %v2336_v20  ;;  %v2676_v39 = vpop.f32.mrb[98].mxu0  ;;  %v2869_v34 = vpop.f32.mrb[98].mxu1  ;;  %3470 = vmatprep.subr.bf16.mxu0 %v3133_v12  ;;  %3663 = vmatprep.subr.bf16.mxu1 %v3135_v17 }
 0x43d   :  { %v2677_v31 = vadd.f32 %v2676_v39, %v2340_v62  ;;  %v2870_v1 = vadd.f32 %v2869_v34, %v2340_v62  ;;  %v2678_v35 = vpop.f32.mrb[99].mxu0  ;;  %v2871_v56 = vpop.f32.mrb[99].mxu1  ;;  %3471 = vmatpush1.bf16.msra.mxu0 %v3132_v26  ;;  %3664 = vmatpush1.bf16.msra.mxu1 %v3134_v54  ;;  %v3008_v9 = vmax.f32 %v2673_v14, 0.0  ;;  %v3010_v5 = vmax.f32 %v2866_v43, 0.0  ;;  %v6460_v54 = vld [vmem:[%s6811_s2 + $0xa8] sm:$0xff]  ;;  %v4801_v39 = vld [vmem:[%s6811_s2 + $0xd0] sm:$0xff] }
 0x43e   :  { %v2679_v22 = vadd.f32 %v2678_v35, %v2340_v62  ;;  %v2872_v51 = vadd.f32 %v2871_v56, %v2340_v62  ;;  %v3009_v16 = vmax.f32 %v2675_v41, 0.0  ;;  %v3011_v49 = vmax.f32 %v2868_v38, 0.0  ;;  %4055 = vperm.xlu0 %4577, %v6460_v54   ;;  %v6469_v56 = vld [vmem:[%s6811_s2 + $0xb8] sm:$0xff] }
 0x43f   :  { %v3012_v36 = vmax.f32 %v2677_v31, 0.0  ;;  %v3014_v32 = vmax.f32 %v2870_v1, 0.0  ;;  %3273 = vperm.xlu1 %4576, %v4801_v39  }
 0x440   :  { %v3013_v11 = vmax.f32 %v2679_v22, 0.0  ;;  %v3015_v25 = vmax.f32 %v2872_v51, 0.0 }
 0x441   :  { %v3136_v61 = vpack.c.bf16 %v3012_v36, %v3008_v9  ;;  %v3138_v44 = vpack.c.bf16 %v3014_v32, %v3010_v5  ;;  %v2356_v36 = vpop.permute.xlu1 %2355  ;;  %v2352_v32 = vpop.permute.xlu0 %2351 }
 0x442   :  { %v3137_v47 = vpack.c.bf16 %v3013_v11, %v3009_v16  ;;  %v3139_v46 = vpack.c.bf16 %v3015_v25, %v3011_v49  ;;  %v2682_v0 = vpop.f32.mrb[100].mxu0  ;;  %v2875_v28 = vpop.f32.mrb[100].mxu1  ;;  %4063 = vperm.xlu0 %4577, %v6469_v56  }
 0x443   :  { %v2683_v52 = vadd.f32 %v2682_v0, %v2344_v23  ;;  %v2876_v62 = vadd.f32 %v2875_v28, %v2344_v23  ;;  %v2684_v20 = vpop.f32.mrb[101].mxu0  ;;  %v2877_v26 = vpop.f32.mrb[101].mxu1  ;;  %4578 = vset.pattern.permute.xlu1 %v4890_v42 }
 0x444   :  { %v2685_v12 = vadd.f32 %v2684_v20, %v2344_v23  ;;  %v2878_v17 = vadd.f32 %v2877_v26, %v2344_v23  ;;  %v2686_v19 = vpop.f32.mrb[102].mxu0  ;;  %v2879_v48 = vpop.f32.mrb[102].mxu1  ;;  %3472 = vmatprep.subr.bf16.mxu0 %v3137_v47  ;;  %3665 = vmatprep.subr.bf16.mxu1 %v3139_v46 }
 0x445   :  { %v2687_v14 = vadd.f32 %v2686_v19, %v2348_v6  ;;  %v2880_v43 = vadd.f32 %v2879_v48, %v2348_v6  ;;  %v2688_v50 = vpop.f32.mrb[103].mxu0  ;;  %v2881_v8 = vpop.f32.mrb[103].mxu1  ;;  %3473 = vmatpush1.bf16.msra.mxu0 %v3136_v61  ;;  %3666 = vmatpush1.bf16.msra.mxu1 %v3138_v44  ;;  %v3016_v34 = vmax.f32 %v2683_v52, 0.0  ;;  %v3018_v31 = vmax.f32 %v2876_v62, 0.0 }
 0x446   :  { %v2689_v41 = vadd.f32 %v2688_v50, %v2348_v6  ;;  %v2882_v38 = vadd.f32 %v2881_v8, %v2348_v6  ;;  %v3017_v22 = vmax.f32 %v2685_v12, 0.0  ;;  %v3019_v51 = vmax.f32 %v2878_v17, 0.0  ;;  %3975 = vperm.xlu1 %4578, %v6321_v55   ;;  %4075 = vperm.xlu0 %4577, %v4801_v39  }
 0x447   :  { %v3020_v1 = vmax.f32 %v2687_v14, 0.0  ;;  %v3022_v35 = vmax.f32 %v2880_v43, 0.0 }
 0x448   :  { %v3021_v9 = vmax.f32 %v2689_v41, 0.0  ;;  %v3023_v5 = vmax.f32 %v2882_v38, 0.0 }
 0x449   :  { %v3140_v16 = vpack.c.bf16 %v3020_v1, %v3016_v34  ;;  %v3142_v49 = vpack.c.bf16 %v3022_v35, %v3018_v31  ;;  %v2364_v34 = vpop.permute.xlu1 %2363  ;;  %v2360_v31 = vpop.permute.xlu0 %2359 }
 0x44a   :  { %v3141_v11 = vpack.c.bf16 %v3021_v9, %v3017_v22  ;;  %v3143_v25 = vpack.c.bf16 %v3023_v5, %v3019_v51  ;;  %v2692_v6 = vpop.f32.mrb[104].mxu0  ;;  %v2885_v23 = vpop.f32.mrb[104].mxu1  ;;  %3979 = vperm.xlu1 %4578, %v6327_v57   ;;  %4580 = vset.pattern.permute.xlu0 %v4889_v60 }
 0x44b   :  { %v2693_v61 = vadd.f32 %v2692_v6, %v2352_v32  ;;  %v2886_v44 = vadd.f32 %v2885_v23, %v2352_v32  ;;  %v2694_v47 = vpop.f32.mrb[105].mxu0  ;;  %v2887_v46 = vpop.f32.mrb[105].mxu1  ;;  %3169 = vperm.xlu0 %4580, %v6340_v4  }
 0x44c   :  { %v2695_v0 = vadd.f32 %v2694_v47, %v2352_v32  ;;  %v2888_v28 = vadd.f32 %v2887_v46, %v2352_v32  ;;  %v2696_v52 = vpop.f32.mrb[106].mxu0  ;;  %v2889_v62 = vpop.f32.mrb[106].mxu1  ;;  %3474 = vmatprep.subr.bf16.mxu0 %v3141_v11  ;;  %3667 = vmatprep.subr.bf16.mxu1 %v3143_v25 }
 0x44d   :  { %v2697_v20 = vadd.f32 %v2696_v52, %v2356_v36  ;;  %v2890_v26 = vadd.f32 %v2889_v62, %v2356_v36  ;;  %v2698_v12 = vpop.f32.mrb[107].mxu0  ;;  %v2891_v17 = vpop.f32.mrb[107].mxu1  ;;  %3475 = vmatpush1.bf16.msra.mxu0 %v3140_v16  ;;  %3668 = vmatpush1.bf16.msra.mxu1 %v3142_v49  ;;  %v3024_v14 = vmax.f32 %v2693_v61, 0.0  ;;  %v3026_v43 = vmax.f32 %v2886_v44, 0.0 }
 0x44e   :  { %v2699_v19 = vadd.f32 %v2698_v12, %v2356_v36  ;;  %v2892_v48 = vadd.f32 %v2891_v17, %v2356_v36  ;;  %v3025_v55 = vmax.f32 %v2695_v0, 0.0  ;;  %v3027_v41 = vmax.f32 %v2888_v28, 0.0  ;;  %3987 = vperm.xlu1 %4578, %v6333_v40   ;;  %v2372_v17 = vpop.permute.xlu1 %2371 }
 0x44f   :  { %v3028_v50 = vmax.f32 %v2697_v20, 0.0  ;;  %v3030_v8 = vmax.f32 %v2890_v26, 0.0  ;;  %3181 = vperm.xlu0 %4580, %v6352_v13  }
 0x450   :  { %v3029_v38 = vmax.f32 %v2699_v19, 0.0  ;;  %v3031_v39 = vmax.f32 %v2892_v48, 0.0  ;;  %v2368_v19 = vpop.permute.xlu0 %2367 }
 0x451   :  { %v3144_v1 = vpack.c.bf16 %v3028_v50, %v3024_v14  ;;  %v3146_v35 = vpack.c.bf16 %v3030_v8, %v3026_v43 }
 0x452   :  { %v3145_v22 = vpack.c.bf16 %v3029_v38, %v3025_v55  ;;  %v3147_v51 = vpack.c.bf16 %v3031_v39, %v3027_v41  ;;  %v2702_v9 = vpop.f32.mrb[108].mxu0  ;;  %v2895_v5 = vpop.f32.mrb[108].mxu1  ;;  %3995 = vperm.xlu1 %4578, %v6346_v27  }
 0x453   :  { %v2703_v36 = vadd.f32 %v2702_v9, %v2360_v31  ;;  %v2896_v32 = vadd.f32 %v2895_v5, %v2360_v31  ;;  %v2704_v16 = vpop.f32.mrb[109].mxu0  ;;  %v2897_v57 = vpop.f32.mrb[109].mxu1  ;;  %3189 = vperm.xlu0 %4580, %v6364_v7  }
 0x454   :  { %v2705_v49 = vadd.f32 %v2704_v16, %v2360_v31  ;;  %v2898_v11 = vadd.f32 %v2897_v57, %v2360_v31  ;;  %v2706_v25 = vpop.f32.mrb[110].mxu0  ;;  %v2899_v6 = vpop.f32.mrb[110].mxu1  ;;  %3476 = vmatprep.subr.bf16.mxu0 %v3145_v22  ;;  %3669 = vmatprep.subr.bf16.mxu1 %v3147_v51 }
 0x455   :  { %v2707_v4 = vadd.f32 %v2706_v25, %v2364_v34  ;;  %v2900_v23 = vadd.f32 %v2899_v6, %v2364_v34  ;;  %v2708_v61 = vpop.f32.mrb[111].mxu0  ;;  %v2901_v44 = vpop.f32.mrb[111].mxu1  ;;  %3477 = vmatpush1.bf16.msra.mxu0 %v3144_v1  ;;  %3670 = vmatpush1.bf16.msra.mxu1 %v3146_v35  ;;  %v3032_v0 = vmax.f32 %v2703_v36, 0.0  ;;  %v3034_v28 = vmax.f32 %v2896_v32, 0.0 }
 0x456   :  { %v2709_v47 = vadd.f32 %v2708_v61, %v2364_v34  ;;  %v2902_v46 = vadd.f32 %v2901_v44, %v2364_v34  ;;  %v3033_v62 = vmax.f32 %v2705_v49, 0.0  ;;  %v3035_v20 = vmax.f32 %v2898_v11, 0.0  ;;  %4003 = vperm.xlu1 %4578, %v6358_v3   ;;  %v2380_v6 = vpop.permute.xlu1 %2379 }
 0x457   :  { %v3036_v52 = vmax.f32 %v2707_v4, 0.0  ;;  %v3038_v40 = vmax.f32 %v2900_v23, 0.0  ;;  %3197 = vperm.xlu0 %4580, %v6376_v29   ;;  %v2376_v4 = vpop.permute.xlu0 %2375 }
 0x458   :  { %v3037_v26 = vmax.f32 %v2709_v47, 0.0  ;;  %v3039_v12 = vmax.f32 %v2902_v46, 0.0 }
 0x459   :  { %v3148_v48 = vpack.c.bf16 %v3036_v52, %v3032_v0  ;;  %v3150_v14 = vpack.c.bf16 %v3038_v40, %v3034_v28 }
 0x45a   :  { %v3149_v43 = vpack.c.bf16 %v3037_v26, %v3033_v62  ;;  %v3151_v50 = vpack.c.bf16 %v3039_v12, %v3035_v20  ;;  %v2712_v8 = vpop.f32.mrb[112].mxu0  ;;  %v2905_v55 = vpop.f32.mrb[112].mxu1  ;;  %4011 = vperm.xlu1 %4578, %v6370_v10  }
 0x45b   :  { %v2713_v13 = vadd.f32 %v2712_v8, %v2368_v19  ;;  %v2906_v41 = vadd.f32 %v2905_v55, %v2368_v19  ;;  %v2714_v38 = vpop.f32.mrb[113].mxu0  ;;  %v2907_v39 = vpop.f32.mrb[113].mxu1  ;;  %3205 = vperm.xlu0 %4580, %v6388_v53  }
 0x45c   :  { %v2715_v27 = vadd.f32 %v2714_v38, %v2368_v19  ;;  %v2908_v34 = vadd.f32 %v2907_v39, %v2368_v19  ;;  %v2716_v31 = vpop.f32.mrb[114].mxu0  ;;  %v2909_v1 = vpop.f32.mrb[114].mxu1  ;;  %3478 = vmatprep.subr.bf16.mxu0 %v3149_v43  ;;  %3671 = vmatprep.subr.bf16.mxu1 %v3151_v50 }
 0x45d   :  { %v2717_v35 = vadd.f32 %v2716_v31, %v2372_v17  ;;  %v2910_v22 = vadd.f32 %v2909_v1, %v2372_v17  ;;  %v2718_v51 = vpop.f32.mrb[115].mxu0  ;;  %v2911_v9 = vpop.f32.mrb[115].mxu1  ;;  %3479 = vmatpush1.bf16.msra.mxu0 %v3148_v48  ;;  %3672 = vmatpush1.bf16.msra.mxu1 %v3150_v14  ;;  %v3040_v36 = vmax.f32 %v2713_v13, 0.0  ;;  %v3042_v32 = vmax.f32 %v2906_v41, 0.0 }
 0x45e   :  { %v2719_v5 = vadd.f32 %v2718_v51, %v2372_v17  ;;  %v2912_v7 = vadd.f32 %v2911_v9, %v2372_v17  ;;  %v3041_v57 = vmax.f32 %v2715_v27, 0.0  ;;  %v3043_v49 = vmax.f32 %v2908_v34, 0.0  ;;  %4019 = vperm.xlu1 %4578, %v6382_v30   ;;  %v2388_v39 = vpop.permute.xlu1 %2387  ;;  %v2384_v27 = vpop.permute.xlu0 %2383 }
 0x45f   :  { %v3044_v16 = vmax.f32 %v2717_v35, 0.0  ;;  %v3046_v3 = vmax.f32 %v2910_v22, 0.0  ;;  %3213 = vperm.xlu0 %4580, %v6400_v21  }
 0x460   :  { %v3045_v11 = vmax.f32 %v2719_v5, 0.0  ;;  %v3047_v25 = vmax.f32 %v2912_v7, 0.0 }
 0x461   :  { %v3152_v23 = vpack.c.bf16 %v3044_v16, %v3040_v36  ;;  %v3154_v61 = vpack.c.bf16 %v3046_v3, %v3042_v32 }
 0x462   :  { %v3153_v44 = vpack.c.bf16 %v3045_v11, %v3041_v57  ;;  %v3155_v47 = vpack.c.bf16 %v3047_v25, %v3043_v49  ;;  %v2722_v46 = vpop.f32.mrb[116].mxu0  ;;  %v2915_v0 = vpop.f32.mrb[116].mxu1  ;;  %4027 = vperm.xlu1 %4578, %v6394_v2  }
 0x463   :  { %v2723_v29 = vadd.f32 %v2722_v46, %v2376_v4  ;;  %v2916_v28 = vadd.f32 %v2915_v0, %v2376_v4  ;;  %v2724_v52 = vpop.f32.mrb[117].mxu0  ;;  %v2917_v40 = vpop.f32.mrb[117].mxu1  ;;  %3221 = vperm.xlu0 %4580, %v6412_v18  }
 0x464   :  { %v2725_v10 = vadd.f32 %v2724_v52, %v2376_v4  ;;  %v2918_v62 = vadd.f32 %v2917_v40, %v2376_v4  ;;  %v2726_v20 = vpop.f32.mrb[118].mxu0  ;;  %v2919_v26 = vpop.f32.mrb[118].mxu1  ;;  %3480 = vmatprep.subr.bf16.mxu0 %v3153_v44  ;;  %3673 = vmatprep.subr.bf16.mxu1 %v3155_v47 }
 0x465   :  { %v2727_v12 = vadd.f32 %v2726_v20, %v2380_v6  ;;  %v2920_v17 = vadd.f32 %v2919_v26, %v2380_v6  ;;  %v2728_v19 = vpop.f32.mrb[119].mxu0  ;;  %v2921_v48 = vpop.f32.mrb[119].mxu1  ;;  %3481 = vmatpush1.bf16.msra.mxu0 %v3152_v23  ;;  %3674 = vmatpush1.bf16.msra.mxu1 %v3154_v61  ;;  %v3048_v43 = vmax.f32 %v2723_v29, 0.0  ;;  %v3050_v50 = vmax.f32 %v2916_v28, 0.0 }
 0x466   :  { %v2729_v14 = vadd.f32 %v2728_v19, %v2380_v6  ;;  %v2922_v53 = vadd.f32 %v2921_v48, %v2380_v6  ;;  %v3049_v55 = vmax.f32 %v2725_v10, 0.0  ;;  %v3051_v13 = vmax.f32 %v2918_v62, 0.0  ;;  %4035 = vperm.xlu1 %4578, %v6406_v15   ;;  %v2396_v0 = vpop.permute.xlu1 %2395  ;;  %v2392_v29 = vpop.permute.xlu0 %2391 }
 0x467   :  { %v3052_v8 = vmax.f32 %v2727_v12, 0.0  ;;  %v3054_v30 = vmax.f32 %v2920_v17, 0.0  ;;  %3229 = vperm.xlu0 %4580, %v6424_v45  }
 0x468   :  { %v3053_v41 = vmax.f32 %v2729_v14, 0.0  ;;  %v3055_v38 = vmax.f32 %v2922_v53, 0.0 }
 0x469   :  { %v3156_v34 = vpack.c.bf16 %v3052_v8, %v3048_v43  ;;  %v3158_v31 = vpack.c.bf16 %v3054_v30, %v3050_v50 }
 0x46a   :  { %v3157_v1 = vpack.c.bf16 %v3053_v41, %v3049_v55  ;;  %v3159_v35 = vpack.c.bf16 %v3055_v38, %v3051_v13  ;;  %v2732_v22 = vpop.f32.mrb[120].mxu0  ;;  %v2925_v51 = vpop.f32.mrb[120].mxu1  ;;  %4043 = vperm.xlu1 %4578, %v6418_v59  }
 0x46b   :  { %v2733_v21 = vadd.f32 %v2732_v22, %v2384_v27  ;;  %v2926_v9 = vadd.f32 %v2925_v51, %v2384_v27  ;;  %v2734_v5 = vpop.f32.mrb[121].mxu0  ;;  %v2927_v7 = vpop.f32.mrb[121].mxu1  ;;  %3237 = vperm.xlu0 %4580, %v6436_v24   ;;  %v4685_v51 = vld [vmem:[#allocation5 + $0x14] ss:$8 sps:$4 sm:$0xff]  }
 0x46c   :  { %v2735_v2 = vadd.f32 %v2734_v5, %v2384_v27  ;;  %v2928_v36 = vadd.f32 %v2927_v7, %v2384_v27  ;;  %v2736_v32 = vpop.f32.mrb[122].mxu0  ;;  %v2929_v16 = vpop.f32.mrb[122].mxu1  ;;  %3482 = vmatprep.subr.bf16.mxu0 %v3157_v1  ;;  %3675 = vmatprep.subr.bf16.mxu1 %v3159_v35  ;;  %v4807_v5 = vld [vmem:[%s6811_s2 + $0xe8] sm:$0xff] }
 0x46d   :  { %v2737_v3 = vadd.f32 %v2736_v32, %v2388_v39  ;;  %v2930_v57 = vadd.f32 %v2929_v16, %v2388_v39  ;;  %v2738_v49 = vpop.f32.mrb[123].mxu0  ;;  %v2931_v11 = vpop.f32.mrb[123].mxu1  ;;  %3483 = vmatpush1.bf16.msra.mxu0 %v3156_v34  ;;  %3676 = vmatpush1.bf16.msra.mxu1 %v3158_v31  ;;  %v3056_v6 = vmax.f32 %v2733_v21, 0.0  ;;  %v3058_v4 = vmax.f32 %v2926_v9, 0.0  ;;  %v4688_v21 = vld [vmem:[#allocation5 + $0x24] ss:$8 sps:$4 sm:$0xff]  }
 0x46e   :  { %v2739_v25 = vadd.f32 %v2738_v49, %v2388_v39  ;;  %v2932_v18 = vadd.f32 %v2931_v11, %v2388_v39  ;;  %v3057_v61 = vmax.f32 %v2735_v2, 0.0  ;;  %v3059_v44 = vmax.f32 %v2928_v36, 0.0  ;;  %4051 = vperm.xlu1 %4578, %v6430_v58   ;;  %v4806_v9 = vld [vmem:[%s6811_s2 + $0xf0] sm:$0xff]  ;;  %v4691_v2 = vld [vmem:[#allocation5 + $0x34] ss:$8 sps:$4 sm:$0xff]  }
 0x46f   :  { %v3060_v23 = vmax.f32 %v2737_v3, 0.0  ;;  %v3062_v15 = vmax.f32 %v2930_v57, 0.0  ;;  %3245 = vperm.xlu0 %4580, %v6448_v37   ;;  %v4682_v37 = vld [vmem:[#allocation5] ss:$8 sps:$4 sm:$0xff]   ;;  %v4693_v36 = vld [vmem:[#allocation5 + $0x30] ss:$8 sps:$4 sm:$0xff]  }
 0x470   :  { %v3061_v47 = vmax.f32 %v2739_v25, 0.0  ;;  %v3063_v46 = vmax.f32 %v2932_v18, 0.0  ;;  %v4690_v7 = vld [vmem:[#allocation5 + $0x20] ss:$8 sps:$4 sm:$0xff]   ;;  %v4694_v32 = vld [vmem:[#allocation5 + $0x44] ss:$8 sps:$4 sm:$0xff]  }
 0x471   :  { %v3160_v28 = vpack.c.bf16 %v3060_v23, %v3056_v6  ;;  %v3162_v52 = vpack.c.bf16 %v3062_v15, %v3058_v4  ;;  %v4808_v16 = vld [vmem:[%s6811_s2 + $0xf8] sm:$0xff]  ;;  %v4696_v3 = vld [vmem:[#allocation5 + $0x40] ss:$8 sps:$4 sm:$0xff]   ;;  %v4700_v49 = vld [vmem:[#allocation5 + $0x64] ss:$8 sps:$4 sm:$0xff]  }
 0x472   :  { %v3161_v40 = vpack.c.bf16 %v3061_v47, %v3057_v61  ;;  %v3163_v10 = vpack.c.bf16 %v3063_v46, %v3059_v44  ;;  %v2742_v62 = vpop.f32.mrb[124].mxu0  ;;  %v2935_v20 = vpop.f32.mrb[124].mxu1  ;;  %4059 = vperm.xlu1 %4578, %v6442_v63   ;;  %v4803_v63 = vld [vmem:[%s6811_s2 + $0xc8] sm:$0xff]  ;;  %v4697_v57 = vld [vmem:[#allocation5 + $0x54] ss:$8 sps:$4 sm:$0xff]  }
 0x473   :  { %v2743_v45 = vadd.f32 %v2742_v62, %v2392_v29  ;;  %v2936_v26 = vadd.f32 %v2935_v20, %v2392_v29  ;;  %v2744_v12 = vpop.f32.mrb[125].mxu0  ;;  %v2937_v17 = vpop.f32.mrb[125].mxu1  ;;  %3253 = vperm.xlu0 %4580, %v6460_v54   ;;  %v4804_v54 = vld [vmem:[%s6811_s2 + $0xe0] sm:$0xff]  ;;  %v4702_v11 = vld [vmem:[#allocation5 + $0x60] ss:$8 sps:$4 sm:$0xff]  }
 0x474   :  { %v2745_v59 = vadd.f32 %v2744_v12, %v2392_v29  ;;  %v2938_v19 = vadd.f32 %v2937_v17, %v2392_v29  ;;  %v2746_v48 = vpop.f32.mrb[126].mxu0  ;;  %v2939_v14 = vpop.f32.mrb[126].mxu1  ;;  %3484 = vmatprep.subr.bf16.mxu0 %v3161_v40  ;;  %3677 = vmatprep.subr.bf16.mxu1 %v3163_v10  ;;  %v4703_v25 = vld [vmem:[#allocation5 + $0x74] ss:$8 sps:$4 sm:$0xff]   ;;  %v4705_v18 = vld [vmem:[#allocation5 + $0x70] ss:$8 sps:$4 sm:$0xff]  }
 0x475   :  { %v2747_v53 = vadd.f32 %v2746_v48, %v2396_v0  ;;  %v2940_v43 = vadd.f32 %v2939_v14, %v2396_v0  ;;  %v2748_v50 = vpop.f32.mrb[127].mxu0  ;;  %v2941_v8 = vpop.f32.mrb[127].mxu1  ;;  %3485 = vmatpush1.bf16.msra.mxu0 %v3160_v28  ;;  %3678 = vmatpush1.bf16.msra.mxu1 %v3162_v52  ;;  %v3064_v55 = vmax.f32 %v2743_v45, 0.0  ;;  %v3066_v13 = vmax.f32 %v2936_v26, 0.0  ;;  %v4708_v6 = vld [vmem:[#allocation5 + $0x80] ss:$8 sps:$4 sm:$0xff]  }
 0x476   :  { %v2749_v30 = vadd.f32 %v2748_v50, %v2396_v0  ;;  %v2942_v24 = vadd.f32 %v2941_v8, %v2396_v0  ;;  %v3065_v38 = vmax.f32 %v2745_v59, 0.0  ;;  %v3067_v39 = vmax.f32 %v2938_v19, 0.0  ;;  %4067 = vperm.xlu1 %4578, %v6454_v33   ;;  %v4687_v33 = vld [vmem:[#allocation5 + $0x10] ss:$8 sps:$4 sm:$0xff]   ;;  %v4709_v4 = vld [vmem:[#allocation5 + $0x94] ss:$8 sps:$4 sm:$0xff]  }
 0x477   :  { %v3068_v41 = vmax.f32 %v2747_v53, 0.0  ;;  %v3070_v58 = vmax.f32 %v2940_v43, 0.0  ;;  %3261 = vperm.xlu0 %4580, %v6469_v56   ;;  %v4805_v56 = vld [vmem:[%s6811_s2 + $0xd8] sm:$0xff]  ;;  %v4712_v15 = vld [vmem:[#allocation5 + $0xa4] ss:$8 sps:$4 sm:$0xff]   ;;  %v4891_v10 = vmov 5  }
 0x478   :  { %v3069_v27 = vmax.f32 %v2749_v30, 0.0  ;;  %v3071_v34 = vmax.f32 %v2942_v24, 0.0  ;;  %v4711_v23 = vld [vmem:[#allocation5 + $0x90] ss:$8 sps:$4 sm:$0xff]   ;;  %v4714_v61 = vld [vmem:[#allocation5 + $0xa0] ss:$8 sps:$4 sm:$0xff]  }
 0x479   :  { %v3164_v31 = vpack.c.bf16 %v3068_v41, %v3064_v55  ;;  %v3166_v1 = vpack.c.bf16 %v3070_v58, %v3066_v13  ;;  %v4715_v44 = vld [vmem:[#allocation5 + $0xb4] ss:$8 sps:$4 sm:$0xff]   ;;  %v4717_v47 = vld [vmem:[#allocation5 + $0xb0] ss:$8 sps:$4 sm:$0xff]   ;;  %v4718_v46 = vld [vmem:[#allocation5 + $0xc4] ss:$8 sps:$4 sm:$0xff]  }
 0x47a   :  { %v3165_v35 = vpack.c.bf16 %v3069_v27, %v3065_v38  ;;  %v3167_v22 = vpack.c.bf16 %v3071_v34, %v3067_v39  ;;  %4071 = vperm.xlu1 %4578, %v4803_v63   ;;  %v4720_v0 = vld [vmem:[#allocation5 + $0xc0] ss:$8 sps:$4 sm:$0xff]   ;;  %v4721_v29 = vld [vmem:[#allocation5 + $0xd4] ss:$8 sps:$4 sm:$0xff]   ;;  %v4723_v28 = vld [vmem:[#allocation5 + $0xd0] ss:$8 sps:$4 sm:$0xff]  }
 0x47b   :  { %3269 = vperm.xlu0 %4580, %v4803_v63   ;;  %v4724_v52 = vld [vmem:[#allocation5 + $0xe4] ss:$8 sps:$4 sm:$0xff]   ;;  %v4809_v62 = vld [vmem:[%s6811_s2] sm:$0xff]  ;;  %v4726_v20 = vld [vmem:[#allocation5 + $0xe0] ss:$8 sps:$4 sm:$0xff]   ;;  %s4893_s2 = smov [#allocation7]  }
 0x47c   :  { %3486 = vmatprep.subr.bf16.mxu0 %v3165_v35  ;;  %3679 = vmatprep.subr.bf16.mxu1 %v3167_v22  ;;  %v4727_v26 = vld [vmem:[#allocation5 + $0xf4] ss:$8 sps:$4 sm:$0xff]   ;;  %v4729_v17 = vld [vmem:[#allocation5 + $0xf0] ss:$8 sps:$4 sm:$0xff]   ;;  %s4422_s27 = sshll.u32 %s4893_s2, 4  ;;  %s4423_s27 = int_to_ptr.vmem [resolvable:$true] %s4422_s27 }
 0x47d   :  { %3487 = vmatpush1.bf16.msra.mxu0 %v3164_v31  ;;  %3680 = vmatpush1.bf16.msra.mxu1 %v3166_v1  ;;  %s4854_s1 = scalar_lea.vmem %s4423_s27, 64  ;;  %p4859_p3 = scmp.lt.s32.totalorder %s4423_s27, %s4423_s27 }
 0x47e   :  { %4579 = vset.pattern.permute.xlu1 %v4889_v60  ;;  %p4855_p2 = scmp.ne.s32.totalorder %s4423_s27, %s4854_s1  ;;  %p4860_p4 = scmp.lt.s32.totalorder %s4854_s1, %s4854_s1 }
 0x47f   :  { %3281 = vperm.xlu1 %4579, %v4804_v54   ;;  %3277 = vperm.xlu0 %4580, %v4805_v56  }
 0x480   :  { %3489 = vmatmul.mubr.bf16.vlgmr.msra.gmra.mrb[128].mxu0 %v4682_v37  ;;  %3682 = vmatmul.mubr.bf16.vlgmr.msra.gmra.mrb[128].mxu1 %v4682_v37  ;;  %p4861_p5 = por %p4860_p4, %p4859_p3 }
 0x481   :  { %3498 = vmatprep.mubr.bf16.mxu0 %v4685_v51  ;;  %3691 = vmatprep.mubr.bf16.mxu1 %v4685_v51 }
 0x482   :  { %p4862_p6 = pnand %p4861_p5, %p4855_p2 }
 0x483   :  { %3289 = vperm.xlu0 %4580, %v4806_v9   ;;  %3285 = vperm.xlu1 %4579, %v4807_v5  }
 0x485   :  { %v6522_v40 = vpop.permute.xlu1 %3173 }
 0x487   :  { %4581 = vset.pattern.permute.xlu1 %v4890_v42  ;;  %4583 = vset.pattern.permute.xlu0 %v4890_v42 }
 0x488   :  { %3499 = vmatmul.mubr.bf16.gmra.mrb[132].mxu0 %v4687_v33  ;;  %3692 = vmatmul.mubr.bf16.gmra.mrb[132].mxu1 %v4687_v33 }
 0x489   :  { %3508 = vmatprep.mubr.bf16.mxu0 %v4688_v21  ;;  %3701 = vmatprep.mubr.bf16.mxu1 %v4688_v21  ;;  %v6527_v45 = vpop.permute.xlu1 %3177 }
 0x48a   :  { %4079 = vperm.xlu1 %4581, %v4805_v56   ;;  %4087 = vperm.xlu0 %4583, %v4807_v5  }
 0x48d   :  { %v6529_v12 = vpop.permute.xlu1 %3185 }
 0x48e   :  { %4083 = vperm.xlu1 %4581, %v4804_v54   ;;  %4585 = vset.pattern.permute.xlu0 %v4891_v10 }
 0x48f   :  { %4375 = vperm.xlu0 %4585, %v4809_v62  }
 0x490   :  { %3509 = vmatmul.mubr.bf16.gmra.mrb[136].mxu0 %v4690_v7  ;;  %3702 = vmatmul.mubr.bf16.gmra.mrb[136].mxu1 %v4690_v7  ;;  %v3972_v48 = vpop.permute.xlu0 %3971 }
 0x491   :  { %3518 = vmatprep.mubr.bf16.mxu0 %v4691_v2  ;;  %3711 = vmatprep.mubr.bf16.mxu1 %v4691_v2 }
 0x492   :  { %4582 = vset.pattern.permute.xlu1 %v4889_v60  ;;  %v4699_v60 = vld [vmem:[#allocation5 + $0x50] ss:$8 sps:$4 sm:$0xff]   ;;  %v6531_v59 = vpop.permute.xlu1 %3193 }
 0x493   :  { %3293 = vperm.xlu1 %4582, %v4808_v16  }
 0x495   :  { %v6537_v53 = vpop.permute.xlu0 %3983 }
 0x496   :  { %v6533_v19 = vpop.permute.xlu1 %3201 }
 0x497   :  { %4584 = vset.pattern.permute.xlu1 %v4890_v42  ;;  %v4706_v42 = vld [vmem:[#allocation5 + $0x84] ss:$8 sps:$4 sm:$0xff]  }
 0x498   :  { %3519 = vmatmul.mubr.bf16.gmra.mrb[140].mxu0 %v4693_v36  ;;  %3712 = vmatmul.mubr.bf16.gmra.mrb[140].mxu1 %v4693_v36 }
 0x499   :  { %3528 = vmatprep.mubr.bf16.mxu0 %v4694_v32  ;;  %3721 = vmatprep.mubr.bf16.mxu1 %v4694_v32  ;;  %v6541_v50 = vpop.permute.xlu0 %3991 }
 0x49a   :  { %4091 = vperm.xlu1 %4584, %v4806_v9   ;;  %v6535_v14 = vpop.permute.xlu1 %3209 }
 0x49d   :  { %v6545_v30 = vpop.permute.xlu0 %3999 }
 0x49e   :  { %4095 = vperm.xlu1 %4584, %v4808_v16  }
 0x49f   :  { %v6539_v43 = vpop.permute.xlu1 %3217 }
 0x4a0   :  { %3529 = vmatmul.mubr.bf16.gmra.mrb[144].mxu0 %v4696_v3  ;;  %3722 = vmatmul.mubr.bf16.gmra.mrb[144].mxu1 %v4696_v3 }
 0x4a1   :  { %3538 = vmatprep.mubr.bf16.mxu0 %v4697_v57  ;;  %3731 = vmatprep.mubr.bf16.mxu1 %v4697_v57  ;;  %v6549_v55 = vpop.permute.xlu0 %4007 }
 0x4a5   :  { %v6543_v8 = vpop.permute.xlu1 %3225  ;;  %v6553_v41 = vpop.permute.xlu0 %4015 }
 0x4a8   :  { %3539 = vmatmul.mubr.bf16.gmra.mrb[148].mxu0 %v4699_v60  ;;  %3732 = vmatmul.mubr.bf16.gmra.mrb[148].mxu1 %v4699_v60 }
 0x4a9   :  { %3548 = vmatprep.mubr.bf16.mxu0 %v4700_v49  ;;  %3741 = vmatprep.mubr.bf16.mxu1 %v4700_v49  ;;  %v6547_v24 = vpop.permute.xlu1 %3233  ;;  %v6557_v38 = vpop.permute.xlu0 %4023 }
 0x4ad   :  { %v6551_v13 = vpop.permute.xlu1 %3241  ;;  %v6561_v27 = vpop.permute.xlu0 %4031 }
 0x4b0   :  { %3549 = vmatmul.mubr.bf16.gmra.mrb[152].mxu0 %v4702_v11  ;;  %3742 = vmatmul.mubr.bf16.gmra.mrb[152].mxu1 %v4702_v11 }
 0x4b1   :  { %3558 = vmatprep.mubr.bf16.mxu0 %v4703_v25  ;;  %3751 = vmatprep.mubr.bf16.mxu1 %v4703_v25  ;;  %v6555_v58 = vpop.permute.xlu1 %3249 }
 0x4b2   :  { %v6565_v31 = vpop.permute.xlu0 %4039 }
 0x4b5   :  { %v6559_v39 = vpop.permute.xlu1 %3257 }
 0x4b6   :  { %v6569_v35 = vpop.permute.xlu0 %4047 }
 0x4b8   :  { %3559 = vmatmul.mubr.bf16.gmra.mrb[156].mxu0 %v4705_v18  ;;  %3752 = vmatmul.mubr.bf16.gmra.mrb[156].mxu1 %v4705_v18 }
 0x4b9   :  { %3568 = vmatprep.mubr.bf16.mxu0 %v4706_v42  ;;  %3761 = vmatprep.mubr.bf16.mxu1 %v4706_v42 }
 0x4ba   :  { %v6563_v34 = vpop.permute.xlu1 %3265 }
 0x4bd   :  { %v6571_v37 = vpop.permute.xlu0 %4055 }
 0x4be   :  { %v6567_v1 = vpop.permute.xlu1 %3273 }
 0x4c0   :  { %3569 = vmatmul.mubr.bf16.gmra.mrb[160].mxu0 %v4708_v6  ;;  %3762 = vmatmul.mubr.bf16.gmra.mrb[160].mxu1 %v4708_v6 }
 0x4c1   :  { %3578 = vmatprep.mubr.bf16.mxu0 %v4709_v4  ;;  %3771 = vmatprep.mubr.bf16.mxu1 %v4709_v4  ;;  %v6575_v63 = vpop.permute.xlu0 %4063 }
 0x4c5   :  { %v3976_v22 = vpop.permute.xlu1 %3975  ;;  %v6579_v54 = vpop.permute.xlu0 %4075 }
 0x4c8   :  { %3579 = vmatmul.mubr.bf16.gmra.mrb[164].mxu0 %v4711_v23  ;;  %3772 = vmatmul.mubr.bf16.gmra.mrb[164].mxu1 %v4711_v23 }
 0x4c9   :  { %3588 = vmatprep.mubr.bf16.mxu0 %v4712_v15  ;;  %3781 = vmatprep.mubr.bf16.mxu1 %v4712_v15  ;;  %v6573_v51 = vpop.permute.xlu1 %3979 }
 0x4ca   :  { %v3170_v56 = vpop.permute.xlu0 %3169 }
 0x4cd   :  { %v6577_v33 = vpop.permute.xlu1 %3987 }
 0x4d0   :  { %3589 = vmatmul.mubr.bf16.gmra.mrb[168].mxu0 %v4714_v61  ;;  %3782 = vmatmul.mubr.bf16.gmra.mrb[168].mxu1 %v4714_v61 }
 0x4d1   :  { %3598 = vmatprep.mubr.bf16.mxu0 %v4715_v44  ;;  %3791 = vmatprep.mubr.bf16.mxu1 %v4715_v44  ;;  %v6581_v21 = vpop.permute.xlu1 %3995 }
 0x4d5   :  { %v6583_v9 = vpop.permute.xlu1 %4003 }
 0x4d8   :  { %3599 = vmatmul.mubr.bf16.gmra.mrb[172].mxu0 %v4717_v47  ;;  %3792 = vmatmul.mubr.bf16.gmra.mrb[172].mxu1 %v4717_v47 }
 0x4d9   :  { %3608 = vmatprep.mubr.bf16.mxu0 %v4718_v46  ;;  %3801 = vmatprep.mubr.bf16.mxu1 %v4718_v46 }
 0x4e0   :  { %3609 = vmatmul.mubr.bf16.gmra.mrb[176].mxu0 %v4720_v0  ;;  %3802 = vmatmul.mubr.bf16.gmra.mrb[176].mxu1 %v4720_v0 }
 0x4e1   :  { %3618 = vmatprep.mubr.bf16.mxu0 %v4721_v29  ;;  %3811 = vmatprep.mubr.bf16.mxu1 %v4721_v29 }
 0x4e8   :  { %3619 = vmatmul.mubr.bf16.gmra.mrb[180].mxu0 %v4723_v28  ;;  %3812 = vmatmul.mubr.bf16.gmra.mrb[180].mxu1 %v4723_v28 }
 0x4e9   :  { %3628 = vmatprep.mubr.bf16.mxu0 %v4724_v52  ;;  %3821 = vmatprep.mubr.bf16.mxu1 %v4724_v52 }
 0x4f0   :  { %3629 = vmatmul.mubr.bf16.gmra.mrb[184].mxu0 %v4726_v20  ;;  %3822 = vmatmul.mubr.bf16.gmra.mrb[184].mxu1 %v4726_v20  ;;  %v3182_v20 = vpop.permute.xlu0 %3181 }
 0x4f1   :  { %3638 = vmatprep.mubr.bf16.mxu0 %v4727_v26  ;;  %3831 = vmatprep.mubr.bf16.mxu1 %v4727_v26  ;;  %v6589_v26 = vpop.permute.xlu1 %4011 }
 0x4f8   :  { %3639 = vmatmul.mubr.bf16.gmra.mrb[188].mxu0 %v4729_v17  ;;  %3832 = vmatmul.mubr.bf16.gmra.mrb[188].mxu1 %v4729_v17 }
 0x553   :  { %v3490_v5 = vpop.f32.mrb[128].mxu0  ;;  %v3683_v7 = vpop.f32.mrb[128].mxu1 }
 0x554   :  { %v3492_v2 = vpop.f32.mrb[129].mxu0  ;;  %v3685_v36 = vpop.f32.mrb[129].mxu1  ;;  %v3491_v32 = vadd.f32 %v3490_v5, %v3170_v56  ;;  %v3684_v16 = vadd.f32 %v3683_v7, %v3170_v56 }
 0x555   :  { %v3493_v3 = vadd.f32 %v3492_v2, %v3170_v56  ;;  %v3686_v57 = vadd.f32 %v3685_v36, %v3170_v56  ;;  %v3494_v60 = vpop.f32.mrb[130].mxu0  ;;  %v3687_v49 = vpop.f32.mrb[130].mxu1 }
 0x556   :  { %v3842_v11 = vmax.f32 %v3491_v32, 0.0  ;;  %v3844_v25 = vmax.f32 %v3684_v16, 0.0  ;;  %v3495_v18 = vadd.f32 %v3494_v60, %v6522_v40  ;;  %v3688_v42 = vadd.f32 %v3687_v49, %v6522_v40  ;;  %v3496_v6 = vpop.f32.mrb[131].mxu0  ;;  %v3689_v4 = vpop.f32.mrb[131].mxu1 }
 0x557   :  { %v3843_v23 = vmax.f32 %v3493_v3, 0.0  ;;  %v3845_v15 = vmax.f32 %v3686_v57, 0.0  ;;  %v3497_v61 = vadd.f32 %v3496_v6, %v6522_v40  ;;  %v3690_v44 = vadd.f32 %v3689_v4, %v6522_v40 }
 0x558   :  { %v3846_v47 = vmax.f32 %v3495_v18, 0.0  ;;  %v3848_v46 = vmax.f32 %v3688_v42, 0.0  ;;  %v4098_v28 = vmul.f32 %v3972_v48, %v3842_v11  ;;  %v4100_v10 = vmul.f32 %v3972_v48, %v3844_v25 }
 0x559   :  { %v3847_v0 = vmax.f32 %v3497_v61, 0.0  ;;  %v3849_v29 = vmax.f32 %v3690_v44, 0.0  ;;  %v4099_v17 = vmul.f32 %v3972_v48, %v3843_v23  ;;  %v4101_v5 = vmul.f32 %v3972_v48, %v3845_v15 }
 0x55a   :  { %v4102_v52 = vmul.f32 %v3976_v22, %v3846_v47  ;;  %v4104_v62 = vmul.f32 %v3976_v22, %v3848_v46 }
 0x55b   :  { %v4103_v56 = vmul.f32 %v3976_v22, %v3847_v0  ;;  %v4105_v7 = vmul.f32 %v3976_v22, %v3849_v29  ;;  %v3500_v2 = vpop.f32.mrb[132].mxu0  ;;  %v3693_v36 = vpop.f32.mrb[132].mxu1 }
 0x55c   :  { %v4226_v32 = vadd.f32 %v4102_v52, %v4098_v28  ;;  %v4300_v16 = vadd.f32 %v4104_v62, %v4100_v10  ;;  %v3501_v40 = vadd.f32 %v3500_v2, %v6527_v45  ;;  %v3694_v3 = vadd.f32 %v3693_v36, %v6527_v45  ;;  %v3502_v57 = vpop.f32.mrb[133].mxu0  ;;  %v3695_v60 = vpop.f32.mrb[133].mxu1 }
 0x55d   :  { %v4263_v49 = vadd.f32 %v4103_v56, %v4099_v17  ;;  %v4337_v11 = vadd.f32 %v4105_v7, %v4101_v5  ;;  %v3503_v25 = vadd.f32 %v3502_v57, %v6527_v45  ;;  %v3696_v18 = vadd.f32 %v3695_v60, %v6527_v45  ;;  %v3504_v42 = vpop.f32.mrb[134].mxu0  ;;  %v3697_v6 = vpop.f32.mrb[134].mxu1 }
 0x55e   :  { %v3850_v48 = vmax.f32 %v3501_v40, 0.0  ;;  %v3852_v22 = vmax.f32 %v3694_v3, 0.0  ;;  %v3505_v4 = vadd.f32 %v3504_v42, %v3182_v20  ;;  %v3698_v23 = vadd.f32 %v3697_v6, %v3182_v20  ;;  %v3506_v15 = vpop.f32.mrb[135].mxu0  ;;  %v3699_v61 = vpop.f32.mrb[135].mxu1 }
 0x55f   :  { %v3851_v44 = vmax.f32 %v3503_v25, 0.0  ;;  %v3853_v47 = vmax.f32 %v3696_v18, 0.0  ;;  %v3507_v46 = vadd.f32 %v3506_v15, %v3182_v20  ;;  %v3700_v0 = vadd.f32 %v3699_v61, %v3182_v20  ;;  %v3190_v40 = vpop.permute.xlu0 %3189  ;;  %v6601_v20 = vpop.permute.xlu1 %4019 }
 0x560   :  { %v4106_v29 = vmul.f32 %v6573_v51, %v3850_v48  ;;  %v4108_v28 = vmul.f32 %v6573_v51, %v3852_v22  ;;  %v3854_v52 = vmax.f32 %v3505_v4, 0.0  ;;  %v3856_v10 = vmax.f32 %v3698_v23, 0.0 }
 0x561   :  { %v4107_v45 = vmul.f32 %v6573_v51, %v3851_v44  ;;  %v4109_v62 = vmul.f32 %v6573_v51, %v3853_v47  ;;  %v3855_v17 = vmax.f32 %v3507_v46, 0.0  ;;  %v3857_v56 = vmax.f32 %v3700_v0, 0.0 }
 0x562   :  { %v4227_v5 = vadd.f32 %v4226_v32, %v4106_v29  ;;  %v4301_v7 = vadd.f32 %v4300_v16, %v4108_v28  ;;  %v4110_v2 = vmul.f32 %v6537_v53, %v3854_v52  ;;  %v4112_v36 = vmul.f32 %v6537_v53, %v3856_v10 }
 0x563   :  { %v4264_v3 = vadd.f32 %v4263_v49, %v4107_v45  ;;  %v4338_v57 = vadd.f32 %v4337_v11, %v4109_v62  ;;  %v4111_v60 = vmul.f32 %v6537_v53, %v3855_v17  ;;  %v4113_v25 = vmul.f32 %v6537_v53, %v3857_v56  ;;  %v3510_v18 = vpop.f32.mrb[136].mxu0  ;;  %v3703_v42 = vpop.f32.mrb[136].mxu1 }
 0x564   :  { %v4228_v51 = vadd.f32 %v4227_v5, %v4110_v2  ;;  %v4302_v6 = vadd.f32 %v4301_v7, %v4112_v36  ;;  %v3511_v32 = vadd.f32 %v3510_v18, %v6529_v12  ;;  %v3704_v16 = vadd.f32 %v3703_v42, %v6529_v12  ;;  %v3512_v48 = vpop.f32.mrb[137].mxu0  ;;  %v3705_v22 = vpop.f32.mrb[137].mxu1 }
 0x565   :  { %v4265_v4 = vadd.f32 %v4264_v3, %v4111_v60  ;;  %v4339_v23 = vadd.f32 %v4338_v57, %v4113_v25  ;;  %v3513_v15 = vadd.f32 %v3512_v48, %v6529_v12  ;;  %v3706_v49 = vadd.f32 %v3705_v22, %v6529_v12  ;;  %v3514_v11 = vpop.f32.mrb[138].mxu0  ;;  %v3707_v61 = vpop.f32.mrb[138].mxu1 }
 0x566   :  { %v3858_v44 = vmax.f32 %v3511_v32, 0.0  ;;  %v3860_v53 = vmax.f32 %v3704_v16, 0.0  ;;  %v3515_v47 = vadd.f32 %v3514_v11, %v3190_v40  ;;  %v3708_v46 = vadd.f32 %v3707_v61, %v3190_v40  ;;  %v3516_v0 = vpop.f32.mrb[139].mxu0  ;;  %v3709_v29 = vpop.f32.mrb[139].mxu1 }
 0x567   :  { %v3859_v28 = vmax.f32 %v3513_v15, 0.0  ;;  %v3861_v52 = vmax.f32 %v3706_v49, 0.0  ;;  %v3517_v10 = vadd.f32 %v3516_v0, %v3190_v40  ;;  %v3710_v45 = vadd.f32 %v3709_v29, %v3190_v40  ;;  %v3198_v18 = vpop.permute.xlu0 %3197  ;;  %v6615_v40 = vpop.permute.xlu1 %4027 }
 0x568   :  { %v4114_v62 = vmul.f32 %v6577_v33, %v3858_v44  ;;  %v4116_v17 = vmul.f32 %v6577_v33, %v3860_v53  ;;  %v3862_v56 = vmax.f32 %v3515_v47, 0.0  ;;  %v3864_v5 = vmax.f32 %v3708_v46, 0.0 }
 0x569   :  { %v4115_v12 = vmul.f32 %v6577_v33, %v3859_v28  ;;  %v4117_v7 = vmul.f32 %v6577_v33, %v3861_v52  ;;  %v3863_v2 = vmax.f32 %v3517_v10, 0.0  ;;  %v3865_v36 = vmax.f32 %v3710_v45, 0.0 }
 0x56a   :  { %v4229_v3 = vadd.f32 %v4228_v51, %v4114_v62  ;;  %v4303_v57 = vadd.f32 %v4302_v6, %v4116_v17  ;;  %v4118_v60 = vmul.f32 %v6541_v50, %v3862_v56  ;;  %v4120_v25 = vmul.f32 %v6541_v50, %v3864_v5 }
 0x56b   :  { %v4266_v42 = vadd.f32 %v4265_v4, %v4115_v12  ;;  %v4340_v32 = vadd.f32 %v4339_v23, %v4117_v7  ;;  %v4119_v16 = vmul.f32 %v6541_v50, %v3863_v2  ;;  %v4121_v48 = vmul.f32 %v6541_v50, %v3865_v36  ;;  %v3520_v22 = vpop.f32.mrb[140].mxu0  ;;  %v3713_v15 = vpop.f32.mrb[140].mxu1 }
 0x56c   :  { %v4230_v33 = vadd.f32 %v4229_v3, %v4118_v60  ;;  %v4304_v49 = vadd.f32 %v4303_v57, %v4120_v25  ;;  %v3521_v51 = vadd.f32 %v3520_v22, %v6531_v59  ;;  %v3714_v6 = vadd.f32 %v3713_v15, %v6531_v59  ;;  %v3522_v11 = vpop.f32.mrb[141].mxu0  ;;  %v3715_v61 = vpop.f32.mrb[141].mxu1 }
 0x56d   :  { %v4267_v44 = vadd.f32 %v4266_v42, %v4119_v16  ;;  %v4341_v53 = vadd.f32 %v4340_v32, %v4121_v48  ;;  %v3523_v47 = vadd.f32 %v3522_v11, %v6531_v59  ;;  %v3716_v4 = vadd.f32 %v3715_v61, %v6531_v59  ;;  %v3524_v23 = vpop.f32.mrb[142].mxu0  ;;  %v3717_v46 = vpop.f32.mrb[142].mxu1 }
 0x56e   :  { %v3866_v0 = vmax.f32 %v3521_v51, 0.0  ;;  %v3868_v50 = vmax.f32 %v3714_v6, 0.0  ;;  %v3525_v29 = vadd.f32 %v3524_v23, %v3198_v18  ;;  %v3718_v28 = vadd.f32 %v3717_v46, %v3198_v18  ;;  %v3526_v52 = vpop.f32.mrb[143].mxu0  ;;  %v3719_v10 = vpop.f32.mrb[143].mxu1 }
 0x56f   :  { %v3867_v45 = vmax.f32 %v3523_v47, 0.0  ;;  %v3869_v62 = vmax.f32 %v3716_v4, 0.0  ;;  %v3527_v17 = vadd.f32 %v3526_v52, %v3198_v18  ;;  %v3720_v56 = vadd.f32 %v3719_v10, %v3198_v18  ;;  %v3206_v16 = vpop.permute.xlu0 %3205  ;;  %v6629_v18 = vpop.permute.xlu1 %4035 }
 0x570   :  { %v4122_v5 = vmul.f32 %v6581_v21, %v3866_v0  ;;  %v4124_v12 = vmul.f32 %v6581_v21, %v3868_v50  ;;  %v3870_v7 = vmax.f32 %v3525_v29, 0.0  ;;  %v3872_v2 = vmax.f32 %v3718_v28, 0.0 }
 0x571   :  { %v4123_v59 = vmul.f32 %v6581_v21, %v3867_v45  ;;  %v4125_v36 = vmul.f32 %v6581_v21, %v3869_v62  ;;  %v3871_v3 = vmax.f32 %v3527_v17, 0.0  ;;  %v3873_v57 = vmax.f32 %v3720_v56, 0.0 }
 0x572   :  { %v4231_v60 = vadd.f32 %v4230_v33, %v4122_v5  ;;  %v4305_v25 = vadd.f32 %v4304_v49, %v4124_v12  ;;  %v4126_v42 = vmul.f32 %v6545_v30, %v3870_v7  ;;  %v4128_v32 = vmul.f32 %v6545_v30, %v3872_v2 }
 0x573   :  { %v4268_v48 = vadd.f32 %v4267_v44, %v4123_v59  ;;  %v4342_v22 = vadd.f32 %v4341_v53, %v4125_v36  ;;  %v4127_v15 = vmul.f32 %v6545_v30, %v3871_v3  ;;  %v4129_v51 = vmul.f32 %v6545_v30, %v3873_v57  ;;  %v3530_v6 = vpop.f32.mrb[144].mxu0  ;;  %v3723_v11 = vpop.f32.mrb[144].mxu1 }
 0x574   :  { %v4232_v21 = vadd.f32 %v4231_v60, %v4126_v42  ;;  %v4306_v61 = vadd.f32 %v4305_v25, %v4128_v32  ;;  %v3531_v33 = vadd.f32 %v3530_v6, %v6533_v19  ;;  %v3724_v49 = vadd.f32 %v3723_v11, %v6533_v19  ;;  %v3532_v47 = vpop.f32.mrb[145].mxu0  ;;  %v3725_v4 = vpop.f32.mrb[145].mxu1 }
 0x575   :  { %v4269_v23 = vadd.f32 %v4268_v48, %v4127_v15  ;;  %v4343_v46 = vadd.f32 %v4342_v22, %v4129_v51  ;;  %v3533_v0 = vadd.f32 %v3532_v47, %v6533_v19  ;;  %v3726_v44 = vadd.f32 %v3725_v4, %v6533_v19  ;;  %v3534_v53 = vpop.f32.mrb[146].mxu0  ;;  %v3727_v50 = vpop.f32.mrb[146].mxu1 }
 0x576   :  { %v3874_v29 = vmax.f32 %v3531_v33, 0.0  ;;  %v3876_v30 = vmax.f32 %v3724_v49, 0.0  ;;  %v3535_v28 = vadd.f32 %v3534_v53, %v3206_v16  ;;  %v3728_v52 = vadd.f32 %v3727_v50, %v3206_v16  ;;  %v3536_v10 = vpop.f32.mrb[147].mxu0  ;;  %v3729_v45 = vpop.f32.mrb[147].mxu1 }
 0x577   :  { %v3875_v62 = vmax.f32 %v3533_v0, 0.0  ;;  %v3877_v17 = vmax.f32 %v3726_v44, 0.0  ;;  %v3537_v56 = vadd.f32 %v3536_v10, %v3206_v16  ;;  %v3730_v5 = vadd.f32 %v3729_v45, %v3206_v16  ;;  %v3214_v60 = vpop.permute.xlu0 %3213  ;;  %v6641_v25 = vpop.permute.xlu1 %4043 }
 0x578   :  { %v4130_v12 = vmul.f32 %v6583_v9, %v3874_v29  ;;  %v4132_v7 = vmul.f32 %v6583_v9, %v3876_v30  ;;  %v3878_v2 = vmax.f32 %v3535_v28, 0.0  ;;  %v3880_v59 = vmax.f32 %v3728_v52, 0.0 }
 0x579   :  { %v4131_v19 = vmul.f32 %v6583_v9, %v3875_v62  ;;  %v4133_v36 = vmul.f32 %v6583_v9, %v3877_v17  ;;  %v3879_v3 = vmax.f32 %v3537_v56, 0.0  ;;  %v3881_v57 = vmax.f32 %v3730_v5, 0.0 }
 0x57a   :  { %v4233_v42 = vadd.f32 %v4232_v21, %v4130_v12  ;;  %v4307_v32 = vadd.f32 %v4306_v61, %v4132_v7  ;;  %v4134_v48 = vmul.f32 %v6549_v55, %v3878_v2  ;;  %v4136_v16 = vmul.f32 %v6549_v55, %v3880_v59 }
 0x57b   :  { %v4270_v22 = vadd.f32 %v4269_v23, %v4131_v19  ;;  %v4344_v15 = vadd.f32 %v4343_v46, %v4133_v36  ;;  %v4135_v51 = vmul.f32 %v6549_v55, %v3879_v3  ;;  %v4137_v6 = vmul.f32 %v6549_v55, %v3881_v57  ;;  %v3540_v11 = vpop.f32.mrb[148].mxu0  ;;  %v3733_v33 = vpop.f32.mrb[148].mxu1 }
 0x57c   :  { %v4234_v9 = vadd.f32 %v4233_v42, %v4134_v48  ;;  %v4308_v49 = vadd.f32 %v4307_v32, %v4136_v16  ;;  %v3541_v47 = vadd.f32 %v3540_v11, %v6535_v14  ;;  %v3734_v4 = vadd.f32 %v3733_v33, %v6535_v14  ;;  %v3542_v21 = vpop.f32.mrb[149].mxu0  ;;  %v3735_v61 = vpop.f32.mrb[149].mxu1 }
 0x57d   :  { %v4271_v0 = vadd.f32 %v4270_v22, %v4135_v51  ;;  %v4345_v44 = vadd.f32 %v4344_v15, %v4137_v6  ;;  %v3543_v53 = vadd.f32 %v3542_v21, %v6535_v14  ;;  %v3736_v23 = vadd.f32 %v3735_v61, %v6535_v14  ;;  %v3544_v46 = vpop.f32.mrb[150].mxu0  ;;  %v3737_v50 = vpop.f32.mrb[150].mxu1 }
 0x57e   :  { %v3882_v29 = vmax.f32 %v3541_v47, 0.0  ;;  %v3884_v55 = vmax.f32 %v3734_v4, 0.0  ;;  %v3545_v30 = vadd.f32 %v3544_v46, %v3214_v60  ;;  %v3738_v28 = vadd.f32 %v3737_v50, %v3214_v60  ;;  %v3546_v52 = vpop.f32.mrb[151].mxu0  ;;  %v3739_v10 = vpop.f32.mrb[151].mxu1 }
 0x57f   :  { %v3883_v45 = vmax.f32 %v3543_v53, 0.0  ;;  %v3885_v62 = vmax.f32 %v3736_v23, 0.0  ;;  %v3547_v17 = vadd.f32 %v3546_v52, %v3214_v60  ;;  %v3740_v56 = vadd.f32 %v3739_v10, %v3214_v60  ;;  %v3222_v3 = vpop.permute.xlu0 %3221  ;;  %v6655_v57 = vpop.permute.xlu1 %4051 }
 0x580   :  { %v4138_v5 = vmul.f32 %v6589_v26, %v3882_v29  ;;  %v4140_v12 = vmul.f32 %v6589_v26, %v3884_v55  ;;  %v3886_v7 = vmax.f32 %v3545_v30, 0.0  ;;  %v3888_v2 = vmax.f32 %v3738_v28, 0.0 }
 0x581   :  { %v4139_v14 = vmul.f32 %v6589_v26, %v3883_v45  ;;  %v4141_v59 = vmul.f32 %v6589_v26, %v3885_v62  ;;  %v3887_v19 = vmax.f32 %v3547_v17, 0.0  ;;  %v3889_v36 = vmax.f32 %v3740_v56, 0.0 }
 0x582   :  { %v4235_v42 = vadd.f32 %v4234_v9, %v4138_v5  ;;  %v4309_v32 = vadd.f32 %v4308_v49, %v4140_v12  ;;  %v4142_v48 = vmul.f32 %v6553_v41, %v3886_v7  ;;  %v4144_v60 = vmul.f32 %v6553_v41, %v3888_v2 }
 0x583   :  { %v4272_v16 = vadd.f32 %v4271_v0, %v4139_v14  ;;  %v4346_v22 = vadd.f32 %v4345_v44, %v4141_v59  ;;  %v4143_v15 = vmul.f32 %v6553_v41, %v3887_v19  ;;  %v4145_v51 = vmul.f32 %v6553_v41, %v3889_v36  ;;  %v3550_v6 = vpop.f32.mrb[152].mxu0  ;;  %v3743_v11 = vpop.f32.mrb[152].mxu1 }
 0x584   :  { %v4236_v26 = vadd.f32 %v4235_v42, %v4142_v48  ;;  %v4310_v33 = vadd.f32 %v4309_v32, %v4144_v60  ;;  %v3551_v47 = vadd.f32 %v3550_v6, %v6539_v43  ;;  %v3744_v4 = vadd.f32 %v3743_v11, %v6539_v43  ;;  %v3552_v9 = vpop.f32.mrb[153].mxu0  ;;  %v3745_v49 = vpop.f32.mrb[153].mxu1 }
 0x585   :  { %v4273_v21 = vadd.f32 %v4272_v16, %v4143_v15  ;;  %v4347_v61 = vadd.f32 %v4346_v22, %v4145_v51  ;;  %v3553_v53 = vadd.f32 %v3552_v9, %v6539_v43  ;;  %v3746_v0 = vadd.f32 %v3745_v49, %v6539_v43  ;;  %v3554_v44 = vpop.f32.mrb[154].mxu0  ;;  %v3747_v23 = vpop.f32.mrb[154].mxu1 }
 0x586   :  { %v3890_v46 = vmax.f32 %v3551_v47, 0.0  ;;  %v3892_v41 = vmax.f32 %v3744_v4, 0.0  ;;  %v3555_v50 = vadd.f32 %v3554_v44, %v3222_v3  ;;  %v3748_v29 = vadd.f32 %v3747_v23, %v3222_v3  ;;  %v3556_v55 = vpop.f32.mrb[155].mxu0  ;;  %v3749_v30 = vpop.f32.mrb[155].mxu1 }
 0x587   :  { %v3891_v28 = vmax.f32 %v3553_v53, 0.0  ;;  %v3893_v52 = vmax.f32 %v3746_v0, 0.0  ;;  %v3557_v10 = vadd.f32 %v3556_v55, %v3222_v3  ;;  %v3750_v45 = vadd.f32 %v3749_v30, %v3222_v3  ;;  %v3230_v14 = vpop.permute.xlu0 %3229  ;;  %v6669_v59 = vpop.permute.xlu1 %4059 }
 0x588   :  { %v4146_v62 = vmul.f32 %v6601_v20, %v3890_v46  ;;  %v4148_v17 = vmul.f32 %v6601_v20, %v3892_v41  ;;  %v3894_v56 = vmax.f32 %v3555_v50, 0.0  ;;  %v3896_v5 = vmax.f32 %v3748_v29, 0.0 }
 0x589   :  { %v4147_v43 = vmul.f32 %v6601_v20, %v3891_v28  ;;  %v4149_v12 = vmul.f32 %v6601_v20, %v3893_v52  ;;  %v3895_v7 = vmax.f32 %v3557_v10, 0.0  ;;  %v3897_v2 = vmax.f32 %v3750_v45, 0.0 }
 0x58a   :  { %v4237_v19 = vadd.f32 %v4236_v26, %v4146_v62  ;;  %v4311_v36 = vadd.f32 %v4310_v33, %v4148_v17  ;;  %v4150_v42 = vmul.f32 %v6557_v38, %v3894_v56  ;;  %v4152_v3 = vmul.f32 %v6557_v38, %v3896_v5 }
 0x58b   :  { %v4274_v32 = vadd.f32 %v4273_v21, %v4147_v43  ;;  %v4348_v48 = vadd.f32 %v4347_v61, %v4149_v12  ;;  %v4151_v60 = vmul.f32 %v6557_v38, %v3895_v7  ;;  %v4153_v16 = vmul.f32 %v6557_v38, %v3897_v2  ;;  %v3560_v22 = vpop.f32.mrb[156].mxu0  ;;  %v3753_v15 = vpop.f32.mrb[156].mxu1 }
 0x58c   :  { %v4238_v20 = vadd.f32 %v4237_v19, %v4150_v42  ;;  %v4312_v51 = vadd.f32 %v4311_v36, %v4152_v3  ;;  %v3561_v6 = vadd.f32 %v3560_v22, %v6543_v8  ;;  %v3754_v11 = vadd.f32 %v3753_v15, %v6543_v8  ;;  %v3562_v26 = vpop.f32.mrb[157].mxu0  ;;  %v3755_v33 = vpop.f32.mrb[157].mxu1 }
 0x58d   :  { %v4275_v47 = vadd.f32 %v4274_v32, %v4151_v60  ;;  %v4349_v4 = vadd.f32 %v4348_v48, %v4153_v16  ;;  %v3563_v9 = vadd.f32 %v3562_v26, %v6543_v8  ;;  %v3756_v49 = vadd.f32 %v3755_v33, %v6543_v8  ;;  %v3564_v21 = vpop.f32.mrb[158].mxu0  ;;  %v3757_v61 = vpop.f32.mrb[158].mxu1 }
 0x58e   :  { %v3898_v53 = vmax.f32 %v3561_v6, 0.0  ;;  %v3900_v38 = vmax.f32 %v3754_v11, 0.0  ;;  %v3565_v0 = vadd.f32 %v3564_v21, %v3230_v14  ;;  %v3758_v44 = vadd.f32 %v3757_v61, %v3230_v14  ;;  %v3566_v23 = vpop.f32.mrb[159].mxu0  ;;  %v3759_v46 = vpop.f32.mrb[159].mxu1 }
 0x58f   :  { %v3899_v41 = vmax.f32 %v3563_v9, 0.0  ;;  %v3901_v50 = vmax.f32 %v3756_v49, 0.0  ;;  %v3567_v29 = vadd.f32 %v3566_v23, %v3230_v14  ;;  %v3760_v55 = vadd.f32 %v3759_v46, %v3230_v14  ;;  %v3238_v56 = vpop.permute.xlu0 %3237  ;;  %v6683_v5 = vpop.permute.xlu1 %4067 }
 0x590   :  { %v4154_v30 = vmul.f32 %v6615_v40, %v3898_v53  ;;  %v4156_v28 = vmul.f32 %v6615_v40, %v3900_v38  ;;  %v3902_v52 = vmax.f32 %v3565_v0, 0.0  ;;  %v3904_v10 = vmax.f32 %v3758_v44, 0.0 }
 0x591   :  { %v4155_v8 = vmul.f32 %v6615_v40, %v3899_v41  ;;  %v4157_v45 = vmul.f32 %v6615_v40, %v3901_v50  ;;  %v3903_v62 = vmax.f32 %v3567_v29, 0.0  ;;  %v3905_v17 = vmax.f32 %v3760_v55, 0.0 }
 0x592   :  { %v4239_v43 = vadd.f32 %v4238_v20, %v4154_v30  ;;  %v4313_v12 = vadd.f32 %v4312_v51, %v4156_v28  ;;  %v4158_v7 = vmul.f32 %v6561_v27, %v3902_v52  ;;  %v4160_v2 = vmul.f32 %v6561_v27, %v3904_v10 }
 0x593   :  { %v4276_v14 = vadd.f32 %v4275_v47, %v4155_v8  ;;  %v4350_v19 = vadd.f32 %v4349_v4, %v4157_v45  ;;  %v4159_v36 = vmul.f32 %v6561_v27, %v3903_v62  ;;  %v4161_v42 = vmul.f32 %v6561_v27, %v3905_v17  ;;  %v3570_v3 = vpop.f32.mrb[160].mxu0  ;;  %v3763_v32 = vpop.f32.mrb[160].mxu1 }
 0x594   :  { %v4240_v40 = vadd.f32 %v4239_v43, %v4158_v7  ;;  %v4314_v48 = vadd.f32 %v4313_v12, %v4160_v2  ;;  %v3571_v60 = vadd.f32 %v3570_v3, %v6547_v24  ;;  %v3764_v16 = vadd.f32 %v3763_v32, %v6547_v24  ;;  %v3572_v22 = vpop.f32.mrb[161].mxu0  ;;  %v3765_v15 = vpop.f32.mrb[161].mxu1 }
 0x595   :  { %v4277_v20 = vadd.f32 %v4276_v14, %v4159_v36  ;;  %v4351_v51 = vadd.f32 %v4350_v19, %v4161_v42  ;;  %v3573_v6 = vadd.f32 %v3572_v22, %v6547_v24  ;;  %v3766_v11 = vadd.f32 %v3765_v15, %v6547_v24  ;;  %v3574_v26 = vpop.f32.mrb[162].mxu0  ;;  %v3767_v33 = vpop.f32.mrb[162].mxu1 }
 0x596   :  { %v3906_v47 = vmax.f32 %v3571_v60, 0.0  ;;  %v3908_v27 = vmax.f32 %v3764_v16, 0.0  ;;  %v3575_v4 = vadd.f32 %v3574_v26, %v3238_v56  ;;  %v3768_v9 = vadd.f32 %v3767_v33, %v3238_v56  ;;  %v3576_v49 = vpop.f32.mrb[163].mxu0  ;;  %v3769_v21 = vpop.f32.mrb[163].mxu1 }
 0x597   :  { %v3907_v61 = vmax.f32 %v3573_v6, 0.0  ;;  %v3909_v53 = vmax.f32 %v3766_v11, 0.0  ;;  %v3577_v38 = vadd.f32 %v3576_v49, %v3238_v56  ;;  %v3770_v0 = vadd.f32 %v3769_v21, %v3238_v56  ;;  %v3246_v30 = vpop.permute.xlu0 %3245  ;;  %v6697_v28 = vpop.permute.xlu1 %4071 }
 0x598   :  { %v4162_v44 = vmul.f32 %v6629_v18, %v3906_v47  ;;  %v4164_v23 = vmul.f32 %v6629_v18, %v3908_v27  ;;  %v3910_v46 = vmax.f32 %v3575_v4, 0.0  ;;  %v3912_v41 = vmax.f32 %v3768_v9, 0.0 }
 0x599   :  { %v4163_v24 = vmul.f32 %v6629_v18, %v3907_v61  ;;  %v4165_v50 = vmul.f32 %v6629_v18, %v3909_v53  ;;  %v3911_v29 = vmax.f32 %v3577_v38, 0.0  ;;  %v3913_v55 = vmax.f32 %v3770_v0, 0.0 }
 0x59a   :  { %v4241_v52 = vadd.f32 %v4240_v40, %v4162_v44  ;;  %v4315_v10 = vadd.f32 %v4314_v48, %v4164_v23  ;;  %v4166_v8 = vmul.f32 %v6565_v31, %v3910_v46  ;;  %v4168_v45 = vmul.f32 %v6565_v31, %v3912_v41 }
 0x59b   :  { %v4278_v62 = vadd.f32 %v4277_v20, %v4163_v24  ;;  %v4352_v17 = vadd.f32 %v4351_v51, %v4165_v50  ;;  %v4167_v56 = vmul.f32 %v6565_v31, %v3911_v29  ;;  %v4169_v43 = vmul.f32 %v6565_v31, %v3913_v55  ;;  %v3580_v12 = vpop.f32.mrb[164].mxu0  ;;  %v3773_v7 = vpop.f32.mrb[164].mxu1 }
 0x59c   :  { %v4242_v18 = vadd.f32 %v4241_v52, %v4166_v8  ;;  %v4316_v2 = vadd.f32 %v4315_v10, %v4168_v45  ;;  %v3581_v14 = vadd.f32 %v3580_v12, %v6551_v13  ;;  %v3774_v19 = vadd.f32 %v3773_v7, %v6551_v13  ;;  %v3582_v36 = vpop.f32.mrb[165].mxu0  ;;  %v3775_v42 = vpop.f32.mrb[165].mxu1 }
 0x59d   :  { %v4279_v3 = vadd.f32 %v4278_v62, %v4167_v56  ;;  %v4353_v32 = vadd.f32 %v4352_v17, %v4169_v43  ;;  %v3583_v40 = vadd.f32 %v3582_v36, %v6551_v13  ;;  %v3776_v48 = vadd.f32 %v3775_v42, %v6551_v13  ;;  %v3584_v60 = vpop.f32.mrb[166].mxu0  ;;  %v3777_v16 = vpop.f32.mrb[166].mxu1 }
 0x59e   :  { %v3914_v22 = vmax.f32 %v3581_v14, 0.0  ;;  %v3916_v31 = vmax.f32 %v3774_v19, 0.0  ;;  %v3585_v15 = vadd.f32 %v3584_v60, %v3246_v30  ;;  %v3778_v20 = vadd.f32 %v3777_v16, %v3246_v30  ;;  %v3586_v51 = vpop.f32.mrb[167].mxu0  ;;  %v3779_v6 = vpop.f32.mrb[167].mxu1 }
 0x59f   :  { %v3915_v11 = vmax.f32 %v3583_v40, 0.0  ;;  %v3917_v26 = vmax.f32 %v3776_v48, 0.0  ;;  %v3587_v33 = vadd.f32 %v3586_v51, %v3246_v30  ;;  %v3780_v47 = vadd.f32 %v3779_v6, %v3246_v30  ;;  %v3254_v38 = vpop.permute.xlu0 %3253  ;;  %v6713_v41 = vpop.permute.xlu1 %3281 }
 0x5a0   :  { %v4170_v27 = vmul.f32 %v6641_v25, %v3914_v22  ;;  %v4172_v4 = vmul.f32 %v6641_v25, %v3916_v31  ;;  %v3918_v9 = vmax.f32 %v3585_v15, 0.0  ;;  %v3920_v49 = vmax.f32 %v3778_v20, 0.0 }
 0x5a1   :  { %v4171_v13 = vmul.f32 %v6641_v25, %v3915_v11  ;;  %v4173_v21 = vmul.f32 %v6641_v25, %v3917_v26  ;;  %v3919_v61 = vmax.f32 %v3587_v33, 0.0  ;;  %v3921_v53 = vmax.f32 %v3780_v47, 0.0 }
 0x5a2   :  { %v4243_v0 = vadd.f32 %v4242_v18, %v4170_v27  ;;  %v4317_v44 = vadd.f32 %v4316_v2, %v4172_v4  ;;  %v4174_v23 = vmul.f32 %v6569_v35, %v3918_v9  ;;  %v4176_v46 = vmul.f32 %v6569_v35, %v3920_v49 }
 0x5a3   :  { %v4280_v24 = vadd.f32 %v4279_v3, %v4171_v13  ;;  %v4354_v50 = vadd.f32 %v4353_v32, %v4173_v21  ;;  %v4175_v29 = vmul.f32 %v6569_v35, %v3919_v61  ;;  %v4177_v55 = vmul.f32 %v6569_v35, %v3921_v53  ;;  %v3590_v30 = vpop.f32.mrb[168].mxu0  ;;  %v3783_v52 = vpop.f32.mrb[168].mxu1 }
 0x5a4   :  { %v4244_v25 = vadd.f32 %v4243_v0, %v4174_v23  ;;  %v4318_v10 = vadd.f32 %v4317_v44, %v4176_v46  ;;  %v3591_v8 = vadd.f32 %v3590_v30, %v6555_v58  ;;  %v3784_v45 = vadd.f32 %v3783_v52, %v6555_v58  ;;  %v3592_v62 = vpop.f32.mrb[169].mxu0  ;;  %v3785_v17 = vpop.f32.mrb[169].mxu1 }
 0x5a5   :  { %v4281_v56 = vadd.f32 %v4280_v24, %v4175_v29  ;;  %v4355_v43 = vadd.f32 %v4354_v50, %v4177_v55  ;;  %v3593_v12 = vadd.f32 %v3592_v62, %v6555_v58  ;;  %v3786_v7 = vadd.f32 %v3785_v17, %v6555_v58  ;;  %v3594_v18 = vpop.f32.mrb[170].mxu0  ;;  %v3787_v2 = vpop.f32.mrb[170].mxu1 }
 0x5a6   :  { %v3922_v14 = vmax.f32 %v3591_v8, 0.0  ;;  %v3924_v35 = vmax.f32 %v3784_v45, 0.0  ;;  %v3595_v19 = vadd.f32 %v3594_v18, %v3254_v38  ;;  %v3788_v36 = vadd.f32 %v3787_v2, %v3254_v38  ;;  %v3596_v42 = vpop.f32.mrb[171].mxu0  ;;  %v3789_v3 = vpop.f32.mrb[171].mxu1 }
 0x5a7   :  { %v3923_v32 = vmax.f32 %v3593_v12, 0.0  ;;  %v3925_v40 = vmax.f32 %v3786_v7, 0.0  ;;  %v3597_v48 = vadd.f32 %v3596_v42, %v3254_v38  ;;  %v3790_v60 = vadd.f32 %v3789_v3, %v3254_v38  ;;  %v3262_v11 = vpop.permute.xlu0 %3261  ;;  %v6727_v4 = vpop.permute.xlu1 %3285 }
 0x5a8   :  { %v4178_v16 = vmul.f32 %v6655_v57, %v3922_v14  ;;  %v4180_v22 = vmul.f32 %v6655_v57, %v3924_v35  ;;  %v3926_v31 = vmax.f32 %v3595_v19, 0.0  ;;  %v3928_v15 = vmax.f32 %v3788_v36, 0.0 }
 0x5a9   :  { %v4179_v58 = vmul.f32 %v6655_v57, %v3923_v32  ;;  %v4181_v20 = vmul.f32 %v6655_v57, %v3925_v40  ;;  %v3927_v51 = vmax.f32 %v3597_v48, 0.0  ;;  %v3929_v6 = vmax.f32 %v3790_v60, 0.0 }
 0x5aa   :  { %v4245_v26 = vadd.f32 %v4244_v25, %v4178_v16  ;;  %v4319_v33 = vadd.f32 %v4318_v10, %v4180_v22  ;;  %v4182_v47 = vmul.f32 %v6571_v37, %v3926_v31  ;;  %v4184_v27 = vmul.f32 %v6571_v37, %v3928_v15 }
 0x5ab   :  { %v4282_v9 = vadd.f32 %v4281_v56, %v4179_v58  ;;  %v4356_v49 = vadd.f32 %v4355_v43, %v4181_v20  ;;  %v4183_v13 = vmul.f32 %v6571_v37, %v3927_v51  ;;  %v4185_v21 = vmul.f32 %v6571_v37, %v3929_v6  ;;  %v3600_v61 = vpop.f32.mrb[172].mxu0  ;;  %v3793_v53 = vpop.f32.mrb[172].mxu1 }
 0x5ac   :  { %v4246_v57 = vadd.f32 %v4245_v26, %v4182_v47  ;;  %v4320_v38 = vadd.f32 %v4319_v33, %v4184_v27  ;;  %v3601_v0 = vadd.f32 %v3600_v61, %v6559_v39  ;;  %v3794_v44 = vadd.f32 %v3793_v53, %v6559_v39  ;;  %v3602_v23 = vpop.f32.mrb[173].mxu0  ;;  %v3795_v46 = vpop.f32.mrb[173].mxu1 }
 0x5ad   :  { %v4283_v24 = vadd.f32 %v4282_v9, %v4183_v13  ;;  %v4357_v50 = vadd.f32 %v4356_v49, %v4185_v21  ;;  %v3603_v29 = vadd.f32 %v3602_v23, %v6559_v39  ;;  %v3796_v55 = vadd.f32 %v3795_v46, %v6559_v39  ;;  %v3604_v30 = vpop.f32.mrb[174].mxu0  ;;  %v3797_v52 = vpop.f32.mrb[174].mxu1 }
 0x5ae   :  { %v3930_v25 = vmax.f32 %v3601_v0, 0.0  ;;  %v3932_v37 = vmax.f32 %v3794_v44, 0.0  ;;  %v3605_v10 = vadd.f32 %v3604_v30, %v3262_v11  ;;  %v3798_v8 = vadd.f32 %v3797_v52, %v3262_v11  ;;  %v3606_v45 = vpop.f32.mrb[175].mxu0  ;;  %v3799_v62 = vpop.f32.mrb[175].mxu1 }
 0x5af   :  { %v3931_v17 = vmax.f32 %v3603_v29, 0.0  ;;  %v3933_v56 = vmax.f32 %v3796_v55, 0.0  ;;  %v3607_v43 = vadd.f32 %v3606_v45, %v3262_v11  ;;  %v3800_v12 = vadd.f32 %v3799_v62, %v3262_v11  ;;  %v3270_v42 = vpop.permute.xlu0 %3269  ;;  %v6741_v60 = vpop.permute.xlu1 %4079 }
 0x5b0   :  { %v4186_v7 = vmul.f32 %v6669_v59, %v3930_v25  ;;  %v4188_v18 = vmul.f32 %v6669_v59, %v3932_v37  ;;  %v3934_v2 = vmax.f32 %v3605_v10, 0.0  ;;  %v3936_v14 = vmax.f32 %v3798_v8, 0.0 }
 0x5b1   :  { %v4187_v39 = vmul.f32 %v6669_v59, %v3931_v17  ;;  %v4189_v35 = vmul.f32 %v6669_v59, %v3933_v56  ;;  %v3935_v19 = vmax.f32 %v3607_v43, 0.0  ;;  %v3937_v36 = vmax.f32 %v3800_v12, 0.0 }
 0x5b2   :  { %v4247_v3 = vadd.f32 %v4246_v57, %v4186_v7  ;;  %v4321_v32 = vadd.f32 %v4320_v38, %v4188_v18  ;;  %v4190_v40 = vmul.f32 %v6575_v63, %v3934_v2  ;;  %v4192_v48 = vmul.f32 %v6575_v63, %v3936_v14 }
 0x5b3   :  { %v4284_v16 = vadd.f32 %v4283_v24, %v4187_v39  ;;  %v4358_v22 = vadd.f32 %v4357_v50, %v4189_v35  ;;  %v4191_v31 = vmul.f32 %v6575_v63, %v3935_v19  ;;  %v4193_v15 = vmul.f32 %v6575_v63, %v3937_v36  ;;  %v3610_v58 = vpop.f32.mrb[176].mxu0  ;;  %v3803_v20 = vpop.f32.mrb[176].mxu1 }
 0x5b4   :  { %v4248_v59 = vadd.f32 %v4247_v3, %v4190_v40  ;;  %v4322_v51 = vadd.f32 %v4321_v32, %v4192_v48  ;;  %v3611_v6 = vadd.f32 %v3610_v58, %v6563_v34  ;;  %v3804_v11 = vadd.f32 %v3803_v20, %v6563_v34  ;;  %v3612_v26 = vpop.f32.mrb[177].mxu0  ;;  %v3805_v33 = vpop.f32.mrb[177].mxu1 }
 0x5b5   :  { %v4285_v47 = vadd.f32 %v4284_v16, %v4191_v31  ;;  %v4359_v27 = vadd.f32 %v4358_v22, %v4193_v15  ;;  %v3613_v9 = vadd.f32 %v3612_v26, %v6563_v34  ;;  %v3806_v49 = vadd.f32 %v3805_v33, %v6563_v34  ;;  %v3614_v13 = vpop.f32.mrb[178].mxu0  ;;  %v3807_v21 = vpop.f32.mrb[178].mxu1 }
 0x5b6   :  { %v3938_v61 = vmax.f32 %v3611_v6, 0.0  ;;  %v3940_v63 = vmax.f32 %v3804_v11, 0.0  ;;  %v3615_v53 = vadd.f32 %v3614_v13, %v3270_v42  ;;  %v3808_v57 = vadd.f32 %v3807_v21, %v3270_v42  ;;  %v3616_v38 = vpop.f32.mrb[179].mxu0  ;;  %v3809_v0 = vpop.f32.mrb[179].mxu1 }
 0x5b7   :  { %v3939_v44 = vmax.f32 %v3613_v9, 0.0  ;;  %v3941_v23 = vmax.f32 %v3806_v49, 0.0  ;;  %v3617_v46 = vadd.f32 %v3616_v38, %v3270_v42  ;;  %v3810_v24 = vadd.f32 %v3809_v0, %v3270_v42  ;;  %v3278_v10 = vpop.permute.xlu0 %3277  ;;  %v6755_v56 = vpop.permute.xlu1 %4083 }
 0x5b8   :  { %v4194_v50 = vmul.f32 %v6683_v5, %v3938_v61  ;;  %v4196_v29 = vmul.f32 %v6683_v5, %v3940_v63  ;;  %v3942_v55 = vmax.f32 %v3615_v53, 0.0  ;;  %v3944_v30 = vmax.f32 %v3808_v57, 0.0 }
 0x5b9   :  { %v4195_v34 = vmul.f32 %v6683_v5, %v3939_v44  ;;  %v4197_v52 = vmul.f32 %v6683_v5, %v3941_v23  ;;  %v3943_v25 = vmax.f32 %v3617_v46, 0.0  ;;  %v3945_v37 = vmax.f32 %v3810_v24, 0.0 }
 0x5ba   :  { %v4249_v8 = vadd.f32 %v4248_v59, %v4194_v50  ;;  %v4323_v45 = vadd.f32 %v4322_v51, %v4196_v29  ;;  %v4198_v62 = vmul.f32 %v6697_v28, %v3942_v55  ;;  %v4200_v17 = vmul.f32 %v6697_v28, %v3944_v30 }
 0x5bb   :  { %v4286_v43 = vadd.f32 %v4285_v47, %v4195_v34  ;;  %v4360_v12 = vadd.f32 %v4359_v27, %v4197_v52  ;;  %v4199_v7 = vmul.f32 %v6697_v28, %v3943_v25  ;;  %v4201_v18 = vmul.f32 %v6697_v28, %v3945_v37  ;;  %v3620_v2 = vpop.f32.mrb[180].mxu0  ;;  %v3813_v14 = vpop.f32.mrb[180].mxu1 }
 0x5bc   :  { %v4250_v5 = vadd.f32 %v4249_v8, %v4198_v62  ;;  %v4324_v39 = vadd.f32 %v4323_v45, %v4200_v17  ;;  %v3621_v35 = vadd.f32 %v3620_v2, %v6567_v1  ;;  %v3814_v19 = vadd.f32 %v3813_v14, %v6567_v1  ;;  %v3622_v36 = vpop.f32.mrb[181].mxu0  ;;  %v3815_v42 = vpop.f32.mrb[181].mxu1 }
 0x5bd   :  { %v4287_v3 = vadd.f32 %v4286_v43, %v4199_v7  ;;  %v4361_v32 = vadd.f32 %v4360_v12, %v4201_v18  ;;  %v3623_v40 = vadd.f32 %v3622_v36, %v6567_v1  ;;  %v3816_v48 = vadd.f32 %v3815_v42, %v6567_v1  ;;  %v3624_v16 = vpop.f32.mrb[182].mxu0  ;;  %v3817_v22 = vpop.f32.mrb[182].mxu1 }
 0x5be   :  { %v3946_v31 = vmax.f32 %v3621_v35, 0.0  ;;  %v3948_v28 = vmax.f32 %v3814_v19, 0.0  ;;  %v3625_v15 = vadd.f32 %v3624_v16, %v3278_v10  ;;  %v3818_v58 = vadd.f32 %v3817_v22, %v3278_v10  ;;  %v3626_v20 = vpop.f32.mrb[183].mxu0  ;;  %v3819_v59 = vpop.f32.mrb[183].mxu1 }
 0x5bf   :  { %v3947_v51 = vmax.f32 %v3623_v40, 0.0  ;;  %v3949_v6 = vmax.f32 %v3816_v48, 0.0  ;;  %v3627_v11 = vadd.f32 %v3626_v20, %v3278_v10  ;;  %v3820_v26 = vadd.f32 %v3819_v59, %v3278_v10  ;;  %v6767_v61 = vpop.permute.xlu0 %3289  ;;  %v6771_v0 = vpop.permute.xlu1 %3293 }
 0x5c0   :  { %v4202_v33 = vmul.f32 %v6579_v54, %v3946_v31  ;;  %v4204_v47 = vmul.f32 %v6579_v54, %v3948_v28  ;;  %v3950_v27 = vmax.f32 %v3625_v15, 0.0  ;;  %v3952_v9 = vmax.f32 %v3818_v58, 0.0 }
 0x5c1   :  { %v4203_v1 = vmul.f32 %v6579_v54, %v3947_v51  ;;  %v4205_v49 = vmul.f32 %v6579_v54, %v3949_v6  ;;  %v3951_v13 = vmax.f32 %v3627_v11, 0.0  ;;  %v3953_v21 = vmax.f32 %v3820_v26, 0.0 }
 0x5c2   :  { %v4251_v63 = vadd.f32 %v4250_v5, %v4202_v33  ;;  %v4325_v53 = vadd.f32 %v4324_v39, %v4204_v47  ;;  %v4206_v57 = vmul.f32 %v6741_v60, %v3950_v27  ;;  %v4208_v38 = vmul.f32 %v6741_v60, %v3952_v9 }
 0x5c3   :  { %v4288_v44 = vadd.f32 %v4287_v3, %v4203_v1  ;;  %v4362_v23 = vadd.f32 %v4361_v32, %v4205_v49  ;;  %v4207_v46 = vmul.f32 %v6741_v60, %v3951_v13  ;;  %v4209_v24 = vmul.f32 %v6741_v60, %v3953_v21  ;;  %v3630_v50 = vpop.f32.mrb[184].mxu0  ;;  %v3823_v54 = vpop.f32.mrb[184].mxu1 }
 0x5c4   :  { %v4252_v29 = vadd.f32 %v4251_v63, %v4206_v57  ;;  %v4326_v55 = vadd.f32 %v4325_v53, %v4208_v38  ;;  %v3631_v30 = vadd.f32 %v3630_v50, %v6713_v41  ;;  %v3824_v34 = vadd.f32 %v3823_v54, %v6713_v41  ;;  %v3632_v52 = vpop.f32.mrb[185].mxu0  ;;  %v3825_v25 = vpop.f32.mrb[185].mxu1 }
 0x5c5   :  { %v4289_v37 = vadd.f32 %v4288_v44, %v4207_v46  ;;  %v4363_v10 = vadd.f32 %v4362_v23, %v4209_v24  ;;  %v3633_v8 = vadd.f32 %v3632_v52, %v6713_v41  ;;  %v3826_v45 = vadd.f32 %v3825_v25, %v6713_v41  ;;  %v3634_v62 = vpop.f32.mrb[186].mxu0  ;;  %v3827_v17 = vpop.f32.mrb[186].mxu1 }
 0x5c6   :  { %v3954_v43 = vmax.f32 %v3631_v30, 0.0  ;;  %v3956_v60 = vmax.f32 %v3824_v34, 0.0  ;;  %v3635_v12 = vadd.f32 %v3634_v62, %v6727_v4  ;;  %v3828_v7 = vadd.f32 %v3827_v17, %v6727_v4  ;;  %v3636_v18 = vpop.f32.mrb[187].mxu0  ;;  %v3829_v2 = vpop.f32.mrb[187].mxu1 }
 0x5c7   :  { %v3955_v14 = vmax.f32 %v3633_v8, 0.0  ;;  %v3957_v5 = vmax.f32 %v3826_v45, 0.0  ;;  %v3637_v39 = vadd.f32 %v3636_v18, %v6727_v4  ;;  %v3830_v35 = vadd.f32 %v3829_v2, %v6727_v4  ;;  %v4088_v19 = vpop.permute.xlu0 %4087  ;;  %v4092_v58 = vpop.permute.xlu1 %4091 }
 0x5c8   :  { %v4210_v36 = vmul.f32 %v6755_v56, %v3954_v43  ;;  %v4212_v41 = vmul.f32 %v6755_v56, %v3956_v60  ;;  %v3958_v42 = vmax.f32 %v3635_v12, 0.0  ;;  %v3960_v3 = vmax.f32 %v3828_v7, 0.0 }
 0x5c9   :  { %v4211_v32 = vmul.f32 %v6755_v56, %v3955_v14  ;;  %v4213_v40 = vmul.f32 %v6755_v56, %v3957_v5  ;;  %v3959_v48 = vmax.f32 %v3637_v39, 0.0  ;;  %v3961_v16 = vmax.f32 %v3830_v35, 0.0 }
 0x5ca   :  { %v4253_v22 = vadd.f32 %v4252_v29, %v4210_v36  ;;  %v4327_v31 = vadd.f32 %v4326_v55, %v4212_v41  ;;  %v4214_v28 = vmul.f32 %v4088_v19, %v3958_v42  ;;  %v4216_v15 = vmul.f32 %v4088_v19, %v3960_v3 }
 0x5cb   :  { %v4290_v20 = vadd.f32 %v4289_v37, %v4211_v32  ;;  %v4364_v4 = vadd.f32 %v4363_v10, %v4213_v40  ;;  %v4215_v59 = vmul.f32 %v4088_v19, %v3959_v48  ;;  %v4217_v51 = vmul.f32 %v4088_v19, %v3961_v16  ;;  %v3640_v6 = vpop.f32.mrb[188].mxu0  ;;  %v3833_v11 = vpop.f32.mrb[188].mxu1 }
 0x5cc   :  { %v4254_v26 = vadd.f32 %v4253_v22, %v4214_v28  ;;  %v4328_v33 = vadd.f32 %v4327_v31, %v4216_v15  ;;  %v3641_v47 = vadd.f32 %v3640_v6, %v6767_v61  ;;  %v3834_v27 = vadd.f32 %v3833_v11, %v6767_v61  ;;  %v3642_v56 = vpop.f32.mrb[189].mxu0  ;;  %v3835_v9 = vpop.f32.mrb[189].mxu1 }
 0x5cd   :  { %v4291_v1 = vadd.f32 %v4290_v20, %v4215_v59  ;;  %v4365_v49 = vadd.f32 %v4364_v4, %v4217_v51  ;;  %v3643_v13 = vadd.f32 %v3642_v56, %v6767_v61  ;;  %v3836_v21 = vadd.f32 %v3835_v9, %v6767_v61  ;;  %v3644_v63 = vpop.f32.mrb[190].mxu0  ;;  %v3837_v53 = vpop.f32.mrb[190].mxu1 }
 0x5ce   :  { %v3962_v57 = vmax.f32 %v3641_v47, 0.0  ;;  %v3964_v38 = vmax.f32 %v3834_v27, 0.0  ;;  %v3645_v44 = vadd.f32 %v3644_v63, %v6771_v0  ;;  %v3838_v23 = vadd.f32 %v3837_v53, %v6771_v0  ;;  %v3646_v46 = vpop.f32.mrb[191].mxu0  ;;  %v3839_v24 = vpop.f32.mrb[191].mxu1 }
 0x5cf   :  { %v3963_v50 = vmax.f32 %v3643_v13, 0.0  ;;  %v3965_v54 = vmax.f32 %v3836_v21, 0.0  ;;  %v3647_v29 = vadd.f32 %v3646_v46, %v6771_v0  ;;  %v3840_v55 = vadd.f32 %v3839_v24, %v6771_v0  ;;  %v4096_v45 = vpop.permute.xlu1 %4095  ;;  %v6914_v21 = vld [vmem:[#allocation14_spill] sm:$0xff] }
 0x5d0   :  { %v4218_v30 = vmul.f32 %v4092_v58, %v3962_v57  ;;  %v4220_v34 = vmul.f32 %v4092_v58, %v3964_v38  ;;  %v3966_v52 = vmax.f32 %v3645_v44, 0.0  ;;  %v3968_v61 = vmax.f32 %v3838_v23, 0.0 }
 0x5d1   :  { %v4219_v25 = vmul.f32 %v4092_v58, %v3963_v50  ;;  %v4221_v37 = vmul.f32 %v4092_v58, %v3965_v54  ;;  %v3967_v10 = vmax.f32 %v3647_v29, 0.0  ;;  %v3969_v8 = vmax.f32 %v3840_v55, 0.0 }
 0x5d2   :  { %v4222_v62 = vmul.f32 %v4096_v45, %v3966_v52  ;;  %v4224_v17 = vmul.f32 %v4096_v45, %v3968_v61  ;;  %v4255_v43 = vadd.f32 %v4254_v26, %v4218_v30  ;;  %v4329_v60 = vadd.f32 %v4328_v33, %v4220_v34  ;;  %v4376_v26 = vpop.permute.xlu0 %4375 }
 0x5d3   :  { %v4223_v12 = vmul.f32 %v4096_v45, %v3967_v10  ;;  %v4225_v7 = vmul.f32 %v4096_v45, %v3969_v8  ;;  %v4292_v18 = vadd.f32 %v4291_v1, %v4219_v25  ;;  %v4366_v2 = vadd.f32 %v4365_v49, %v4221_v37 }
 0x5d4   :  { %v4256_v14 = vadd.f32 %v4255_v43, %v4222_v62  ;;  %v4330_v5 = vadd.f32 %v4329_v60, %v4224_v17  ;;  %v4892_v22 = vmov 1966171168   ;;  %v6915_v50 = vlaneseq }
 0x5d5   :  { %v4293_v0 = vadd.f32 %v4292_v18, %v4223_v12  ;;  %v4367_v39 = vadd.f32 %v4366_v2, %v4225_v7  ;;  %v4389_v31 = vunpack.c.l.s4 %v4892_v22 }
 0x5d6   :  { %v4257_v35 = vrot.slane %v4256_v14, 4  ;;  %v4331_v19 = vrot.slane %v4330_v5, 4  ;;  %vm4413_vm0 = vcmp.lt.s32.totalorder %v6915_v50, 512 }
 0x5d7   :  { %v4294_v36 = vrot.slane %v4293_v0, 4  ;;  %v4368_v41 = vrot.slane %v4367_v39, 4  ;;  %v4390_v11 = vunpack.c.0.s8 %v4389_v31 }
 0x5d8   :  { %v4258_v42 = vadd.f32 %v4257_v35, %v4256_v14  ;;  %v4332_v3 = vadd.f32 %v4331_v19, %v4330_v5 }
 0x5d9   :  { %v4295_v32 = vadd.f32 %v4294_v36, %v4293_v0  ;;  %v4369_v40 = vadd.f32 %v4368_v41, %v4367_v39  ;;  %v4393_v63 = vsub.s32 %v4390_v11, %v6914_v21 }
 0x5da   :  { %v4259_v48 = vrot.slane %v4258_v42, 2  ;;  %v4333_v16 = vrot.slane %v4332_v3, 2 }
 0x5db   :  { %v4296_v28 = vrot.slane %v4295_v32, 2  ;;  %v4370_v15 = vrot.slane %v4369_v40, 2 }
 0x5dc   :  { %v4260_v58 = vadd.f32 %v4259_v48, %v4258_v42  ;;  %v4334_v20 = vadd.f32 %v4333_v16, %v4332_v3 }
 0x5dd   :  { %v4297_v4 = vadd.f32 %v4296_v28, %v4295_v32  ;;  %v4371_v59 = vadd.f32 %v4370_v15, %v4369_v40 }
 0x5de   :  { %v4261_v51 = vrot.slane %v4260_v58, 1  ;;  %v4335_v6 = vrot.slane %v4334_v20, 1 }
 0x5df   :  { %v4298_v33 = vrot.slane %v4297_v4, 1  ;;  %v4372_v47 = vrot.slane %v4371_v59, 1 }
 0x5e0   :  { %v4262_v27 = vadd.f32 %v4261_v51, %v4260_v58  ;;  %v4336_v56 = vadd.f32 %v4335_v6, %v4334_v20 }
 0x5e1   :  { %v4299_v9 = vadd.f32 %v4298_v33, %v4297_v4  ;;  %v4373_v1 = vadd.f32 %v4372_v47, %v4371_v59 }
 0x5e2   :  { %v4378_v49 = vadd.f32 %v4376_v26, %v4262_v27  ;;  %v4380_v13 = vadd.f32 %v4376_v26, %v4336_v56 }
 0x5e3   :  { %v4379_v53 = vadd.f32 %v4376_v26, %v4299_v9  ;;  %v4381_v57 = vadd.f32 %v4376_v26, %v4373_v1 }
 0x5e5   :  { %v4386_v38 = vcombine.low %v4378_v49, %v4379_v53  ;;  %v4387_v44 = vcombine.low %v4380_v13, %v4381_v57 }
 0x5e7   :  { %v4394_v23 = vrot.slane %v4386_v38, %v4393_v63  ;;  %v4401_v46 = vrot.slane %v4387_v44, %v4393_v63 }
 0x5e9   :  { %v4402_v24 = vcombine.low %v4394_v23, %v4401_v46 }
 0x5eb   :  { %v4409_v54 = vrot.slane %v4402_v24, %v4393_v63 }
 0x5ed   :  { %4415 = vst.msk [vmem:[#allocation7] sm:$0xf] %vm4413_vm0, %v4409_v54 }
 0x5ee   :  { %4865 = shalt.err (!%p4862_p6)
}
 0x5ef   :  { %s4866_s30 = scalar_lea.hbm %s6815_s6, 64 }
 0x5f0   :  { %p4867_p7 = scmp.ne.s32.totalorder %s6815_s6, %s4866_s30  ;;  %p4870_p8 = scmp.lt.u32.totalorder %s4866_s30, %s6815_s6 }
 0x5f2   :  { %p4872_p9 = pnand %p4870_p8, %p4867_p7 }
 0x5f4   :  { %4875 = shalt.err (!%p4872_p9)
}
 0x5f5   :  { %4425 = dma.vmem_to_hbm [thread:$0]  %s4423_s27, 64, %s6815_s6, [#allocation4]  }
 0x5f6   :  { %4880 = dma.done.wait [#allocation4], 64  }
 0x5f7   :  { %4881 = vsyncadd [#allocation4], 4294967232 }
 0x5f8   :  { %4429 = vsyncpa [#allocation3], 1 }
 0x5f9   :  { %4430 = vsyncpa [#allocation6], 1 }
 0x5fa   :  { %4431 = vsyncpa [#allocation4], 1 }

</bundles_post_ra>
